<compile_context>
chip_gen: v6e
topology: v6e:2x2x1
jax: 0.10.0
libtpu: 0.0.40
codegen_flags: <defaults>
</compile_context>

<pallas_src>
import functools
import math

import jax
import jax.numpy as jnp
from jax import lax
from jax.experimental import pallas as pl
from jax.experimental.pallas import tpu as pltpu

_MIB = 1024 * 1024


def _round_up(x, m):
    return ((x + m - 1) // m) * m


def _gelu_exact(x):
    # nn.GELU() default is the exact erf form (kept for PyTorch parity).
    # TODO(synk): jax.nn.gelu(approximate=True) would move work to the EUP, but
    # deviates from exact-erf parity by ~1e-3, so it is not the default.
    return 0.5 * x * (1.0 + lax.erf(x * (1.0 / math.sqrt(2.0))))


def _vmem_capacity_bytes():
    try:
        return int(pltpu.get_tpu_info().vmem_capacity_bytes)
    except Exception:
        return 128 * _MIB  # conservative default (v5e/v6e)


# ---------------------------------------------------------------------------
# One-time parameter preparation (hoisted out of the per-call path).
# ---------------------------------------------------------------------------
def prepare_mlp_params(params, *, compute_dtype=jnp.bfloat16):
    """Pad weights to lane multiples of 128 and cast once to the MXU dtype."""
    w1, b1, w2, b2 = params["w1"], params["b1"], params["w2"], params["b2"]
    D, H = w1.shape
    assert w2.shape == (H, D) and b1.shape == (H,) and b2.shape == (D,)
    Dp = _round_up(D, 128)
    Hp = _round_up(H, 128)
    w1p = jnp.pad(w1, ((0, Dp - D), (0, Hp - H))).astype(compute_dtype)
    w2p = jnp.pad(w2, ((0, Hp - H), (0, Dp - D))).astype(compute_dtype)
    b1p = jnp.pad(b1.reshape(1, H), ((0, 0), (0, Hp - H)))  # f32 (bias math stays f32)
    b2p = jnp.pad(b2.reshape(1, D), ((0, 0), (0, Dp - D)))  # f32
    return dict(w1p=w1p, b1p=b1p, w2p=w2p, b2p=b2p,
                D=D, H=H, Dp=Dp, Hp=Hp, compute_dtype=compute_dtype)


# ---------------------------------------------------------------------------
# Kernels
# ---------------------------------------------------------------------------
def _mlp_resident_kernel(compute_dtype, x_ref, w1_ref, b1_ref, w2_ref, b2_ref, o_ref):
    # Full padded weights resident in VMEM; one grid step = one row tile.
    x = x_ref[...].astype(compute_dtype)                               # (TM, Dp)
    h = jnp.dot(x, w1_ref[...],
                preferred_element_type=jnp.float32) + b1_ref[...]      # (TM, Hp) f32
    h = _gelu_exact(h)                                                 # f32 elementwise
    y = jnp.dot(h.astype(compute_dtype), w2_ref[...],
                preferred_element_type=jnp.float32) + b2_ref[...]      # (TM, Dp) f32
    o_ref[...] = y.astype(o_ref.dtype)


def _mlp_stream_kernel(compute_dtype, x_ref, w1_ref, b1_ref, w2_ref, b2_ref,
                       o_ref, acc_ref):
    # Hidden-dim streaming: grid = (row tiles, hidden tiles); k is the
    # reduction axis (innermost).  b1 is added once per hidden slice, b2 only
    # at finalize; accumulator is zeroed under pl.when(k == 0).
    k = pl.program_id(1)

    @pl.when(k == 0)
    def _():
        acc_ref[...] = jnp.zeros_like(acc_ref)

    x = x_ref[...].astype(compute_dtype)                               # (TM, Dp)
    h = jnp.dot(x, w1_ref[...],
                preferred_element_type=jnp.float32) + b1_ref[...]      # (TM, Ht) f32
    h = _gelu_exact(h)
    acc_ref[...] += jnp.dot(h.astype(compute_dtype), w2_ref[...],
                            preferred_element_type=jnp.float32)        # (TM, Dp) f32

    @pl.when(k == pl.num_programs(1) - 1)
    def _():
        o_ref[...] = (acc_ref[...] + b2_ref[...]).astype(o_ref.dtype)


# ---------------------------------------------------------------------------
# VMEM footprint estimates (per TensorCore)
# ---------------------------------------------------------------------------
def _resident_vmem_bytes(TM, Dp, Hp, x_bytes, w_bytes, o_bytes):
    weights = 2 * Dp * Hp * w_bytes          # w1 + w2, single-buffered
    biases = (Hp + Dp) * 4
    io = 2 * TM * Dp * (x_bytes + o_bytes)   # double-buffered x / out tiles
    temps = TM * Hp * (4 + w_bytes)          # f32 h + its compute-dtype cast
    return weights + biases + io + temps


def _stream_vmem_bytes(TM, Dp, Ht, x_bytes, w_bytes, o_bytes):
    weights = 2 * 2 * Dp * Ht * w_bytes      # double-buffered w1/w2 hidden tiles
    biases = 2 * (Ht + Dp) * 4
    io = 2 * TM * Dp * (x_bytes + o_bytes)
    acc = TM * Dp * 4
    temps = TM * Ht * (4 + w_bytes)
    return weights + biases + io + acc + temps


def _pick_hidden_tile(Hp, target):
    # Largest multiple of 128 that divides Hp and is <= target.
    n = Hp // 128
    best = 1
    for d in range(1, n + 1):
        if n % d == 0 and d * 128 <= max(128, target):
            best = d
    return best * 128


# ---------------------------------------------------------------------------
# pallas_call builders
# ---------------------------------------------------------------------------
def _call_resident(xp, prep, *, TM, Rp, Dp, Hp, out_dtype, vmem_limit,
                   single_buffer_weights=True):
    kern = functools.partial(_mlp_resident_kernel, prep["compute_dtype"])

    def const_spec(shape):
        if single_buffer_weights:
            # Constant index_map -> fetched once; single buffer halves its VMEM.
            return pl.BlockSpec(shape, lambda i: (0, 0),
                                pipeline_mode=pl.Buffered(1))
        return pl.BlockSpec(shape, lambda i: (0, 0))

    return pl.pallas_call(
        kern,
        out_shape=jax.ShapeDtypeStruct((Rp, Dp), out_dtype),
        grid=(Rp // TM,),
        in_specs=[
            pl.BlockSpec((TM, Dp), lambda i: (i, 0)),
            const_spec((Dp, Hp)),
            const_spec((1, Hp)),
            const_spec((Hp, Dp)),
            const_spec((1, Dp)),
        ],
        out_specs=pl.BlockSpec((TM, Dp), lambda i: (i, 0)),
        compiler_params=pltpu.CompilerParams(
            dimension_semantics=("parallel",),
            vmem_limit_bytes=vmem_limit),
    )(xp, prep["w1p"], prep["b1p"], prep["w2p"], prep["b2p"])


def _call_stream(xp, prep, *, TM, Rp, Dp, Hp, Ht, out_dtype, vmem_limit):
    kern = functools.partial(_mlp_stream_kernel, prep["compute_dtype"])
    return pl.pallas_call(
        kern,
        out_shape=jax.ShapeDtypeStruct((Rp, Dp), out_dtype),
        grid=(Rp // TM, Hp // Ht),
        in_specs=[
            pl.BlockSpec((TM, Dp), lambda i, k: (i, 0)),   # x resident across k
            pl.BlockSpec((Dp, Ht), lambda i, k: (0, k)),
            pl.BlockSpec((1, Ht), lambda i, k: (0, k)),
            pl.BlockSpec((Ht, Dp), lambda i, k: (k, 0)),
            pl.BlockSpec((1, Dp), lambda i, k: (0, 0)),
        ],
        out_specs=pl.BlockSpec((TM, Dp), lambda i, k: (i, 0)),
        scratch_shapes=[pltpu.VMEM((TM, Dp), jnp.float32)],
        compiler_params=pltpu.CompilerParams(
            dimension_semantics=("parallel", "arbitrary"),
            vmem_limit_bytes=vmem_limit),
    )(xp, prep["w1p"], prep["b1p"], prep["w2p"], prep["b2p"])


# ---------------------------------------------------------------------------
# Wrapper
# ---------------------------------------------------------------------------
def mlp_block_forward(x, params, *, row_tile=None, hidden_tile=None,
                      out_dtype=None, mode="auto"):
    """MLP_Block forward (dropout = identity).

    `params` may be the raw {"w1","b1","w2","b2"} dict or the result of
    `prepare_mlp_params` (preferred: prepare once, call many times).
    """
    assert mode in ("auto", "resident", "stream")
    prep = params if "w1p" in params else prepare_mlp_params(params)
    D, H, Dp, Hp = prep["D"], prep["H"], prep["Dp"], prep["Hp"]
    assert x.shape[-1] == D
    out_dtype = x.dtype if out_dtype is None else out_dtype

    vmem_cap = _vmem_capacity_bytes()          # per-TensorCore VMEM
    budget = (vmem_cap * 3) // 4               # leave headroom for compiler scratch

    rows = int(math.prod(x.shape[:-1]))
    x2 = x.reshape(rows, D)

    if row_tile is None:
        row_tile = 512 if vmem_cap >= 96 * _MIB else 256
    # Full-width MXU row tile even for tiny row counts (padded rows are sliced off).
    TM = min(row_tile, max(256, _round_up(rows, 8)))
    Rp = _round_up(rows, TM)
    # TODO(synk): mask the ragged last row tile instead of rounding rows up to TM.

    # Lane-dense padding of activations only when actually needed.
    if Rp == rows and Dp == D:
        xp = x2
    else:
        xp = jnp.pad(x2, ((0, Rp - rows), (0, Dp - D)))

    x_bytes = xp.dtype.itemsize
    w_bytes = jnp.dtype(prep["compute_dtype"]).itemsize
    o_bytes = jnp.dtype(out_dtype).itemsize

    resident_est = _resident_vmem_bytes(TM, Dp, Hp, x_bytes, w_bytes, o_bytes)
    use_resident = (mode == "resident") or (mode == "auto" and resident_est <= budget)

    if use_resident:
        est = resident_est
        vmem_limit = int(min(vmem_cap - 4 * _MIB, max(32 * _MIB, est * 1.3)))
        try:
            out = _call_resident(xp, prep, TM=TM, Rp=Rp, Dp=Dp, Hp=Hp,
                                 out_dtype=out_dtype, vmem_limit=vmem_limit,
                                 single_buffer_weights=True)
        except Exception:
            # Older JAX without BlockSpec(pipeline_mode=...): fall back to
            # default (double-buffered) resident weights.
            out = _call_resident(xp, prep, TM=TM, Rp=Rp, Dp=Dp, Hp=Hp,
                                 out_dtype=out_dtype, vmem_limit=vmem_limit,
                                 single_buffer_weights=False)
    else:
        Ht = _pick_hidden_tile(Hp, hidden_tile or 512)
        while (_stream_vmem_bytes(TM, Dp, Ht, x_bytes, w_bytes, o_bytes) > budget
               and Ht > 128):
            Ht = _pick_hidden_tile(Hp, Ht // 2)
        est = _stream_vmem_bytes(TM, Dp, Ht, x_bytes, w_bytes, o_bytes)
        vmem_limit = int(min(vmem_cap - 4 * _MIB, max(32 * _MIB, est * 1.3)))
        out = _call_stream(xp, prep, TM=TM, Rp=Rp, Dp=Dp, Hp=Hp, Ht=Ht,
                           out_dtype=out_dtype, vmem_limit=vmem_limit)

    if Rp != rows or Dp != D:
        out = out[:rows, :D]
    return out.reshape(x.shape)


# ---------------------------------------------------------------------------
# Pure-JAX reference (f32, highest precision) for correctness check.
# ---------------------------------------------------------------------------
def _reference(x, params):
    hp = lax.Precision.HIGHEST
    h = jnp.dot(x, params["w1"], precision=hp) + params["b1"]
    h = 0.5 * h * (1.0 + lax.erf(h / math.sqrt(2.0)))
    return jnp.dot(h, params["w2"], precision=hp) + params["b2"]


# ---------------------------------------------------------------------------
if __name__ == "__main__":
    # Small, lane-aligned demo shapes (dim / hidden multiples of 128).
    batch, seq, dim, hidden_dim = 2, 8, 128, 256

    key = jax.random.PRNGKey(0)
    kx, k1, k2, k3, k4 = jax.random.split(key, 5)
    bound1 = 1.0 / math.sqrt(dim)
    bound2 = 1.0 / math.sqrt(hidden_dim)
    params = {
        "w1": jax.random.uniform(k1, (dim, hidden_dim), jnp.float32, -bound1, bound1),
        "b1": jax.random.uniform(k2, (hidden_dim,), jnp.float32, -bound1, bound1),
        "w2": jax.random.uniform(k3, (hidden_dim, dim), jnp.float32, -bound2, bound2),
        "b2": jax.random.uniform(k4, (dim,), jnp.float32, -bound2, bound2),
    }
    x = jax.random.normal(kx, (batch, seq, dim), jnp.float32)
    ref = _reference(x, params)

    # 1) f32 parity path (matches the PyTorch module in eval mode exactly).
    prep_f32 = prepare_mlp_params(params, compute_dtype=jnp.float32)
    out_f32 = jax.block_until_ready(mlp_block_forward(x, prep_f32))
    assert out_f32.shape == x.shape and out_f32.dtype == jnp.float32
    assert jnp.allclose(out_f32, ref, atol=1e-3, rtol=1e-3), \
        float(jnp.max(jnp.abs(out_f32 - ref)))

    # 2) Default bf16-MXU-input path (f32 accumulation), resident weights.
    prep_bf16 = prepare_mlp_params(params)           # bf16 by default
    out_bf16 = jax.block_until_ready(mlp_block_forward(x, prep_bf16))
    assert out_bf16.shape == x.shape
    assert jnp.allclose(out_bf16, ref, atol=5e-2, rtol=5e-2)

    # 3) Hidden-dim streaming path (bounded-VMEM fallback for large H / v7x),
    #    forced here with a small hidden tile so both kernels are exercised.
    out_stream = jax.block_until_ready(
        mlp_block_forward(x, prep_bf16, mode="stream", hidden_tile=128))
    assert jnp.allclose(out_stream, ref, atol=5e-2, rtol=5e-2)

    print("KERNEL_OK")
</pallas_src>

<mosaic_0001>
module attributes {stable_mosaic.version = 11 : i64} {
  func.func @_mlp_resident_kernel(%arg0: i32, %arg1: memref<256x128xf32, #tpu.memory_space<vmem>>, %arg2: memref<128x256xf32, #tpu.memory_space<vmem>>, %arg3: memref<1x256xf32, #tpu.memory_space<vmem>>, %arg4: memref<256x128xf32, #tpu.memory_space<vmem>>, %arg5: memref<1x128xf32, #tpu.memory_space<vmem>>, %arg6: memref<256x128xf32, #tpu.memory_space<vmem>>) attributes {dimension_semantics = [#tpu.dimension_semantics<parallel>], iteration_bounds = array<i64: 1>, scalar_prefetch = 0 : i64, scratch_operands = 0 : i64, tpu.core_type = #tpu.core_type<tc>, window_params = [{transform_indices = @transform_0, window_bounds = array<i64: 256, 128>}, {pipeline_mode = #tpu.pipeline_mode<synchronous>, transform_indices = @transform_1, window_bounds = array<i64: 128, 256>}, {pipeline_mode = #tpu.pipeline_mode<synchronous>, transform_indices = @transform_2, window_bounds = array<i64: 1, 256>}, {pipeline_mode = #tpu.pipeline_mode<synchronous>, transform_indices = @transform_3, window_bounds = array<i64: 256, 128>}, {pipeline_mode = #tpu.pipeline_mode<synchronous>, transform_indices = @transform_4, window_bounds = array<i64: 1, 128>}, {transform_indices = @transform_5, window_bounds = array<i64: 256, 128>}]} {
    %c0 = arith.constant 0 : index
    %c0_0 = arith.constant 0 : index
    %0 = vector.load %arg1[%c0, %c0_0] : memref<256x128xf32, #tpu.memory_space<vmem>>, vector<256x128xf32>
    %c0_1 = arith.constant 0 : index
    %c0_2 = arith.constant 0 : index
    %1 = vector.load %arg2[%c0_1, %c0_2] : memref<128x256xf32, #tpu.memory_space<vmem>>, vector<128x256xf32>
    %cst = arith.constant dense<0.000000e+00> : vector<256x256xf32>
    %2 = tpu.matmul %0, %1, %cst {dimension_numbers = #tpu.dot_dimension_numbers<[1], [0], [0], [1], [0, 0, 1, 1], [], []>} : vector<256x128xf32>, vector<128x256xf32>, vector<256x256xf32> -> vector<256x256xf32>
    %c0_3 = arith.constant 0 : index
    %c0_4 = arith.constant 0 : index
    %3 = vector.load %arg3[%c0_3, %c0_4] : memref<1x256xf32, #tpu.memory_space<vmem>>, vector<1x256xf32>
    %4 = vector.broadcast %3 : vector<1x256xf32> to vector<256x256xf32>
    %5 = arith.addf %2, %4 : vector<256x256xf32>
    %cst_5 = arith.constant 5.000000e-01 : f32
    %6 = vector.broadcast %cst_5 : f32 to vector<256x256xf32>
    %7 = arith.mulf %6, %5 : vector<256x256xf32>
    %cst_6 = arith.constant 0.707106769 : f32
    %8 = vector.broadcast %cst_6 : f32 to vector<256x256xf32>
    %9 = arith.mulf %5, %8 : vector<256x256xf32>
    %10 = math.erf %9 : vector<256x256xf32>
    %cst_7 = arith.constant 1.000000e+00 : f32
    %11 = vector.broadcast %cst_7 : f32 to vector<256x256xf32>
    %12 = arith.addf %11, %10 : vector<256x256xf32>
    %13 = arith.mulf %7, %12 : vector<256x256xf32>
    %c0_8 = arith.constant 0 : index
    %c0_9 = arith.constant 0 : index
    %14 = vector.load %arg4[%c0_8, %c0_9] : memref<256x128xf32, #tpu.memory_space<vmem>>, vector<256x128xf32>
    %cst_10 = arith.constant dense<0.000000e+00> : vector<256x128xf32>
    %15 = tpu.matmul %13, %14, %cst_10 {dimension_numbers = #tpu.dot_dimension_numbers<[1], [0], [0], [1], [0, 0, 1, 1], [], []>} : vector<256x256xf32>, vector<256x128xf32>, vector<256x128xf32> -> vector<256x128xf32>
    %c0_11 = arith.constant 0 : index
    %c0_12 = arith.constant 0 : index
    %16 = vector.load %arg5[%c0_11, %c0_12] : memref<1x128xf32, #tpu.memory_space<vmem>>, vector<1x128xf32>
    %17 = vector.broadcast %16 : vector<1x128xf32> to vector<256x128xf32>
    %18 = arith.addf %15, %17 : vector<256x128xf32>
    %c0_13 = arith.constant 0 : index
    %c0_14 = arith.constant 0 : index
    %19 = vector.load %arg6[%c0_13, %c0_14] : memref<256x128xf32, #tpu.memory_space<vmem>>, vector<256x128xf32>
    tpu.vector_store %arg6[%c0_13, %c0_14], %18 {strides = array<i32>} : memref<256x128xf32, #tpu.memory_space<vmem>>, vector<256x128xf32>,
    return
  }
  func.func @transform_0(%arg0: i32) -> (i32, i32) {
    %c0_i32 = arith.constant 0 : i32
    %c0_i32_0 = arith.constant 0 : i32
    return %arg0, %c0_i32 : i32, i32
  }
  func.func @transform_1(%arg0: i32) -> (i32, i32) {
    %c0_i32 = arith.constant 0 : i32
    %c0_i32_0 = arith.constant 0 : i32
    %c0_i32_1 = arith.constant 0 : i32
    return %c0_i32, %c0_i32_0 : i32, i32
  }
  func.func @transform_2(%arg0: i32) -> (i32, i32) {
    %c0_i32 = arith.constant 0 : i32
    %c0_i32_0 = arith.constant 0 : i32
    %c0_i32_1 = arith.constant 0 : i32
    return %c0_i32, %c0_i32_0 : i32, i32
  }
  func.func @transform_3(%arg0: i32) -> (i32, i32) {
    %c0_i32 = arith.constant 0 : i32
    %c0_i32_0 = arith.constant 0 : i32
    %c0_i32_1 = arith.constant 0 : i32
    return %c0_i32, %c0_i32_0 : i32, i32
  }
  func.func @transform_4(%arg0: i32) -> (i32, i32) {
    %c0_i32 = arith.constant 0 : i32
    %c0_i32_0 = arith.constant 0 : i32
    %c0_i32_1 = arith.constant 0 : i32
    return %c0_i32, %c0_i32_0 : i32, i32
  }
  func.func @transform_5(%arg0: i32) -> (i32, i32) {
    %c0_i32 = arith.constant 0 : i32
    %c0_i32_0 = arith.constant 0 : i32
    return %arg0, %c0_i32 : i32, i32
  }
}

module attributes {stable_mosaic.version = 11 : i64} {
  func.func @_mlp_resident_kernel(%arg0: i32, %arg1: memref<256x128xf32, #tpu.memory_space<vmem>>, %arg2: memref<128x256xf32, #tpu.memory_space<vmem>>, %arg3: memref<1x256xf32, #tpu.memory_space<vmem>>, %arg4: memref<256x128xf32, #tpu.memory_space<vmem>>, %arg5: memref<1x128xf32, #tpu.memory_space<vmem>>, %arg6: memref<256x128xf32, #tpu.memory_space<vmem>>) attributes {dimension_semantics = [#tpu.dimension_semantics<parallel>], iteration_bounds = array<i64: 1>, scalar_prefetch = 0 : i64, scratch_operands = 0 : i64, tpu.core_type = #tpu.core_type<tc>, window_params = [{transform_indices = @transform_0, window_bounds = array<i64: 256, 128>}, {pipeline_mode = #tpu.pipeline_mode<synchronous>, transform_indices = @transform_1, window_bounds = array<i64: 128, 256>}, {pipeline_mode = #tpu.pipeline_mode<synchronous>, transform_indices = @transform_2, window_bounds = array<i64: 1, 256>}, {pipeline_mode = #tpu.pipeline_mode<synchronous>, transform_indices = @transform_3, window_bounds = array<i64: 256, 128>}, {pipeline_mode = #tpu.pipeline_mode<synchronous>, transform_indices = @transform_4, window_bounds = array<i64: 1, 128>}, {transform_indices = @transform_5, window_bounds = array<i64: 256, 128>}]} {
    %c0 = arith.constant 0 : index
    %c0_0 = arith.constant 0 : index
    %0 = vector.load %arg1[%c0, %c0_0] : memref<256x128xf32, #tpu.memory_space<vmem>>, vector<256x128xf32>
    %c0_1 = arith.constant 0 : index
    %c0_2 = arith.constant 0 : index
    %1 = vector.load %arg2[%c0_1, %c0_2] : memref<128x256xf32, #tpu.memory_space<vmem>>, vector<128x256xf32>
    %cst = arith.constant dense<0.000000e+00> : vector<256x256xf32>
    %2 = tpu.matmul %0, %1, %cst {dimension_numbers = #tpu.dot_dimension_numbers<[1], [0], [0], [1], [0, 0, 1, 1], [], []>} : vector<256x128xf32>, vector<128x256xf32>, vector<256x256xf32> -> vector<256x256xf32>
    %c0_3 = arith.constant 0 : index
    %c0_4 = arith.constant 0 : index
    %3 = vector.load %arg3[%c0_3, %c0_4] : memref<1x256xf32, #tpu.memory_space<vmem>>, vector<1x256xf32>
    %4 = vector.broadcast %3 : vector<1x256xf32> to vector<256x256xf32>
    %5 = arith.addf %2, %4 : vector<256x256xf32>
    %cst_5 = arith.constant 5.000000e-01 : f32
    %6 = vector.broadcast %cst_5 : f32 to vector<256x256xf32>
    %7 = arith.mulf %6, %5 : vector<256x256xf32>
    %cst_6 = arith.constant 0.707106769 : f32
    %8 = vector.broadcast %cst_6 : f32 to vector<256x256xf32>
    %9 = arith.mulf %5, %8 : vector<256x256xf32>
    %10 = math.erf %9 : vector<256x256xf32>
    %cst_7 = arith.constant 1.000000e+00 : f32
    %11 = vector.broadcast %cst_7 : f32 to vector<256x256xf32>
    %12 = arith.addf %11, %10 : vector<256x256xf32>
    %13 = arith.mulf %7, %12 : vector<256x256xf32>
    %c0_8 = arith.constant 0 : index
    %c0_9 = arith.constant 0 : index
    %14 = vector.load %arg4[%c0_8, %c0_9] : memref<256x128xf32, #tpu.memory_space<vmem>>, vector<256x128xf32>
    %cst_10 = arith.constant dense<0.000000e+00> : vector<256x128xf32>
    %15 = tpu.matmul %13, %14, %cst_10 {dimension_numbers = #tpu.dot_dimension_numbers<[1], [0], [0], [1], [0, 0, 1, 1], [], []>} : vector<256x256xf32>, vector<256x128xf32>, vector<256x128xf32> -> vector<256x128xf32>
    %c0_11 = arith.constant 0 : index
    %c0_12 = arith.constant 0 : index
    %16 = vector.load %arg5[%c0_11, %c0_12] : memref<1x128xf32, #tpu.memory_space<vmem>>, vector<1x128xf32>
    %17 = vector.broadcast %16 : vector<1x128xf32> to vector<256x128xf32>
    %18 = arith.addf %15, %17 : vector<256x128xf32>
    %c0_13 = arith.constant 0 : index
    %c0_14 = arith.constant 0 : index
    %19 = vector.load %arg6[%c0_13, %c0_14] : memref<256x128xf32, #tpu.memory_space<vmem>>, vector<256x128xf32>
    tpu.vector_store %arg6[%c0_13, %c0_14], %18 {strides = array<i32>} : memref<256x128xf32, #tpu.memory_space<vmem>>, vector<256x128xf32>,
    return
  }
  func.func @transform_0(%arg0: i32) -> (i32, i32) {
    %c0_i32 = arith.constant 0 : i32
    %c0_i32_0 = arith.constant 0 : i32
    return %arg0, %c0_i32 : i32, i32
  }
  func.func @transform_1(%arg0: i32) -> (i32, i32) {
    %c0_i32 = arith.constant 0 : i32
    %c0_i32_0 = arith.constant 0 : i32
    %c0_i32_1 = arith.constant 0 : i32
    return %c0_i32, %c0_i32_0 : i32, i32
  }
  func.func @transform_2(%arg0: i32) -> (i32, i32) {
    %c0_i32 = arith.constant 0 : i32
    %c0_i32_0 = arith.constant 0 : i32
    %c0_i32_1 = arith.constant 0 : i32
    return %c0_i32, %c0_i32_0 : i32, i32
  }
  func.func @transform_3(%arg0: i32) -> (i32, i32) {
    %c0_i32 = arith.constant 0 : i32
    %c0_i32_0 = arith.constant 0 : i32
    %c0_i32_1 = arith.constant 0 : i32
    return %c0_i32, %c0_i32_0 : i32, i32
  }
  func.func @transform_4(%arg0: i32) -> (i32, i32) {
    %c0_i32 = arith.constant 0 : i32
    %c0_i32_0 = arith.constant 0 : i32
    %c0_i32_1 = arith.constant 0 : i32
    return %c0_i32, %c0_i32_0 : i32, i32
  }
  func.func @transform_5(%arg0: i32) -> (i32, i32) {
    %c0_i32 = arith.constant 0 : i32
    %c0_i32_0 = arith.constant 0 : i32
    return %arg0, %c0_i32 : i32, i32
  }
}

</mosaic_0001>

<bundles_post_ra>
// kernel: tpu_custom_call.1
= control target key start
LH: loop header
LB: loop body
LE: loop exit
PB: predicated region body
PF: predicated region fallthrough
CT: control target
= control target key end

     0   :  { %10 = vsyncpa [#allocation3], 0  ;;  %s1797_s0 = inlined_call_operand.hbm [shape: f32[256,128], index: 0, kind: input, shape index: {}]   ;;  %s1798_s1 = inlined_call_operand.hbm [shape: f32[128,256], index: 1, kind: input, shape index: {}]   ;;  %s1799_s2 = inlined_call_operand.vmem [shape: f32[1,256], index: 2, kind: input, shape index: {}]   ;;  %s1800_s3 = inlined_call_operand.hbm [shape: f32[256,128], index: 3, kind: input, shape index: {}]   ;;  %s1801_s4 = inlined_call_operand.vmem [shape: f32[1,128], index: 4, kind: input, shape index: {}]   ;;  %s1802_s5 = inlined_call_operand.hbm [shape: f32[256,128], index: 5, kind: output, shape index: {}]  }
   0x1   :  { %11 = vsyncpa [#allocation6], 0 }
   0x2   :  { %12 = vsyncpa [#allocation4], 0  ;;  %s1317_s18 = smov [#allocation5]  }
   0x3   :  { %s30_s19 = sshll.u32 %s1317_s18, 4  ;;  %s31_s19 = int_to_ptr.vmem [resolvable:$true] %s30_s19 }
   0x4   :  { %s1239_s20 = scalar_lea.vmem %s31_s19, 4096  ;;  %p1244_p1 = scmp.lt.s32.totalorder %s31_s19, %s31_s19 }
   0x5   :  { %p1240_p0 = scmp.ne.s32.totalorder %s31_s19, %s1239_s20  ;;  %p1245_p2 = scmp.lt.s32.totalorder %s1239_s20, %s1239_s20 }
   0x7   :  { %p1246_p3 = por %p1245_p2, %p1244_p1 }
   0x9   :  { %p1247_p4 = pnand %p1246_p3, %p1240_p0 }
   0xb   :  { %1250 = shalt.err (!%p1247_p4)
}
   0xc   :  { %s1318_s21 = smov 256   ;;  %s1319_s22 = smov 16  }
   0xd   :  { %36 = dma.hbm_to_vmem [thread:$0]  %s1798_s1, 4096, %s31_s19, [#allocation6], %s1318_s21, %s1318_s21, %s1319_s22  }
   0xe   :  { %s1320_s25 = smov [#allocation2]  }
   0xf   :  { %s18_s26 = sshll.u32 %s1320_s25, 4  ;;  %s19_s26 = int_to_ptr.vmem [resolvable:$true] %s18_s26 }
  0x10   :  { %s1259_s27 = scalar_lea.vmem %s19_s26, 4096  ;;  %p1264_p6 = scmp.lt.s32.totalorder %s19_s26, %s19_s26 }
  0x11   :  { %p1260_p5 = scmp.ne.s32.totalorder %s19_s26, %s1259_s27  ;;  %p1265_p7 = scmp.lt.s32.totalorder %s1259_s27, %s1259_s27 }
  0x13   :  { %p1266_p8 = por %p1265_p7, %p1264_p6 }
  0x15   :  { %p1267_p9 = pnand %p1266_p8, %p1260_p5 }
  0x17   :  { %1270 = shalt.err (!%p1267_p9)
}
  0x18   :  { %s1321_s28 = smov 128   ;;  %s1322_s29 = smov 8  }
  0x19   :  { %24 = dma.hbm_to_vmem [thread:$0]  %s1797_s0, 4096, %s19_s26, [#allocation3], %s1321_s28, %s1321_s28, %s1322_s29  }
  0x1a   :  { %s1323_s1 = smov [#allocation7]  }
  0x1b   :  { %s44_s7 = sshll.u32 %s1323_s1, 4  ;;  %s45_s7 = int_to_ptr.vmem [resolvable:$true] %s44_s7 }
  0x1c   :  { %s1279_s8 = scalar_lea.vmem %s45_s7, 4096  ;;  %p1284_p11 = scmp.lt.s32.totalorder %s45_s7, %s45_s7 }
  0x1d   :  { %p1280_p10 = scmp.ne.s32.totalorder %s45_s7, %s1279_s8  ;;  %p1285_p12 = scmp.lt.s32.totalorder %s1279_s8, %s1279_s8 }
  0x1f   :  { %p1286_p13 = por %p1285_p12, %p1284_p11 }
  0x21   :  { %p1287_p0 = pnand %p1286_p13, %p1280_p10 }
  0x23   :  { %1290 = shalt.err (!%p1287_p0)
}
  0x24   :  { %50 = dma.hbm_to_vmem [thread:$0]  %s1800_s3, 4096, %s45_s7, [#allocation6], %s1321_s28, %s1321_s28, %s1322_s29  }
  0x25   :  { %1311 = dma.done.wait [#allocation3], 4096  }
  0x26   :  { %1312 = vsyncadd [#allocation3], 4294963200 }
  0x27   :  { %1313 = dma.done.wait [#allocation6], 8192  }
  0x28   :  { %1314 = vsyncadd [#allocation6], 4294959104  ;;  %v1324_v0 = vmov 0.0   ;;  %v125_v1 = vld [vmem:[#allocation5 + $0xf8] sm:$0xff]  ;;  %v124_v2 = vld [vmem:[#allocation5 + $0xf0] sm:$0xff] }
  0x29   :  { %202 = vmatprep.mubr.f32.mxu0 %v1324_v0  ;;  %1030 = vmatprep.subr.mxu1 %v1324_v0  ;;  %v123_v3 = vld [vmem:[#allocation5 + $0xe8] sm:$0xff]  ;;  %v122_v4 = vld [vmem:[#allocation5 + $0xe0] sm:$0xff]  ;;  %v121_v5 = vld [vmem:[#allocation5 + $0xd8] sm:$0xff] }
  0x2a   :  { %138 = vmatprep.subr.mxu0 %v125_v1  ;;  %v120_v6 = vld [vmem:[#allocation5 + $0xd0] sm:$0xff]  ;;  %v119_v7 = vld [vmem:[#allocation5 + $0xc8] sm:$0xff]  ;;  %v118_v8 = vld [vmem:[#allocation5 + $0xc0] sm:$0xff] }
  0x2b   :  { %139 = vmatpush1.msra.mxu0 %v124_v2  ;;  %v117_v9 = vld [vmem:[#allocation5 + $0xb8] sm:$0xff]  ;;  %v116_v10 = vld [vmem:[#allocation5 + $0xb0] sm:$0xff]  ;;  %v115_v11 = vld [vmem:[#allocation5 + $0xa8] sm:$0xff] }
  0x2c   :  { %140 = vmatprep.subr.mxu0 %v123_v3  ;;  %v114_v12 = vld [vmem:[#allocation5 + $0xa0] sm:$0xff]  ;;  %v113_v13 = vld [vmem:[#allocation5 + $0x98] sm:$0xff]  ;;  %v112_v14 = vld [vmem:[#allocation5 + $0x90] sm:$0xff] }
  0x2d   :  { %141 = vmatpush1.msra.mxu0 %v122_v4  ;;  %v111_v15 = vld [vmem:[#allocation5 + $0x88] sm:$0xff]  ;;  %v110_v16 = vld [vmem:[#allocation5 + $0x80] sm:$0xff]  ;;  %v109_v17 = vld [vmem:[#allocation5 + $0x78] sm:$0xff] }
  0x2e   :  { %142 = vmatprep.subr.mxu0 %v121_v5  ;;  %v108_v18 = vld [vmem:[#allocation5 + $0x70] sm:$0xff]  ;;  %v107_v19 = vld [vmem:[#allocation5 + $0x68] sm:$0xff]  ;;  %v106_v20 = vld [vmem:[#allocation5 + $0x60] sm:$0xff] }
  0x2f   :  { %143 = vmatpush1.msra.mxu0 %v120_v6  ;;  %v105_v21 = vld [vmem:[#allocation5 + $0x58] sm:$0xff]  ;;  %v104_v22 = vld [vmem:[#allocation5 + $0x50] sm:$0xff]  ;;  %v103_v23 = vld [vmem:[#allocation5 + $0x48] sm:$0xff] }
  0x30   :  { %144 = vmatprep.subr.mxu0 %v119_v7  ;;  %v102_v24 = vld [vmem:[#allocation5 + $0x40] sm:$0xff]  ;;  %v101_v25 = vld [vmem:[#allocation5 + $0x38] sm:$0xff]  ;;  %v100_v26 = vld [vmem:[#allocation5 + $0x30] sm:$0xff] }
  0x31   :  { %145 = vmatpush1.msra.mxu0 %v118_v8  ;;  %v99_v27 = vld [vmem:[#allocation5 + $0x28] sm:$0xff]  ;;  %v98_v28 = vld [vmem:[#allocation5 + $0x20] sm:$0xff]  ;;  %v97_v29 = vld [vmem:[#allocation5 + $0x18] sm:$0xff] }
  0x32   :  { %146 = vmatprep.subr.mxu0 %v117_v9  ;;  %v96_v30 = vld [vmem:[#allocation5 + $0x10] sm:$0xff]  ;;  %v95_v31 = vld [vmem:[#allocation5 + $0x8] sm:$0xff]  ;;  %v94_v32 = vld [vmem:[#allocation5] sm:$0xff] }
  0x33   :  { %147 = vmatpush1.msra.mxu0 %v116_v10  ;;  %v730_v33 = vld [vmem:[#allocation7 + $0x78] sm:$0xff]  ;;  %v62_v34 = vld [vmem:[#allocation2] sm:$0xff]  ;;  %v729_v35 = vld [vmem:[#allocation7 + $0x70] sm:$0xff] }
  0x34   :  { %148 = vmatprep.subr.mxu0 %v115_v11  ;;  %1062 = vmatpush1.msra.mxu1 %v730_v33  ;;  %v63_v36 = vld [vmem:[#allocation2 + $0x8] sm:$0xff]  ;;  %v727_v38 = vld [vmem:[#allocation7 + $0x60] sm:$0xff]  ;;  %v64_v39 = vld [vmem:[#allocation2 + $0x10] sm:$0xff] }
  0x35   :  { %149 = vmatpush1.msra.mxu0 %v114_v12  ;;  %1031 = vmatprep.subr.mxu1 %v1324_v0  ;;  %v728_v37 = vld [vmem:[#allocation7 + $0x68] sm:$0xff]  ;;  %v726_v40 = vld [vmem:[#allocation7 + $0x58] sm:$0xff]  ;;  %v725_v41 = vld [vmem:[#allocation7 + $0x50] sm:$0xff] }
  0x36   :  { %150 = vmatprep.subr.mxu0 %v113_v13  ;;  %1063 = vmatpush1.msra.mxu1 %v729_v35  ;;  %v65_v42 = vld [vmem:[#allocation2 + $0x18] sm:$0xff]  ;;  %v724_v43 = vld [vmem:[#allocation7 + $0x48] sm:$0xff]  ;;  %v723_v44 = vld [vmem:[#allocation7 + $0x40] sm:$0xff] }
  0x37   :  { %151 = vmatpush1.msra.mxu0 %v112_v14  ;;  %1032 = vmatprep.subr.mxu1 %v1324_v0  ;;  %v66_v45 = vld [vmem:[#allocation2 + $0x20] sm:$0xff]  ;;  %v722_v46 = vld [vmem:[#allocation7 + $0x38] sm:$0xff]  ;;  %v721_v47 = vld [vmem:[#allocation7 + $0x30] sm:$0xff] }
  0x38   :  { %152 = vmatprep.subr.mxu0 %v111_v15  ;;  %1064 = vmatpush1.msra.mxu1 %v728_v37  ;;  %v67_v48 = vld [vmem:[#allocation2 + $0x28] sm:$0xff]  ;;  %v719_v50 = vld [vmem:[#allocation7 + $0x20] sm:$0xff]  ;;  %v68_v51 = vld [vmem:[#allocation2 + $0x30] sm:$0xff] }
  0x39   :  { %153 = vmatpush1.msra.mxu0 %v110_v16  ;;  %1033 = vmatprep.subr.mxu1 %v1324_v0  ;;  %v720_v49 = vld [vmem:[#allocation7 + $0x28] sm:$0xff]  ;;  %v718_v52 = vld [vmem:[#allocation7 + $0x18] sm:$0xff]  ;;  %v717_v53 = vld [vmem:[#allocation7 + $0x10] sm:$0xff] }
  0x3a   :  { %154 = vmatprep.subr.mxu0 %v109_v17  ;;  %1065 = vmatpush1.msra.mxu1 %v727_v38  ;;  %v69_v54 = vld [vmem:[#allocation2 + $0x38] sm:$0xff]  ;;  %v716_v55 = vld [vmem:[#allocation7 + $0x8] sm:$0xff]  ;;  %v715_v56 = vld [vmem:[#allocation7] sm:$0xff] }
  0x3b   :  { %155 = vmatpush1.msra.mxu0 %v108_v18  ;;  %1034 = vmatprep.subr.mxu1 %v1324_v0  ;;  %v70_v57 = vld [vmem:[#allocation2 + $0x40] sm:$0xff]  ;;  %v746_v58 = vld [vmem:[#allocation7 + $0xf8] sm:$0xff]  ;;  %v745_v59 = vld [vmem:[#allocation7 + $0xf0] sm:$0xff] }
  0x3c   :  { %156 = vmatprep.subr.mxu0 %v107_v19  ;;  %1066 = vmatpush1.msra.mxu1 %v726_v40  ;;  %v71_v60 = vld [vmem:[#allocation2 + $0x48] sm:$0xff]  ;;  %v72_v62 = vld [vmem:[#allocation2 + $0x50] sm:$0xff]  ;;  %v73_v63 = vld [vmem:[#allocation2 + $0x58] sm:$0xff] }
  0x3d   :  { %157 = vmatpush1.msra.mxu0 %v106_v20  ;;  %1035 = vmatprep.subr.mxu1 %v1324_v0  ;;  %v744_v61 = vld [vmem:[#allocation7 + $0xe8] sm:$0xff]  ;;  %v74_v1 = vld [vmem:[#allocation2 + $0x60] sm:$0xff]  ;;  %v76_v3 = vld [vmem:[#allocation2 + $0x70] sm:$0xff] }
  0x3e   :  { %158 = vmatprep.subr.mxu0 %v105_v21  ;;  %1067 = vmatpush1.msra.mxu1 %v725_v41  ;;  %v75_v2 = vld [vmem:[#allocation2 + $0x68] sm:$0xff]  ;;  %v77_v4 = vld [vmem:[#allocation2 + $0x78] sm:$0xff]  ;;  %v78_v5 = vld [vmem:[#allocation2 + $0x80] sm:$0xff] }
  0x3f   :  { %159 = vmatpush1.msra.mxu0 %v104_v22  ;;  %1036 = vmatprep.subr.mxu1 %v1324_v0  ;;  %v743_v6 = vld [vmem:[#allocation7 + $0xe0] sm:$0xff]  ;;  %v79_v7 = vld [vmem:[#allocation2 + $0x88] sm:$0xff]  ;;  %v742_v8 = vld [vmem:[#allocation7 + $0xd8] sm:$0xff] }
  0x40   :  { %160 = vmatprep.subr.mxu0 %v103_v23  ;;  %1068 = vmatpush1.msra.mxu1 %v724_v43  ;;  %v741_v9 = vld [vmem:[#allocation7 + $0xd0] sm:$0xff]  ;;  %v740_v11 = vld [vmem:[#allocation7 + $0xc8] sm:$0xff]  ;;  %v739_v12 = vld [vmem:[#allocation7 + $0xc0] sm:$0xff] }
  0x41   :  { %161 = vmatpush1.msra.mxu0 %v102_v24  ;;  %1037 = vmatprep.subr.mxu1 %v1324_v0  ;;  %v80_v10 = vld [vmem:[#allocation2 + $0x90] sm:$0xff]  ;;  %v81_v13 = vld [vmem:[#allocation2 + $0x98] sm:$0xff]  ;;  %v82_v16 = vld [vmem:[#allocation2 + $0xa0] sm:$0xff] }
  0x42   :  { %162 = vmatprep.subr.mxu0 %v101_v25  ;;  %1069 = vmatpush1.msra.mxu1 %v723_v44  ;;  %v738_v14 = vld [vmem:[#allocation7 + $0xb8] sm:$0xff]  ;;  %v737_v15 = vld [vmem:[#allocation7 + $0xb0] sm:$0xff]  ;;  %v736_v17 = vld [vmem:[#allocation7 + $0xa8] sm:$0xff] }
  0x43   :  { %163 = vmatpush1.msra.mxu0 %v100_v26  ;;  %1038 = vmatprep.subr.mxu1 %v1324_v0  ;;  %v735_v18 = vld [vmem:[#allocation7 + $0xa0] sm:$0xff]  ;;  %v83_v19 = vld [vmem:[#allocation2 + $0xa8] sm:$0xff]  ;;  %v734_v20 = vld [vmem:[#allocation7 + $0x98] sm:$0xff] }
  0x44   :  { %164 = vmatprep.subr.mxu0 %v99_v27  ;;  %1070 = vmatpush1.msra.mxu1 %v722_v46  ;;  %v84_v21 = vld [vmem:[#allocation2 + $0xb0] sm:$0xff]  ;;  %v732_v23 = vld [vmem:[#allocation7 + $0x88] sm:$0xff]  ;;  %v85_v24 = vld [vmem:[#allocation2 + $0xb8] sm:$0xff] }
  0x45   :  { %165 = vmatpush1.msra.mxu0 %v98_v28  ;;  %1039 = vmatprep.subr.mxu1 %v1324_v0  ;;  %v733_v22 = vld [vmem:[#allocation7 + $0x90] sm:$0xff]  ;;  %v731_v25 = vld [vmem:[#allocation7 + $0x80] sm:$0xff]  ;;  %v87_v27 = vld [vmem:[#allocation2 + $0xc8] sm:$0xff] }
  0x46   :  { %166 = vmatprep.subr.mxu0 %v97_v29  ;;  %1071 = vmatpush1.msra.mxu1 %v721_v47  ;;  %v86_v26 = vld [vmem:[#allocation2 + $0xc0] sm:$0xff]  ;;  %v88_v28 = vld [vmem:[#allocation2 + $0xd0] sm:$0xff]  ;;  %v89_v29 = vld [vmem:[#allocation2 + $0xd8] sm:$0xff] }
  0x47   :  { %167 = vmatpush1.msra.mxu0 %v96_v30  ;;  %1040 = vmatprep.subr.mxu1 %v1324_v0  ;;  %v90_v30 = vld [vmem:[#allocation2 + $0xe0] sm:$0xff] }
  0x48   :  { %168 = vmatprep.subr.mxu0 %v95_v31  ;;  %1072 = vmatpush1.msra.mxu1 %v720_v49  ;;  %v91_v31 = vld [vmem:[#allocation2 + $0xe8] sm:$0xff] }
  0x49   :  { %169 = vmatpush1.msra.mxu0 %v94_v32  ;;  %1041 = vmatprep.subr.mxu1 %v1324_v0  ;;  %v92_v32 = vld [vmem:[#allocation2 + $0xf0] sm:$0xff] }
  0x4a   :  { %203 = vmatmul.mubr.f32.vlgmr.msra.gmra.mxu0 %v62_v34  ;;  %754 = vmatprep.subr.mxu0 %v1324_v0  ;;  %v128_v34 = vlaneseq }
  0x4b   :  { %208 = vmatprep.mubr.f32.mxu0 %v1324_v0  ;;  %755 = vmatpush1.msra.mxu0 %v730_v33  ;;  %v93_v33 = vld [vmem:[#allocation2 + $0xf8] sm:$0xff] }
  0x4c   :  { %756 = vmatprep.subr.mxu0 %v1324_v0  ;;  %1073 = vmatpush1.msra.mxu1 %v719_v50 }
  0x4d   :  { %757 = vmatpush1.msra.mxu0 %v729_v35  ;;  %1042 = vmatprep.subr.mxu1 %v1324_v0  ;;  %v129_v35 = vshrl.u32 %v128_v34, 7 }
  0x4e   :  { %209 = vmatmul.mubr.f32.gmra.mxu0 %v63_v36  ;;  %758 = vmatprep.subr.mxu0 %v1324_v0 }
  0x4f   :  { %214 = vmatprep.mubr.f32.mxu0 %v1324_v0  ;;  %759 = vmatpush1.msra.mxu0 %v728_v37  ;;  %v130_v36 = vsub.s32 0, %v129_v35  ;;  %v126_v37 = vld [vmem:[%s1799_s2] sm:$0x3] }
  0x50   :  { %760 = vmatprep.subr.mxu0 %v1324_v0  ;;  %1074 = vmatpush1.msra.mxu1 %v718_v52 }
  0x51   :  { %761 = vmatpush1.msra.mxu0 %v727_v38  ;;  %1043 = vmatprep.subr.mxu1 %v1324_v0  ;;  %v134_v38 = vsub.s32 1, %v129_v35 }
  0x52   :  { %215 = vmatmul.mubr.f32.gmra.mxu0 %v64_v39  ;;  %762 = vmatprep.subr.mxu0 %v1324_v0  ;;  %v1470_v39 = vrot.slane %v126_v37, %v130_v36 }
  0x53   :  { %220 = vmatprep.mubr.f32.mxu0 %v1324_v0  ;;  %763 = vmatpush1.msra.mxu0 %v726_v40  ;;  %v1472_v40 = vrot.slane %v126_v37, %v134_v38 }
  0x54   :  { %764 = vmatprep.subr.mxu0 %v1324_v0  ;;  %1075 = vmatpush1.msra.mxu1 %v717_v53 }
  0x55   :  { %765 = vmatpush1.msra.mxu0 %v725_v41  ;;  %1044 = vmatprep.subr.mxu1 %v1324_v0 }
  0x56   :  { %221 = vmatmul.mubr.f32.gmra.mxu0 %v65_v42  ;;  %766 = vmatprep.subr.mxu0 %v1324_v0 }
  0x57   :  { %226 = vmatprep.mubr.f32.mxu0 %v1324_v0  ;;  %767 = vmatpush1.msra.mxu0 %v724_v43 }
  0x58   :  { %768 = vmatprep.subr.mxu0 %v1324_v0  ;;  %1076 = vmatpush1.msra.mxu1 %v716_v55 }
  0x59   :  { %769 = vmatpush1.msra.mxu0 %v723_v44  ;;  %1045 = vmatprep.subr.mxu1 %v1324_v0 }
  0x5a   :  { %227 = vmatmul.mubr.f32.gmra.mxu0 %v66_v45  ;;  %770 = vmatprep.subr.mxu0 %v1324_v0 }
  0x5b   :  { %232 = vmatprep.mubr.f32.mxu0 %v1324_v0  ;;  %771 = vmatpush1.msra.mxu0 %v722_v46 }
  0x5c   :  { %772 = vmatprep.subr.mxu0 %v1324_v0  ;;  %1077 = vmatpush1.msra.mxu1 %v715_v56 }
  0x5d   :  { %773 = vmatpush1.msra.mxu0 %v721_v47  ;;  %1046 = vmatprep.subr.mxu1 %v1324_v0 }
  0x5e   :  { %233 = vmatmul.mubr.f32.gmra.mxu0 %v67_v48  ;;  %774 = vmatprep.subr.mxu0 %v1324_v0 }
  0x5f   :  { %238 = vmatprep.mubr.f32.mxu0 %v1324_v0  ;;  %775 = vmatpush1.msra.mxu0 %v720_v49 }
  0x60   :  { %776 = vmatprep.subr.mxu0 %v1324_v0  ;;  %1078 = vmatpush2.msra.mxu1 %v746_v58 }
  0x61   :  { %777 = vmatpush1.msra.mxu0 %v719_v50  ;;  %1047 = vmatprep.subr.mxu1 %v1324_v0 }
  0x62   :  { %239 = vmatmul.mubr.f32.gmra.mxu0 %v68_v51  ;;  %778 = vmatprep.subr.mxu0 %v1324_v0 }
  0x63   :  { %244 = vmatprep.mubr.f32.mxu0 %v1324_v0  ;;  %779 = vmatpush1.msra.mxu0 %v718_v52 }
  0x64   :  { %780 = vmatprep.subr.mxu0 %v1324_v0  ;;  %1079 = vmatpush2.msra.mxu1 %v745_v59 }
  0x65   :  { %781 = vmatpush1.msra.mxu0 %v717_v53  ;;  %1048 = vmatprep.subr.mxu1 %v1324_v0 }
  0x66   :  { %245 = vmatmul.mubr.f32.gmra.mxu0 %v69_v54  ;;  %782 = vmatprep.subr.mxu0 %v1324_v0 }
  0x67   :  { %250 = vmatprep.mubr.f32.mxu0 %v1324_v0  ;;  %783 = vmatpush1.msra.mxu0 %v716_v55 }
  0x68   :  { %784 = vmatprep.subr.mxu0 %v1324_v0  ;;  %1080 = vmatpush2.msra.mxu1 %v744_v61 }
  0x69   :  { %785 = vmatpush1.msra.mxu0 %v715_v56  ;;  %1049 = vmatprep.subr.mxu1 %v1324_v0 }
  0x6a   :  { %251 = vmatmul.mubr.f32.gmra.mxu0 %v70_v57  ;;  %786 = vmatprep.subr.mxu0 %v1324_v0 }
  0x6b   :  { %256 = vmatprep.mubr.f32.mxu0 %v1324_v0  ;;  %787 = vmatpush2.msra.mxu0 %v746_v58 }
  0x6c   :  { %788 = vmatprep.subr.mxu0 %v1324_v0  ;;  %1081 = vmatpush2.msra.mxu1 %v743_v6 }
  0x6d   :  { %789 = vmatpush2.msra.mxu0 %v745_v59  ;;  %1050 = vmatprep.subr.mxu1 %v1324_v0 }
  0x6e   :  { %257 = vmatmul.mubr.f32.gmra.mxu0 %v71_v60  ;;  %790 = vmatprep.subr.mxu0 %v1324_v0 }
  0x6f   :  { %262 = vmatprep.mubr.f32.mxu0 %v1324_v0  ;;  %791 = vmatpush2.msra.mxu0 %v744_v61 }
  0x70   :  { %792 = vmatprep.subr.mxu0 %v1324_v0  ;;  %1082 = vmatpush2.msra.mxu1 %v742_v8 }
  0x71   :  { %793 = vmatpush2.msra.mxu0 %v743_v6  ;;  %1051 = vmatprep.subr.mxu1 %v1324_v0 }
  0x72   :  { %263 = vmatmul.mubr.f32.gmra.mxu0 %v72_v62  ;;  %794 = vmatprep.subr.mxu0 %v1324_v0 }
  0x73   :  { %268 = vmatprep.mubr.f32.mxu0 %v1324_v0  ;;  %795 = vmatpush2.msra.mxu0 %v742_v8 }
  0x74   :  { %796 = vmatprep.subr.mxu0 %v1324_v0  ;;  %1083 = vmatpush2.msra.mxu1 %v741_v9 }
  0x75   :  { %797 = vmatpush2.msra.mxu0 %v741_v9  ;;  %1052 = vmatprep.subr.mxu1 %v1324_v0 }
  0x76   :  { %269 = vmatmul.mubr.f32.gmra.mxu0 %v73_v63  ;;  %798 = vmatprep.subr.mxu0 %v1324_v0 }
  0x77   :  { %274 = vmatprep.mubr.f32.mxu0 %v1324_v0  ;;  %799 = vmatpush2.msra.mxu0 %v740_v11 }
  0x78   :  { %800 = vmatprep.subr.mxu0 %v1324_v0  ;;  %1084 = vmatpush2.msra.mxu1 %v740_v11 }
  0x79   :  { %801 = vmatpush2.msra.mxu0 %v739_v12  ;;  %1053 = vmatprep.subr.mxu1 %v1324_v0 }
  0x7a   :  { %275 = vmatmul.mubr.f32.gmra.mxu0 %v74_v1  ;;  %802 = vmatprep.subr.mxu0 %v1324_v0 }
  0x7b   :  { %280 = vmatprep.mubr.f32.mxu0 %v1324_v0  ;;  %803 = vmatpush2.msra.mxu0 %v738_v14 }
  0x7c   :  { %804 = vmatprep.subr.mxu0 %v1324_v0  ;;  %1085 = vmatpush2.msra.mxu1 %v739_v12 }
  0x7d   :  { %805 = vmatpush2.msra.mxu0 %v737_v15  ;;  %1054 = vmatprep.subr.mxu1 %v1324_v0 }
  0x7e   :  { %281 = vmatmul.mubr.f32.gmra.mxu0 %v75_v2  ;;  %806 = vmatprep.subr.mxu0 %v1324_v0 }
  0x7f   :  { %286 = vmatprep.mubr.f32.mxu0 %v1324_v0  ;;  %807 = vmatpush2.msra.mxu0 %v736_v17 }
  0x80   :  { %808 = vmatprep.subr.mxu0 %v1324_v0  ;;  %1086 = vmatpush2.msra.mxu1 %v738_v14 }
  0x81   :  { %809 = vmatpush2.msra.mxu0 %v735_v18  ;;  %1055 = vmatprep.subr.mxu1 %v1324_v0 }
  0x82   :  { %287 = vmatmul.mubr.f32.gmra.mxu0 %v76_v3  ;;  %810 = vmatprep.subr.mxu0 %v1324_v0 }
  0x83   :  { %292 = vmatprep.mubr.f32.mxu0 %v1324_v0  ;;  %811 = vmatpush2.msra.mxu0 %v734_v20 }
  0x84   :  { %812 = vmatprep.subr.mxu0 %v1324_v0  ;;  %1087 = vmatpush2.msra.mxu1 %v737_v15 }
  0x85   :  { %813 = vmatpush2.msra.mxu0 %v733_v22  ;;  %1056 = vmatprep.subr.mxu1 %v1324_v0 }
  0x86   :  { %293 = vmatmul.mubr.f32.gmra.mxu0 %v77_v4  ;;  %814 = vmatprep.subr.mxu0 %v1324_v0 }
  0x87   :  { %298 = vmatprep.mubr.f32.mxu0 %v1324_v0  ;;  %815 = vmatpush2.msra.mxu0 %v732_v23 }
  0x88   :  { %816 = vmatprep.subr.mxu0 %v1324_v0  ;;  %1088 = vmatpush2.msra.mxu1 %v736_v17 }
  0x89   :  { %817 = vmatpush2.msra.mxu0 %v731_v25  ;;  %1057 = vmatprep.subr.mxu1 %v1324_v0 }
  0x8a   :  { %299 = vmatmul.mubr.f32.gmra.mxu0 %v78_v5  ;;  %1089 = vmatpush2.msra.mxu1 %v735_v18 }
  0x8b   :  { %304 = vmatprep.mubr.f32.mxu0 %v1324_v0  ;;  %1058 = vmatprep.subr.mxu1 %v1324_v0 }
  0x8c   :  { %1090 = vmatpush2.msra.mxu1 %v734_v20 }
  0x8d   :  { %1059 = vmatprep.subr.mxu1 %v1324_v0 }
  0x8e   :  { %305 = vmatmul.mubr.f32.gmra.mxu0 %v79_v7  ;;  %1091 = vmatpush2.msra.mxu1 %v733_v22 }
  0x8f   :  { %310 = vmatprep.mubr.f32.mxu0 %v1324_v0  ;;  %1060 = vmatprep.subr.mxu1 %v1324_v0 }
  0x90   :  { %1092 = vmatpush2.msra.mxu1 %v732_v23 }
  0x91   :  { %1061 = vmatprep.subr.mxu1 %v1324_v0 }
  0x92   :  { %311 = vmatmul.mubr.f32.gmra.mxu0 %v80_v10  ;;  %1093 = vmatpush2.msra.mxu1 %v731_v25 }
  0x93   :  { %316 = vmatprep.mubr.f32.mxu0 %v1324_v0 }
  0x96   :  { %317 = vmatmul.mubr.f32.gmra.mxu0 %v81_v13 }
  0x97   :  { %322 = vmatprep.mubr.f32.mxu0 %v1324_v0 }
  0x9a   :  { %323 = vmatmul.mubr.f32.gmra.mxu0 %v82_v16 }
  0x9b   :  { %328 = vmatprep.mubr.f32.mxu0 %v1324_v0 }
  0x9e   :  { %329 = vmatmul.mubr.f32.gmra.mxu0 %v83_v19 }
  0x9f   :  { %334 = vmatprep.mubr.f32.mxu0 %v1324_v0 }
  0xa2   :  { %335 = vmatmul.mubr.f32.gmra.mxu0 %v84_v21 }
  0xa3   :  { %340 = vmatprep.mubr.f32.mxu0 %v1324_v0 }
  0xa6   :  { %341 = vmatmul.mubr.f32.gmra.mxu0 %v85_v24 }
  0xa7   :  { %346 = vmatprep.mubr.f32.mxu0 %v1324_v0 }
  0xaa   :  { %347 = vmatmul.mubr.f32.gmra.mxu0 %v86_v26 }
  0xab   :  { %352 = vmatprep.mubr.f32.mxu0 %v1324_v0 }
  0xae   :  { %353 = vmatmul.mubr.f32.gmra.mxu0 %v87_v27 }
  0xaf   :  { %358 = vmatprep.mubr.f32.mxu0 %v1324_v0 }
  0xb2   :  { %359 = vmatmul.mubr.f32.gmra.mxu0 %v88_v28 }
  0xb3   :  { %364 = vmatprep.mubr.f32.mxu0 %v1324_v0 }
  0xb6   :  { %365 = vmatmul.mubr.f32.gmra.mxu0 %v89_v29 }
  0xb7   :  { %370 = vmatprep.mubr.f32.mxu0 %v1324_v0 }
  0xba   :  { %371 = vmatmul.mubr.f32.gmra.mxu0 %v90_v30 }
  0xbb   :  { %376 = vmatprep.mubr.f32.mxu0 %v1324_v0 }
  0xbe   :  { %377 = vmatmul.mubr.f32.gmra.mxu0 %v91_v31 }
  0xbf   :  { %382 = vmatprep.mubr.f32.mxu0 %v1324_v0 }
  0xc2   :  { %383 = vmatmul.mubr.f32.gmra.mxu0 %v92_v32 }
  0xc3   :  { %388 = vmatprep.mubr.f32.mxu0 %v1324_v0 }
  0xc6   :  { %389 = vmatmul.mubr.f32.gmra.mxu0 %v93_v33 }
 0x10a   :  { %v204_v41 = vpop.f32.mrf.mxu0 }
 0x10b   :  { %v205_v42 = vadd.f32 %v204_v41, %v1470_v39 }
 0x10c   :  { %v206_v43 = vpop.f32.mrf.mxu0 }
 0x10d   :  { %v459_v44 = vmul.f32 0.70710677, %v205_v42  ;;  %v207_v0 = vadd.f32 %v206_v43, %v1472_v40  ;;  %v395_v14 = vmul.f32 0.5, %v205_v42 }
 0x10e   :  { %v210_v45 = vpop.f32.mrf.mxu0 }
 0x10f   :  { %1103 = verf.f32 %v459_v44  ;;  %v460_v46 = vmul.f32 0.70710677, %v207_v0  ;;  %v211_v47 = vadd.f32 %v210_v45, %v1470_v39  ;;  %v396_v10 = vmul.f32 0.5, %v207_v0 }
 0x110   :  { %v212_v48 = vpop.f32.mrf.mxu0 }
 0x111   :  { %1105 = verf.f32 %v460_v46  ;;  %v461_v49 = vmul.f32 0.70710677, %v211_v47  ;;  %v213_v50 = vadd.f32 %v212_v48, %v1472_v40  ;;  %v397_v30 = vmul.f32 0.5, %v211_v47 }
 0x112   :  { %v216_v51 = vpop.f32.mrf.mxu0 }
 0x113   :  { %1107 = verf.f32 %v461_v49  ;;  %v462_v52 = vmul.f32 0.70710677, %v213_v50  ;;  %v217_v53 = vadd.f32 %v216_v51, %v1470_v39  ;;  %v398_v27 = vmul.f32 0.5, %v213_v50 }
 0x114   :  { %v218_v54 = vpop.f32.mrf.mxu0 }
 0x115   :  { %1109 = verf.f32 %v462_v52  ;;  %v463_v55 = vmul.f32 0.70710677, %v217_v53  ;;  %v219_v56 = vadd.f32 %v218_v54, %v1472_v40  ;;  %v399_v43 = vmul.f32 0.5, %v217_v53 }
 0x116   :  { %v222_v57 = vpop.f32.mrf.mxu0 }
 0x117   :  { %1111 = verf.f32 %v463_v55  ;;  %v464_v58 = vmul.f32 0.70710677, %v219_v56  ;;  %v1481_v59 = vadd.f32 %v222_v57, %v1470_v39  ;;  %v400_v44 = vmul.f32 0.5, %v219_v56 }
 0x118   :  { %v224_v60 = vpop.f32.mrf.mxu0 }
 0x119   :  { %1113 = verf.f32 %v464_v58  ;;  %v465_v61 = vmul.f32 0.70710677, %v1481_v59  ;;  %v1485_v62 = vadd.f32 %v224_v60, %v1472_v40  ;;  %v401_v60 = vmul.f32 0.5, %v1481_v59 }
 0x11a   :  { %v228_v63 = vpop.f32.mrf.mxu0 }
 0x11b   :  { %1115 = verf.f32 %v465_v61  ;;  %v466_v1 = vmul.f32 0.70710677, %v1485_v62  ;;  %v1489_v2 = vadd.f32 %v228_v63, %v1470_v39  ;;  %v402_v56 = vmul.f32 0.5, %v1485_v62 }
 0x11c   :  { %v1104_v3 = vpop.eup %1103  ;;  %v230_v4 = vpop.f32.mrf.mxu0 }
 0x11d   :  { %1117 = verf.f32 %v466_v1  ;;  %v467_v5 = vmul.f32 0.70710677, %v1489_v2  ;;  %v587_v7 = vadd.f32 1.0, %v1104_v3  ;;  %v1493_v8 = vadd.f32 %v230_v4, %v1472_v40 }
 0x11e   :  { %v1106_v6 = vpop.eup %1105  ;;  %v234_v9 = vpop.f32.mrf.mxu0  ;;  %v403_v59 = vmul.f32 0.5, %v1489_v2 }
 0x11f   :  { %1119 = verf.f32 %v467_v5  ;;  %v1496_v11 = vadd.f32 %v234_v9, %v1470_v39  ;;  %v588_v12 = vadd.f32 1.0, %v1106_v6  ;;  %v468_v15 = vmul.f32 0.70710677, %v1493_v8 }
 0x120   :  { %v1108_v13 = vpop.eup %1107  ;;  %v236_v16 = vpop.f32.mrf.mxu0  ;;  %v651_v21 = vmul.f32 %v587_v7, %v395_v14 }
 0x121   :  { %v469_v17 = vmul.f32 0.70710677, %v1496_v11  ;;  %v1501_v18 = vadd.f32 %v236_v16, %v1472_v40  ;;  %v652_v19 = vmul.f32 %v588_v12, %v396_v10  ;;  %1121 = verf.f32 %v468_v15 }
 0x122   :  { %v1110_v20 = vpop.eup %1109  ;;  %v240_v22 = vpop.f32.mrf.mxu0  ;;  %v589_v25 = vadd.f32 1.0, %v1108_v13  ;;  %v404_v12 = vmul.f32 0.5, %v1493_v8 }
 0x123   :  { %1123 = verf.f32 %v469_v17  ;;  %v470_v23 = vmul.f32 0.70710677, %v1501_v18  ;;  %v1505_v24 = vadd.f32 %v240_v22, %v1470_v39  ;;  %818 = vmatprep.mubr.f32.mxu0 %v652_v19  ;;  %v590_v29 = vadd.f32 1.0, %v1110_v20 }
 0x124   :  { %v1112_v26 = vpop.eup %1111  ;;  %v242_v28 = vpop.f32.mrf.mxu0  ;;  %819 = vmatmul.mubr.f32.vlgmr.msra.gmra.mxu0 %v651_v21  ;;  %v653_v41 = vmul.f32 %v589_v25, %v397_v30 }
 0x125   :  { %1125 = verf.f32 %v470_v23  ;;  %v471_v31 = vmul.f32 0.70710677, %v1505_v24  ;;  %v1509_v32 = vadd.f32 %v242_v28, %v1472_v40  ;;  %v654_v35 = vmul.f32 %v590_v29, %v398_v27 }
 0x126   :  { %v1114_v33 = vpop.eup %1113  ;;  %v246_v34 = vpop.f32.mrf.mxu0  ;;  %v591_v36 = vadd.f32 1.0, %v1112_v26  ;;  %v406_v23 = vmul.f32 0.5, %v1501_v18  ;;  %v405_v27 = vmul.f32 0.5, %v1496_v11  ;;  %v407_v11 = vmul.f32 0.5, %v1505_v24 }
 0x127   :  { %1127 = verf.f32 %v471_v31  ;;  %v472_v37 = vmul.f32 0.70710677, %v1509_v32  ;;  %v1513_v38 = vadd.f32 %v246_v34, %v1470_v39  ;;  %823 = vmatprep.mubr.f32.mxu0 %v654_v35  ;;  %v592_v45 = vadd.f32 1.0, %v1114_v33 }
 0x128   :  { %v1116_v42 = vpop.eup %1115  ;;  %v248_v0 = vpop.f32.mrf.mxu0  ;;  %824 = vmatmul.mubr.f32.gmra.mxu0 %v653_v41  ;;  %v655_v51 = vmul.f32 %v591_v36, %v399_v43  ;;  %v408_v41 = vmul.f32 0.5, %v1509_v32 }
 0x129   :  { %1129 = verf.f32 %v472_v37  ;;  %v473_v46 = vmul.f32 0.70710677, %v1513_v38  ;;  %v1517_v47 = vadd.f32 %v248_v0, %v1472_v40  ;;  %v656_v50 = vmul.f32 %v592_v45, %v400_v44 }
 0x12a   :  { %v1118_v48 = vpop.eup %1117  ;;  %v252_v49 = vpop.f32.mrf.mxu0  ;;  %v593_v54 = vadd.f32 1.0, %v1116_v42 }
 0x12b   :  { %1131 = verf.f32 %v473_v46  ;;  %v474_v52 = vmul.f32 0.70710677, %v1517_v47  ;;  %v1521_v53 = vadd.f32 %v252_v49, %v1470_v39  ;;  %828 = vmatprep.mubr.f32.mxu0 %v656_v50  ;;  %v594_v58 = vadd.f32 1.0, %v1118_v48 }
 0x12c   :  { %v1120_v55 = vpop.eup %1119  ;;  %v254_v57 = vpop.f32.mrf.mxu0  ;;  %829 = vmatmul.mubr.f32.gmra.mxu0 %v655_v51  ;;  %v657_v7 = vmul.f32 %v593_v54, %v401_v60 }
 0x12d   :  { %1133 = verf.f32 %v474_v52  ;;  %v475_v61 = vmul.f32 0.70710677, %v1521_v53  ;;  %v1527_v63 = vadd.f32 %v254_v57, %v1472_v40  ;;  %v658_v3 = vmul.f32 %v594_v58, %v402_v56 }
 0x12e   :  { %v258_v1 = vpop.f32.mrf.mxu0  ;;  %v595_v4 = vadd.f32 1.0, %v1120_v55  ;;  %v1122_v5 = vpop.eup %1121  ;;  %v410_v52 = vmul.f32 0.5, %v1517_v47  ;;  %v409_v56 = vmul.f32 0.5, %v1513_v38  ;;  %v411_v38 = vmul.f32 0.5, %v1521_v53 }
 0x12f   :  { %1135 = verf.f32 %v475_v61  ;;  %v476_v6 = vmul.f32 0.70710677, %v1527_v63  ;;  %v1531_v62 = vadd.f32 %v258_v1, %v1470_v39  ;;  %833 = vmatprep.mubr.f32.mxu0 %v658_v3  ;;  %v596_v13 = vadd.f32 1.0, %v1122_v5 }
 0x130   :  { %v1124_v9 = vpop.eup %1123  ;;  %v260_v10 = vpop.f32.mrf.mxu0  ;;  %834 = vmatmul.mubr.f32.gmra.mxu0 %v657_v7  ;;  %v659_v20 = vmul.f32 %v595_v4, %v403_v59  ;;  %v412_v7 = vmul.f32 0.5, %v1527_v63 }
 0x131   :  { %1137 = verf.f32 %v476_v6  ;;  %v477_v14 = vmul.f32 0.70710677, %v1531_v62  ;;  %v1537_v15 = vadd.f32 %v260_v10, %v1472_v40  ;;  %v660_v19 = vmul.f32 %v596_v13, %v404_v12 }
 0x132   :  { %v1126_v16 = vpop.eup %1125  ;;  %v264_v17 = vpop.f32.mrf.mxu0  ;;  %v597_v22 = vadd.f32 1.0, %v1124_v9 }
 0x133   :  { %1139 = verf.f32 %v477_v14  ;;  %v478_v21 = vmul.f32 0.70710677, %v1537_v15  ;;  %v1541_v2 = vadd.f32 %v264_v17, %v1470_v39  ;;  %838 = vmatprep.mubr.f32.mxu1 %v660_v19  ;;  %v598_v26 = vadd.f32 1.0, %v1126_v16 }
 0x134   :  { %v1128_v8 = vpop.eup %1127  ;;  %v266_v25 = vpop.f32.mrf.mxu0  ;;  %839 = vmatmul.mubr.f32.vlgmr.msra.gmra.mxu1 %v659_v20  ;;  %v661_v36 = vmul.f32 %v597_v22, %v405_v27 }
 0x135   :  { %1141 = verf.f32 %v478_v21  ;;  %v479_v28 = vmul.f32 0.70710677, %v1541_v2  ;;  %v1547_v29 = vadd.f32 %v266_v25, %v1472_v40  ;;  %v662_v33 = vmul.f32 %v598_v26, %v406_v23 }
 0x136   :  { %v1130_v30 = vpop.eup %1129  ;;  %v270_v31 = vpop.f32.mrf.mxu0  ;;  %v599_v34 = vadd.f32 1.0, %v1128_v8  ;;  %v414_v21 = vmul.f32 0.5, %v1537_v15  ;;  %v413_v23 = vmul.f32 0.5, %v1531_v62  ;;  %v415_v62 = vmul.f32 0.5, %v1541_v2 }
 0x137   :  { %1143 = verf.f32 %v479_v28  ;;  %v480_v35 = vmul.f32 0.70710677, %v1547_v29  ;;  %v1551_v18 = vadd.f32 %v270_v31, %v1470_v39  ;;  %843 = vmatprep.mubr.f32.mxu1 %v662_v33  ;;  %v600_v43 = vadd.f32 1.0, %v1130_v30 }
 0x138   :  { %v1132_v37 = vpop.eup %1131  ;;  %v272_v42 = vpop.f32.mrf.mxu0  ;;  %844 = vmatmul.mubr.f32.gmra.mxu1 %v661_v36  ;;  %v663_v49 = vmul.f32 %v599_v34, %v407_v11  ;;  %v416_v36 = vmul.f32 0.5, %v1547_v29 }
 0x139   :  { %1145 = verf.f32 %v480_v35  ;;  %v481_v44 = vmul.f32 0.70710677, %v1551_v18  ;;  %v1557_v0 = vadd.f32 %v272_v42, %v1472_v40  ;;  %v664_v48 = vmul.f32 %v600_v43, %v408_v41 }
 0x13a   :  { %v1134_v45 = vpop.eup %1133  ;;  %v276_v46 = vpop.f32.mrf.mxu0  ;;  %v601_v32 = vadd.f32 1.0, %v1132_v37 }
 0x13b   :  { %1147 = verf.f32 %v481_v44  ;;  %v482_v50 = vmul.f32 0.70710677, %v1557_v0  ;;  %v1561_v24 = vadd.f32 %v276_v46, %v1470_v39  ;;  %848 = vmatprep.mubr.f32.mxu1 %v664_v48  ;;  %v602_v55 = vadd.f32 1.0, %v1134_v45 }
 0x13c   :  { %v1136_v51 = vpop.eup %1135  ;;  %v278_v54 = vpop.f32.mrf.mxu0  ;;  %849 = vmatmul.mubr.f32.gmra.mxu1 %v663_v49  ;;  %v665_v5 = vmul.f32 %v601_v32, %v409_v56 }
 0x13d   :  { %1149 = verf.f32 %v482_v50  ;;  %v483_v57 = vmul.f32 0.70710677, %v1561_v24  ;;  %v1567_v58 = vadd.f32 %v278_v54, %v1472_v40  ;;  %v666_v1 = vmul.f32 %v602_v55, %v410_v52 }
 0x13e   :  { %v1138_v60 = vpop.eup %1137  ;;  %v282_v61 = vpop.f32.mrf.mxu0  ;;  %v603_v3 = vadd.f32 1.0, %v1136_v51  ;;  %v418_v50 = vmul.f32 0.5, %v1557_v0  ;;  %v417_v52 = vmul.f32 0.5, %v1551_v18  ;;  %v419_v18 = vmul.f32 0.5, %v1561_v24 }
 0x13f   :  { %1151 = verf.f32 %v483_v57  ;;  %v484_v4 = vmul.f32 0.70710677, %v1567_v58  ;;  %v1571_v47 = vadd.f32 %v282_v61, %v1470_v39  ;;  %853 = vmatprep.mubr.f32.mxu1 %v666_v1  ;;  %v604_v59 = vadd.f32 1.0, %v1138_v60 }
 0x140   :  { %v1140_v6 = vpop.eup %1139  ;;  %v284_v9 = vpop.f32.mrf.mxu0  ;;  %854 = vmatmul.mubr.f32.gmra.mxu1 %v665_v5  ;;  %v667_v17 = vmul.f32 %v603_v3, %v411_v38  ;;  %v420_v5 = vmul.f32 0.5, %v1567_v58 }
 0x141   :  { %1153 = verf.f32 %v484_v4  ;;  %v485_v10 = vmul.f32 0.70710677, %v1571_v47  ;;  %v1577_v12 = vadd.f32 %v284_v9, %v1472_v40  ;;  %v668_v16 = vmul.f32 %v604_v59, %v412_v7 }
 0x142   :  { %v1142_v13 = vpop.eup %1141  ;;  %v288_v14 = vpop.f32.mrf.mxu0  ;;  %v605_v63 = vadd.f32 1.0, %v1140_v6 }
 0x143   :  { %1155 = verf.f32 %v485_v10  ;;  %v486_v19 = vmul.f32 0.70710677, %v1577_v12  ;;  %v1581_v53 = vadd.f32 %v288_v14, %v1470_v39  ;;  %858 = vmatprep.mubr.f32.mxu1 %v668_v16  ;;  %v606_v8 = vadd.f32 1.0, %v1142_v13 }
 0x144   :  { %v1144_v20 = vpop.eup %1143  ;;  %v290_v22 = vpop.f32.mrf.mxu0  ;;  %859 = vmatmul.mubr.f32.gmra.mxu1 %v667_v17  ;;  %v669_v34 = vmul.f32 %v605_v63, %v413_v23 }
 0x145   :  { %1157 = verf.f32 %v486_v19  ;;  %v487_v25 = vmul.f32 0.70710677, %v1581_v53  ;;  %v1587_v26 = vadd.f32 %v290_v22, %v1472_v40  ;;  %v670_v30 = vmul.f32 %v606_v8, %v414_v21 }
 0x146   :  { %v1146_v27 = vpop.eup %1145  ;;  %v294_v28 = vpop.f32.mrf.mxu0  ;;  %v607_v31 = vadd.f32 1.0, %v1144_v20  ;;  %v422_v19 = vmul.f32 0.5, %v1577_v12  ;;  %v421_v21 = vmul.f32 0.5, %v1571_v47  ;;  %v423_v47 = vmul.f32 0.5, %v1581_v53 }
 0x147   :  { %1159 = verf.f32 %v487_v25  ;;  %v488_v33 = vmul.f32 0.70710677, %v1587_v26  ;;  %v1591_v15 = vadd.f32 %v294_v28, %v1470_v39  ;;  %863 = vmatprep.mubr.f32.mxu1 %v670_v30  ;;  %v608_v11 = vadd.f32 1.0, %v1146_v27 }
 0x148   :  { %v1148_v35 = vpop.eup %1147  ;;  %v296_v37 = vpop.f32.mrf.mxu0  ;;  %864 = vmatmul.mubr.f32.gmra.mxu1 %v669_v34  ;;  %v671_v46 = vmul.f32 %v607_v31, %v415_v62  ;;  %v424_v34 = vmul.f32 0.5, %v1587_v26 }
 0x149   :  { %1161 = verf.f32 %v488_v33  ;;  %v489_v41 = vmul.f32 0.70710677, %v1591_v15  ;;  %v1597_v42 = vadd.f32 %v296_v37, %v1472_v40  ;;  %v672_v45 = vmul.f32 %v608_v11, %v416_v36 }
 0x14a   :  { %v1150_v43 = vpop.eup %1149  ;;  %v300_v44 = vpop.f32.mrf.mxu0  ;;  %v609_v29 = vadd.f32 1.0, %v1148_v35 }
 0x14b   :  { %1163 = verf.f32 %v489_v41  ;;  %v490_v48 = vmul.f32 0.70710677, %v1597_v42  ;;  %v1601_v2 = vadd.f32 %v300_v44, %v1470_v39  ;;  %868 = vmatprep.mubr.f32.mxu1 %v672_v45  ;;  %v610_v51 = vadd.f32 1.0, %v1150_v43 }
 0x14c   :  { %v1152_v49 = vpop.eup %1151  ;;  %v302_v32 = vpop.f32.mrf.mxu0  ;;  %869 = vmatmul.mubr.f32.gmra.mxu1 %v671_v46  ;;  %v673_v3 = vmul.f32 %v609_v29, %v417_v52 }
 0x14d   :  { %1165 = verf.f32 %v490_v48  ;;  %v491_v54 = vmul.f32 0.70710677, %v1601_v2  ;;  %v1607_v55 = vadd.f32 %v302_v32, %v1472_v40  ;;  %v674_v60 = vmul.f32 %v610_v51, %v418_v50 }
 0x14e   :  { %v1154_v56 = vpop.eup %1153  ;;  %v306_v57 = vpop.f32.mrf.mxu0  ;;  %v611_v61 = vadd.f32 1.0, %v1152_v49  ;;  %v426_v48 = vmul.f32 0.5, %v1597_v42  ;;  %v425_v50 = vmul.f32 0.5, %v1591_v15  ;;  %v427_v15 = vmul.f32 0.5, %v1601_v2 }
 0x14f   :  { %1167 = verf.f32 %v491_v54  ;;  %v492_v1 = vmul.f32 0.70710677, %v1607_v55  ;;  %v1611_v0 = vadd.f32 %v306_v57, %v1470_v39  ;;  %873 = vmatprep.mubr.f32.mxu1 %v674_v60  ;;  %v612_v38 = vadd.f32 1.0, %v1154_v56 }
 0x150   :  { %v1156_v4 = vpop.eup %1155  ;;  %v308_v6 = vpop.f32.mrf.mxu0  ;;  %874 = vmatmul.mubr.f32.gmra.mxu1 %v673_v3  ;;  %v675_v14 = vmul.f32 %v611_v61, %v419_v18  ;;  %v428_v3 = vmul.f32 0.5, %v1607_v55 }
 0x151   :  { %1169 = verf.f32 %v492_v1  ;;  %v493_v7 = vmul.f32 0.70710677, %v1611_v0  ;;  %v1617_v9 = vadd.f32 %v308_v6, %v1472_v40  ;;  %v676_v13 = vmul.f32 %v612_v38, %v420_v5 }
 0x152   :  { %v1158_v59 = vpop.eup %1157  ;;  %v312_v10 = vpop.f32.mrf.mxu0  ;;  %v613_v58 = vadd.f32 1.0, %v1156_v4 }
 0x153   :  { %1171 = verf.f32 %v493_v7  ;;  %v494_v16 = vmul.f32 0.70710677, %v1617_v9  ;;  %v1621_v24 = vadd.f32 %v312_v10, %v1470_v39  ;;  %878 = vmatprep.mubr.f32.mxu1 %v676_v13  ;;  %v614_v20 = vadd.f32 1.0, %v1158_v59 }
 0x154   :  { %v1160_v17 = vpop.eup %1159  ;;  %v314_v63 = vpop.f32.mrf.mxu0  ;;  %879 = vmatmul.mubr.f32.gmra.mxu1 %v675_v14  ;;  %v677_v31 = vmul.f32 %v613_v58, %v421_v21 }
 0x155   :  { %1173 = verf.f32 %v494_v16  ;;  %v495_v22 = vmul.f32 0.70710677, %v1621_v24  ;;  %v1627_v8 = vadd.f32 %v314_v63, %v1472_v40  ;;  %v678_v27 = vmul.f32 %v614_v20, %v422_v19 }
 0x156   :  { %v1162_v23 = vpop.eup %1161  ;;  %v318_v25 = vpop.f32.mrf.mxu0  ;;  %v615_v28 = vadd.f32 1.0, %v1160_v17  ;;  %v430_v16 = vmul.f32 0.5, %v1617_v9  ;;  %v429_v19 = vmul.f32 0.5, %v1611_v0  ;;  %v431_v0 = vmul.f32 0.5, %v1621_v24 }
 0x157   :  { %1175 = verf.f32 %v495_v22  ;;  %v496_v30 = vmul.f32 0.70710677, %v1627_v8  ;;  %v1631_v12 = vadd.f32 %v318_v25, %v1470_v39  ;;  %883 = vmatprep.mubr.f32.mxu1 %v678_v27  ;;  %v616_v62 = vadd.f32 1.0, %v1162_v23 }
 0x158   :  { %v1164_v33 = vpop.eup %1163  ;;  %v320_v35 = vpop.f32.mrf.mxu0  ;;  %884 = vmatmul.mubr.f32.gmra.mxu1 %v677_v31  ;;  %v679_v44 = vmul.f32 %v615_v28, %v423_v47  ;;  %v432_v31 = vmul.f32 0.5, %v1627_v8 }
 0x159   :  { %1177 = verf.f32 %v496_v30  ;;  %v497_v36 = vmul.f32 0.70710677, %v1631_v12  ;;  %v1637_v37 = vadd.f32 %v320_v35, %v1472_v40  ;;  %v680_v43 = vmul.f32 %v616_v62, %v424_v34 }
 0x15a   :  { %v1166_v11 = vpop.eup %1165  ;;  %v324_v41 = vpop.f32.mrf.mxu0  ;;  %v617_v26 = vadd.f32 1.0, %v1164_v33 }
 0x15b   :  { %1179 = verf.f32 %v497_v36  ;;  %v498_v45 = vmul.f32 0.70710677, %v1637_v37  ;;  %v1641_v53 = vadd.f32 %v324_v41, %v1470_v39  ;;  %888 = vmatprep.mubr.f32.mxu1 %v680_v43  ;;  %v618_v49 = vadd.f32 1.0, %v1166_v11 }
 0x15c   :  { %v1168_v46 = vpop.eup %1167  ;;  %v326_v29 = vpop.f32.mrf.mxu0  ;;  %889 = vmatmul.mubr.f32.gmra.mxu1 %v679_v44  ;;  %v681_v61 = vmul.f32 %v617_v26, %v425_v50 }
 0x15d   :  { %1181 = verf.f32 %v498_v45  ;;  %v499_v32 = vmul.f32 0.70710677, %v1641_v53  ;;  %v1647_v51 = vadd.f32 %v326_v29, %v1472_v40  ;;  %v682_v56 = vmul.f32 %v618_v49, %v426_v48 }
 0x15e   :  { %v1170_v52 = vpop.eup %1169  ;;  %v330_v54 = vpop.f32.mrf.mxu0  ;;  %v619_v57 = vadd.f32 1.0, %v1168_v46  ;;  %v434_v45 = vmul.f32 0.5, %v1637_v37  ;;  %v433_v48 = vmul.f32 0.5, %v1631_v12  ;;  %v435_v12 = vmul.f32 0.5, %v1641_v53 }
 0x15f   :  { %1183 = verf.f32 %v499_v32  ;;  %v500_v60 = vmul.f32 0.70710677, %v1647_v51  ;;  %v1651_v42 = vadd.f32 %v330_v54, %v1470_v39  ;;  %893 = vmatprep.mubr.f32.mxu1 %v682_v56  ;;  %v620_v18 = vadd.f32 1.0, %v1170_v52 }
 0x160   :  { %v1172_v1 = vpop.eup %1171  ;;  %v332_v4 = vpop.f32.mrf.mxu0  ;;  %894 = vmatmul.mubr.f32.gmra.mxu1 %v681_v61  ;;  %v683_v10 = vmul.f32 %v619_v57, %v427_v15  ;;  %v436_v61 = vmul.f32 0.5, %v1647_v51 }
 0x161   :  { %1185 = verf.f32 %v500_v60  ;;  %v501_v5 = vmul.f32 0.70710677, %v1651_v42  ;;  %v1657_v6 = vadd.f32 %v332_v4, %v1472_v40  ;;  %v684_v59 = vmul.f32 %v620_v18, %v428_v3 }
 0x162   :  { %v1174_v38 = vpop.eup %1173  ;;  %v336_v7 = vpop.f32.mrf.mxu0  ;;  %v621_v55 = vadd.f32 1.0, %v1172_v1 }
 0x163   :  { %1187 = verf.f32 %v501_v5  ;;  %v502_v13 = vmul.f32 0.70710677, %v1657_v6  ;;  %v1661_v2 = vadd.f32 %v336_v7, %v1470_v39  ;;  %898 = vmatprep.mubr.f32.mxu1 %v684_v59  ;;  %v622_v17 = vadd.f32 1.0, %v1174_v38 }
 0x164   :  { %v1176_v14 = vpop.eup %1175  ;;  %v338_v58 = vpop.f32.mrf.mxu0  ;;  %899 = vmatmul.mubr.f32.gmra.mxu1 %v683_v10  ;;  %v685_v28 = vmul.f32 %v621_v55, %v429_v19 }
 0x165   :  { %1189 = verf.f32 %v502_v13  ;;  %v503_v63 = vmul.f32 0.70710677, %v1661_v2  ;;  %v1667_v20 = vadd.f32 %v338_v58, %v1472_v40  ;;  %v686_v23 = vmul.f32 %v622_v17, %v430_v16 }
 0x166   :  { %v1178_v21 = vpop.eup %1177  ;;  %v342_v22 = vpop.f32.mrf.mxu0  ;;  %v623_v25 = vadd.f32 1.0, %v1176_v14  ;;  %v438_v13 = vmul.f32 0.5, %v1657_v6  ;;  %v437_v16 = vmul.f32 0.5, %v1651_v42  ;;  %v439_v42 = vmul.f32 0.5, %v1661_v2 }
 0x167   :  { %1191 = verf.f32 %v503_v63  ;;  %v504_v27 = vmul.f32 0.70710677, %v1667_v20  ;;  %v1671_v9 = vadd.f32 %v342_v22, %v1470_v39  ;;  %903 = vmatprep.mubr.f32.mxu1 %v686_v23  ;;  %v624_v47 = vadd.f32 1.0, %v1178_v21 }
 0x168   :  { %v1180_v30 = vpop.eup %1179  ;;  %v344_v33 = vpop.f32.mrf.mxu0  ;;  %904 = vmatmul.mubr.f32.gmra.mxu1 %v685_v28  ;;  %v687_v41 = vmul.f32 %v623_v25, %v431_v0  ;;  %v440_v28 = vmul.f32 0.5, %v1667_v20 }
 0x169   :  { %1193 = verf.f32 %v504_v27  ;;  %v505_v34 = vmul.f32 0.70710677, %v1671_v9  ;;  %v1677_v35 = vadd.f32 %v344_v33, %v1472_v40  ;;  %v688_v11 = vmul.f32 %v624_v47, %v432_v31 }
 0x16a   :  { %v1182_v62 = vpop.eup %1181  ;;  %v348_v36 = vpop.f32.mrf.mxu0  ;;  %v625_v8 = vadd.f32 1.0, %v1180_v30 }
 0x16b   :  { %1195 = verf.f32 %v505_v34  ;;  %v506_v43 = vmul.f32 0.70710677, %v1677_v35  ;;  %v1681_v24 = vadd.f32 %v348_v36, %v1470_v39  ;;  %908 = vmatprep.mubr.f32.mxu1 %v688_v11  ;;  %v626_v46 = vadd.f32 1.0, %v1182_v62 }
 0x16c   :  { %v1184_v44 = vpop.eup %1183  ;;  %v350_v26 = vpop.f32.mrf.mxu0  ;;  %909 = vmatmul.mubr.f32.gmra.mxu1 %v687_v41  ;;  %v689_v57 = vmul.f32 %v625_v8, %v433_v48 }
 0x16d   :  { %1197 = verf.f32 %v506_v43  ;;  %v507_v29 = vmul.f32 0.70710677, %v1681_v24  ;;  %v1687_v49 = vadd.f32 %v350_v26, %v1472_v40  ;;  %v690_v52 = vmul.f32 %v626_v46, %v434_v45 }
 0x16e   :  { %v1186_v50 = vpop.eup %1185  ;;  %v354_v32 = vpop.f32.mrf.mxu0  ;;  %v627_v54 = vadd.f32 1.0, %v1184_v44  ;;  %v442_v43 = vmul.f32 0.5, %v1677_v35  ;;  %v441_v45 = vmul.f32 0.5, %v1671_v9  ;;  %v443_v9 = vmul.f32 0.5, %v1681_v24 }
 0x16f   :  { %1199 = verf.f32 %v507_v29  ;;  %v508_v56 = vmul.f32 0.70710677, %v1687_v49  ;;  %v1691_v37 = vadd.f32 %v354_v32, %v1470_v39  ;;  %913 = vmatprep.mubr.f32.mxu1 %v690_v52  ;;  %v628_v15 = vadd.f32 1.0, %v1186_v50 }
 0x170   :  { %v1188_v60 = vpop.eup %1187  ;;  %v356_v1 = vpop.f32.mrf.mxu0  ;;  %914 = vmatmul.mubr.f32.gmra.mxu1 %v689_v57  ;;  %v691_v7 = vmul.f32 %v627_v54, %v435_v12  ;;  %v444_v57 = vmul.f32 0.5, %v1687_v49 }
 0x171   :  { %1201 = verf.f32 %v508_v56  ;;  %v509_v3 = vmul.f32 0.70710677, %v1691_v37  ;;  %v1697_v4 = vadd.f32 %v356_v1, %v1472_v40  ;;  %v692_v38 = vmul.f32 %v628_v15, %v436_v61 }
 0x172   :  { %v1190_v18 = vpop.eup %1189  ;;  %v360_v5 = vpop.f32.mrf.mxu0  ;;  %v629_v51 = vadd.f32 1.0, %v1188_v60 }
 0x173   :  { %1203 = verf.f32 %v509_v3  ;;  %v510_v59 = vmul.f32 0.70710677, %v1697_v4  ;;  %v1701_v53 = vadd.f32 %v360_v5, %v1470_v39  ;;  %918 = vmatprep.mubr.f32.mxu1 %v692_v38  ;;  %v630_v14 = vadd.f32 1.0, %v1190_v18 }
 0x174   :  { %v1192_v10 = vpop.eup %1191  ;;  %v362_v55 = vpop.f32.mrf.mxu0  ;;  %919 = vmatmul.mubr.f32.gmra.mxu1 %v691_v7  ;;  %v693_v25 = vmul.f32 %v629_v51, %v437_v16 }
 0x175   :  { %1205 = verf.f32 %v510_v59  ;;  %v511_v58 = vmul.f32 0.70710677, %v1701_v53  ;;  %v1707_v17 = vadd.f32 %v362_v55, %v1472_v40  ;;  %v694_v21 = vmul.f32 %v630_v14, %v438_v13 }
 0x176   :  { %v1194_v19 = vpop.eup %1193  ;;  %v366_v63 = vpop.f32.mrf.mxu0  ;;  %v631_v22 = vadd.f32 1.0, %v1192_v10  ;;  %v446_v59 = vmul.f32 0.5, %v1697_v4  ;;  %v445_v13 = vmul.f32 0.5, %v1691_v37 }
 0x177   :  { %1207 = verf.f32 %v511_v58  ;;  %v512_v23 = vmul.f32 0.70710677, %v1707_v17  ;;  %v1711_v6 = vadd.f32 %v366_v63, %v1470_v39  ;;  %923 = vmatprep.mubr.f32.mxu1 %v694_v21  ;;  %v632_v0 = vadd.f32 1.0, %v1194_v19 }
 0x178   :  { %v1196_v27 = vpop.eup %1195  ;;  %v368_v30 = vpop.f32.mrf.mxu0  ;;  %924 = vmatmul.mubr.f32.gmra.mxu1 %v693_v25  ;;  %v695_v36 = vmul.f32 %v631_v22, %v439_v42  ;;  %v447_v25 = vmul.f32 0.5, %v1701_v53  ;;  %v448_v37 = vmul.f32 0.5, %v1707_v17 }
 0x179   :  { %1209 = verf.f32 %v512_v23  ;;  %v513_v31 = vmul.f32 0.70710677, %v1711_v6  ;;  %v1717_v33 = vadd.f32 %v368_v30, %v1472_v40  ;;  %v696_v62 = vmul.f32 %v632_v0, %v440_v28 }
 0x17a   :  { %v1198_v47 = vpop.eup %1197  ;;  %v372_v34 = vpop.f32.mrf.mxu0  ;;  %v633_v20 = vadd.f32 1.0, %v1196_v27  ;;  %v449_v17 = vmul.f32 0.5, %v1711_v6 }
 0x17b   :  { %1211 = verf.f32 %v513_v31  ;;  %v514_v11 = vmul.f32 0.70710677, %v1717_v33  ;;  %v1721_v2 = vadd.f32 %v372_v34, %v1470_v39  ;;  %928 = vmatprep.mubr.f32.mxu1 %v696_v62  ;;  %v634_v44 = vadd.f32 1.0, %v1198_v47 }
 0x17c   :  { %v1200_v41 = vpop.eup %1199  ;;  %v374_v8 = vpop.f32.mrf.mxu0  ;;  %929 = vmatmul.mubr.f32.gmra.mxu1 %v695_v36  ;;  %v697_v54 = vmul.f32 %v633_v20, %v441_v45  ;;  %v450_v31 = vmul.f32 0.5, %v1717_v33 }
 0x17d   :  { %1213 = verf.f32 %v514_v11  ;;  %v515_v26 = vmul.f32 0.70710677, %v1721_v2  ;;  %v1727_v46 = vadd.f32 %v374_v8, %v1472_v40  ;;  %v698_v50 = vmul.f32 %v634_v44, %v442_v43 }
 0x17e   :  { %v1202_v48 = vpop.eup %1201  ;;  %v378_v29 = vpop.f32.mrf.mxu0  ;;  %v635_v32 = vadd.f32 1.0, %v1200_v41  ;;  %v451_v44 = vmul.f32 0.5, %v1721_v2 }
 0x17f   :  { %1215 = verf.f32 %v515_v26  ;;  %v516_v52 = vmul.f32 0.70710677, %v1727_v46  ;;  %v1731_v35 = vadd.f32 %v378_v29, %v1470_v39  ;;  %933 = vmatprep.mubr.f32.mxu1 %v698_v50  ;;  %v636_v12 = vadd.f32 1.0, %v1202_v48 }
 0x180   :  { %v1204_v56 = vpop.eup %1203  ;;  %v380_v60 = vpop.f32.mrf.mxu0  ;;  %934 = vmatmul.mubr.f32.gmra.mxu1 %v697_v54  ;;  %v699_v5 = vmul.f32 %v635_v32, %v443_v9 }
 0x181   :  { %1217 = verf.f32 %v516_v52  ;;  %v517_v61 = vmul.f32 0.70710677, %v1731_v35  ;;  %v381_v1 = vadd.f32 %v380_v60, %v1472_v40  ;;  %v700_v18 = vmul.f32 %v636_v12, %v444_v57 }
 0x182   :  { %v1206_v15 = vpop.eup %1205  ;;  %v384_v3 = vpop.f32.mrf.mxu0  ;;  %v637_v24 = vadd.f32 1.0, %v1204_v56  ;;  %v453_v52 = vmul.f32 0.5, %v1731_v35 }
 0x183   :  { %1219 = verf.f32 %v517_v61  ;;  %v518_v38 = vmul.f32 0.70710677, %v381_v1  ;;  %v1738_v7 = vadd.f32 %v384_v3, %v1470_v39  ;;  %938 = vmatprep.mubr.f32.mxu1 %v700_v18  ;;  %v638_v10 = vadd.f32 1.0, %v1206_v15 }
 0x184   :  { %v1208_v49 = vpop.eup %1207  ;;  %v386_v51 = vpop.f32.mrf.mxu0  ;;  %939 = vmatmul.mubr.f32.gmra.mxu1 %v699_v5  ;;  %v701_v4 = vmul.f32 %v637_v24, %v445_v13  ;;  %v454_v48 = vmul.f32 0.5, %v381_v1 }
 0x185   :  { %1221 = verf.f32 %v518_v38  ;;  %v519_v55 = vmul.f32 0.70710677, %v1738_v7  ;;  %v387_v14 = vadd.f32 %v386_v51, %v1472_v40  ;;  %v702_v19 = vmul.f32 %v638_v10, %v446_v59 }
 0x186   :  { %v1210_v16 = vpop.eup %1209  ;;  %v390_v58 = vpop.f32.mrf.mxu0  ;;  %v639_v63 = vadd.f32 1.0, %v1208_v49  ;;  %v455_v12 = vmul.f32 0.5, %v1738_v7  ;;  %v1757_v49 = vld [vmem:[%s1801_s4] ss:$0 sm:$0xff]  ;;  %s1325_s4 = smov [#allocation8]  }
 0x187   :  { %1223 = verf.f32 %v519_v55  ;;  %v520_v21 = vmul.f32 0.70710677, %v387_v14  ;;  %v391_v22 = vadd.f32 %v390_v58, %v1470_v39  ;;  %943 = vmatprep.mubr.f32.mxu1 %v702_v19  ;;  %v640_v42 = vadd.f32 1.0, %v1210_v16  ;;  %s1016_s12 = sshll.u32 %s1325_s4, 4  ;;  %s1017_s12 = int_to_ptr.vmem [resolvable:$true] %s1016_s12 }
 0x188   :  { %v1212_v23 = vpop.eup %1211  ;;  %v392_v27 = vpop.f32.mrf.mxu0  ;;  %944 = vmatmul.mubr.f32.gmra.mxu1 %v701_v4  ;;  %v703_v34 = vmul.f32 %v639_v63, %v447_v25  ;;  %v456_v56 = vmul.f32 0.5, %v387_v14  ;;  %s1291_s13 = scalar_lea.vmem %s1017_s12, 4096  ;;  %p1296_p2 = scmp.lt.s32.totalorder %s1017_s12, %s1017_s12 }
 0x189   :  { %1225 = verf.f32 %v520_v21  ;;  %v521_v28 = vmul.f32 0.70710677, %v391_v22  ;;  %v393_v30 = vadd.f32 %v392_v27, %v1472_v40  ;;  %v704_v47 = vmul.f32 %v640_v42, %v448_v37  ;;  %p1292_p1 = scmp.ne.s32.totalorder %s1017_s12, %s1291_s13  ;;  %p1297_p3 = scmp.lt.s32.totalorder %s1291_s13, %s1291_s13 }
 0x18a   :  { %v1214_v0 = vpop.eup %1213  ;;  %v641_v36 = vadd.f32 1.0, %v1212_v23  ;;  %v452_v40 = vmul.f32 0.5, %v1727_v46  ;;  %v457_v35 = vmul.f32 0.5, %v391_v22 }
 0x18b   :  { %1227 = verf.f32 %v521_v28  ;;  %v522_v39 = vmul.f32 0.70710677, %v393_v30  ;;  %v642_v62 = vadd.f32 1.0, %v1214_v0  ;;  %948 = vmatprep.mubr.f32.mxu1 %v704_v47  ;;  %v458_v15 = vmul.f32 0.5, %v393_v30  ;;  %p1298_p4 = por %p1297_p3, %p1296_p2 }
 0x18c   :  { %v1216_v53 = vpop.eup %1215  ;;  %949 = vmatmul.mubr.f32.gmra.mxu1 %v703_v34  ;;  %v705_v41 = vmul.f32 %v641_v36, %v449_v17 }
 0x18d   :  { %1229 = verf.f32 %v522_v39  ;;  %v706_v11 = vmul.f32 %v642_v62, %v450_v31  ;;  %v643_v33 = vadd.f32 1.0, %v1216_v53  ;;  %p1299_p5 = pnand %p1298_p4, %p1292_p1 }
 0x18e   :  { %v1218_v20 = vpop.eup %1217 }
 0x18f   :  { %953 = vmatprep.mubr.f32.mxu1 %v706_v11  ;;  %v644_v43 = vadd.f32 1.0, %v1218_v20  ;;  %v707_v29 = vmul.f32 %v643_v33, %v451_v44 }
 0x190   :  { %v1220_v8 = vpop.eup %1219  ;;  %954 = vmatmul.mubr.f32.gmra.mxu1 %v705_v41 }
 0x191   :  { %v708_v45 = vmul.f32 %v644_v43, %v452_v40  ;;  %v645_v50 = vadd.f32 1.0, %v1220_v8 }
 0x192   :  { %v1222_v26 = vpop.eup %1221 }
 0x193   :  { %958 = vmatprep.mubr.f32.mxu1 %v708_v45  ;;  %v646_v6 = vadd.f32 1.0, %v1222_v26  ;;  %v709_v9 = vmul.f32 %v645_v50, %v453_v52 }
 0x194   :  { %v1224_v32 = vpop.eup %1223  ;;  %959 = vmatmul.mubr.f32.gmra.mxu1 %v707_v29 }
 0x195   :  { %v710_v46 = vmul.f32 %v646_v6, %v454_v48  ;;  %v647_v60 = vadd.f32 1.0, %v1224_v32 }
 0x196   :  { %v1226_v54 = vpop.eup %1225 }
 0x197   :  { %963 = vmatprep.mubr.f32.mxu1 %v710_v46  ;;  %v648_v57 = vadd.f32 1.0, %v1226_v54  ;;  %v711_v3 = vmul.f32 %v647_v60, %v455_v12 }
 0x198   :  { %v1228_v2 = vpop.eup %1227  ;;  %964 = vmatmul.mubr.f32.gmra.mxu1 %v709_v9 }
 0x199   :  { %v712_v61 = vmul.f32 %v648_v57, %v456_v56  ;;  %v649_v5 = vadd.f32 1.0, %v1228_v2 }
 0x19a   :  { %v1230_v1 = vpop.eup %1229 }
 0x19b   :  { %968 = vmatprep.mubr.f32.mxu1 %v712_v61  ;;  %v650_v18 = vadd.f32 1.0, %v1230_v1  ;;  %v713_v24 = vmul.f32 %v649_v5, %v457_v35 }
 0x19c   :  { %969 = vmatmul.mubr.f32.gmra.mxu1 %v711_v3 }
 0x19d   :  { %v714_v38 = vmul.f32 %v650_v18, %v458_v15 }
 0x19f   :  { %973 = vmatprep.mubr.f32.mxu1 %v714_v38 }
 0x1a0   :  { %974 = vmatmul.mubr.f32.gmra.mxu1 %v713_v24 }
 0x1e4   :  { %v820_v7 = vpop.f32.mrf.mxu0 }
 0x1e5   :  { %v821_v59 = vadd.f32 %v1757_v49, %v820_v7 }
 0x1e6   :  { %v822_v51 = vpop.f32.mrf.mxu0 }
 0x1e7   :  { %979 = vst [vmem:[#allocation8] sm:$0xff] %v821_v59 }
 0x1e8   :  { %v825_v10 = vpop.f32.mrf.mxu0 }
 0x1e9   :  { %v826_v13 = vadd.f32 %v1757_v49, %v825_v10 }
 0x1ea   :  { %v827_v55 = vpop.f32.mrf.mxu0 }
 0x1eb   :  { %980 = vst [vmem:[#allocation8 + $0x8] sm:$0xff] %v826_v13 }
 0x1ec   :  { %v830_v14 = vpop.f32.mrf.mxu0 }
 0x1ed   :  { %v831_v16 = vadd.f32 %v1757_v49, %v830_v14 }
 0x1ee   :  { %v832_v58 = vpop.f32.mrf.mxu0 }
 0x1ef   :  { %981 = vst [vmem:[#allocation8 + $0x10] sm:$0xff] %v831_v16 }
 0x1f0   :  { %v835_v19 = vpop.f32.mrf.mxu0 }
 0x1f1   :  { %v836_v63 = vadd.f32 %v1757_v49, %v835_v19 }
 0x1f2   :  { %v837_v21 = vpop.f32.mrf.mxu0 }
 0x1f3   :  { %982 = vst [vmem:[#allocation8 + $0x18] sm:$0xff] %v836_v63 }
 0x1f4   :  { %v840_v22 = vpop.f32.mrf.mxu1 }
 0x1f5   :  { %v841_v4 = vadd.f32 %v1757_v49, %v840_v22 }
 0x1f6   :  { %v842_v23 = vpop.f32.mrf.mxu1 }
 0x1f7   :  { %983 = vst [vmem:[#allocation8 + $0x20] sm:$0xff] %v841_v4 }
 0x1f8   :  { %v845_v25 = vpop.f32.mrf.mxu1 }
 0x1f9   :  { %v846_v37 = vadd.f32 %v1757_v49, %v845_v25 }
 0x1fa   :  { %v847_v27 = vpop.f32.mrf.mxu1 }
 0x1fb   :  { %984 = vst [vmem:[#allocation8 + $0x28] sm:$0xff] %v846_v37 }
 0x1fc   :  { %v850_v42 = vpop.f32.mrf.mxu1 }
 0x1fd   :  { %v851_v28 = vadd.f32 %v1757_v49, %v850_v42 }
 0x1fe   :  { %v852_v30 = vpop.f32.mrf.mxu1 }
 0x1ff   :  { %985 = vst [vmem:[#allocation8 + $0x30] sm:$0xff] %v851_v28 }
 0x200   :  { %v855_v0 = vpop.f32.mrf.mxu1 }
 0x201   :  { %v856_v31 = vadd.f32 %v1757_v49, %v855_v0 }
 0x202   :  { %v857_v47 = vpop.f32.mrf.mxu1 }
 0x203   :  { %986 = vst [vmem:[#allocation8 + $0x38] sm:$0xff] %v856_v31 }
 0x204   :  { %v860_v34 = vpop.f32.mrf.mxu1 }
 0x205   :  { %v861_v39 = vadd.f32 %v1757_v49, %v860_v34 }
 0x206   :  { %v862_v62 = vpop.f32.mrf.mxu1 }
 0x207   :  { %987 = vst [vmem:[#allocation8 + $0x40] sm:$0xff] %v861_v39 }
 0x208   :  { %v865_v36 = vpop.f32.mrf.mxu1 }
 0x209   :  { %v866_v53 = vadd.f32 %v1757_v49, %v865_v36 }
 0x20a   :  { %v867_v17 = vpop.f32.mrf.mxu1 }
 0x20b   :  { %988 = vst [vmem:[#allocation8 + $0x48] sm:$0xff] %v866_v53 }
 0x20c   :  { %v870_v11 = vpop.f32.mrf.mxu1 }
 0x20d   :  { %v871_v20 = vadd.f32 %v1757_v49, %v870_v11 }
 0x20e   :  { %v872_v40 = vpop.f32.mrf.mxu1 }
 0x20f   :  { %989 = vst [vmem:[#allocation8 + $0x50] sm:$0xff] %v871_v20 }
 0x210   :  { %v875_v41 = vpop.f32.mrf.mxu1 }
 0x211   :  { %v876_v43 = vadd.f32 %v1757_v49, %v875_v41 }
 0x212   :  { %v877_v33 = vpop.f32.mrf.mxu1 }
 0x213   :  { %990 = vst [vmem:[#allocation8 + $0x58] sm:$0xff] %v876_v43 }
 0x214   :  { %v880_v8 = vpop.f32.mrf.mxu1 }
 0x215   :  { %v881_v44 = vadd.f32 %v1757_v49, %v880_v8 }
 0x216   :  { %v882_v45 = vpop.f32.mrf.mxu1 }
 0x217   :  { %991 = vst [vmem:[#allocation8 + $0x60] sm:$0xff] %v881_v44 }
 0x218   :  { %v885_v26 = vpop.f32.mrf.mxu1 }
 0x219   :  { %v886_v48 = vadd.f32 %v1757_v49, %v885_v26 }
 0x21a   :  { %v887_v29 = vpop.f32.mrf.mxu1 }
 0x21b   :  { %992 = vst [vmem:[#allocation8 + $0x68] sm:$0xff] %v886_v48 }
 0x21c   :  { %v890_v6 = vpop.f32.mrf.mxu1 }
 0x21d   :  { %v891_v50 = vadd.f32 %v1757_v49, %v890_v6 }
 0x21e   :  { %v892_v32 = vpop.f32.mrf.mxu1 }
 0x21f   :  { %993 = vst [vmem:[#allocation8 + $0x70] sm:$0xff] %v891_v50 }
 0x220   :  { %v895_v52 = vpop.f32.mrf.mxu1 }
 0x221   :  { %v896_v46 = vadd.f32 %v1757_v49, %v895_v52 }
 0x222   :  { %v897_v54 = vpop.f32.mrf.mxu1 }
 0x223   :  { %994 = vst [vmem:[#allocation8 + $0x78] sm:$0xff] %v896_v46 }
 0x224   :  { %v900_v56 = vpop.f32.mrf.mxu1 }
 0x225   :  { %v901_v9 = vadd.f32 %v1757_v49, %v900_v56 }
 0x226   :  { %v902_v57 = vpop.f32.mrf.mxu1 }
 0x227   :  { %995 = vst [vmem:[#allocation8 + $0x80] sm:$0xff] %v901_v9 }
 0x228   :  { %v905_v60 = vpop.f32.mrf.mxu1 }
 0x229   :  { %v906_v2 = vadd.f32 %v1757_v49, %v905_v60 }
 0x22a   :  { %v907_v12 = vpop.f32.mrf.mxu1 }
 0x22b   :  { %996 = vst [vmem:[#allocation8 + $0x88] sm:$0xff] %v906_v2 }
 0x22c   :  { %v910_v61 = vpop.f32.mrf.mxu1 }
 0x22d   :  { %v911_v1 = vadd.f32 %v1757_v49, %v910_v61 }
 0x22e   :  { %v912_v15 = vpop.f32.mrf.mxu1 }
 0x22f   :  { %997 = vst [vmem:[#allocation8 + $0x90] sm:$0xff] %v911_v1 }
 0x230   :  { %v915_v3 = vpop.f32.mrf.mxu1 }
 0x231   :  { %v916_v18 = vadd.f32 %v1757_v49, %v915_v3 }
 0x232   :  { %v917_v5 = vpop.f32.mrf.mxu1 }
 0x233   :  { %998 = vst [vmem:[#allocation8 + $0x98] sm:$0xff] %v916_v18 }
 0x234   :  { %v920_v35 = vpop.f32.mrf.mxu1 }
 0x235   :  { %v921_v38 = vadd.f32 %v1757_v49, %v920_v35 }
 0x236   :  { %v922_v24 = vpop.f32.mrf.mxu1 }
 0x237   :  { %999 = vst [vmem:[#allocation8 + $0xa0] sm:$0xff] %v921_v38 }
 0x238   :  { %v925_v7 = vpop.f32.mrf.mxu1 }
 0x239   :  { %v926_v59 = vadd.f32 %v1757_v49, %v925_v7 }
 0x23a   :  { %v927_v51 = vpop.f32.mrf.mxu1 }
 0x23b   :  { %1000 = vst [vmem:[#allocation8 + $0xa8] sm:$0xff] %v926_v59 }
 0x23c   :  { %v930_v10 = vpop.f32.mrf.mxu1 }
 0x23d   :  { %v931_v13 = vadd.f32 %v1757_v49, %v930_v10 }
 0x23e   :  { %v932_v55 = vpop.f32.mrf.mxu1 }
 0x23f   :  { %1001 = vst [vmem:[#allocation8 + $0xb0] sm:$0xff] %v931_v13 }
 0x240   :  { %v935_v14 = vpop.f32.mrf.mxu1 }
 0x241   :  { %v936_v16 = vadd.f32 %v1757_v49, %v935_v14 }
 0x242   :  { %v937_v58 = vpop.f32.mrf.mxu1 }
 0x243   :  { %1002 = vst [vmem:[#allocation8 + $0xb8] sm:$0xff] %v936_v16 }
 0x244   :  { %v940_v19 = vpop.f32.mrf.mxu1 }
 0x245   :  { %v941_v63 = vadd.f32 %v1757_v49, %v940_v19 }
 0x246   :  { %v942_v21 = vpop.f32.mrf.mxu1 }
 0x247   :  { %1003 = vst [vmem:[#allocation8 + $0xc0] sm:$0xff] %v941_v63 }
 0x248   :  { %v945_v22 = vpop.f32.mrf.mxu1 }
 0x249   :  { %v946_v4 = vadd.f32 %v1757_v49, %v945_v22 }
 0x24a   :  { %v947_v23 = vpop.f32.mrf.mxu1 }
 0x24b   :  { %1004 = vst [vmem:[#allocation8 + $0xc8] sm:$0xff] %v946_v4 }
 0x24c   :  { %v950_v25 = vpop.f32.mrf.mxu1 }
 0x24d   :  { %v951_v37 = vadd.f32 %v1757_v49, %v950_v25 }
 0x24e   :  { %v952_v27 = vpop.f32.mrf.mxu1 }
 0x24f   :  { %1005 = vst [vmem:[#allocation8 + $0xd0] sm:$0xff] %v951_v37 }
 0x250   :  { %v955_v42 = vpop.f32.mrf.mxu1 }
 0x251   :  { %v956_v28 = vadd.f32 %v1757_v49, %v955_v42 }
 0x252   :  { %v957_v30 = vpop.f32.mrf.mxu1 }
 0x253   :  { %1006 = vst [vmem:[#allocation8 + $0xd8] sm:$0xff] %v956_v28 }
 0x254   :  { %v960_v0 = vpop.f32.mrf.mxu1 }
 0x255   :  { %v961_v31 = vadd.f32 %v1757_v49, %v960_v0 }
 0x256   :  { %v962_v47 = vpop.f32.mrf.mxu1 }
 0x257   :  { %1007 = vst [vmem:[#allocation8 + $0xe0] sm:$0xff] %v961_v31 }
 0x258   :  { %v965_v34 = vpop.f32.mrf.mxu1 }
 0x259   :  { %v966_v39 = vadd.f32 %v1757_v49, %v965_v34 }
 0x25a   :  { %v967_v62 = vpop.f32.mrf.mxu1 }
 0x25b   :  { %1008 = vst [vmem:[#allocation8 + $0xe8] sm:$0xff] %v966_v39 }
 0x25c   :  { %v970_v36 = vpop.f32.mrf.mxu1 }
 0x25d   :  { %v971_v53 = vadd.f32 %v1757_v49, %v970_v36 }
 0x25e   :  { %v972_v17 = vpop.f32.mrf.mxu1 }
 0x25f   :  { %1009 = vst [vmem:[#allocation8 + $0xf0] sm:$0xff] %v971_v53 }
 0x260   :  { %v975_v11 = vpop.f32.mrf.mxu1 }
 0x261   :  { %v976_v20 = vadd.f32 %v1757_v49, %v975_v11 }
 0x262   :  { %v977_v40 = vpop.f32.mrf.mxu1 }
 0x263   :  { %1010 = vst [vmem:[#allocation8 + $0xf8] sm:$0xff] %v976_v20 }
 0x264   :  { %1302 = shalt.err (!%p1299_p5)
}
 0x265   :  { %1022 = dma.vmem_to_hbm [thread:$0]  %s1017_s12, 4096, %s1802_s5, [#allocation4], %s1321_s28, %s1321_s28, %s1322_s29  }
 0x266   :  { %1315 = dma.done.wait [#allocation4], 4096  }
 0x267   :  { %1316 = vsyncadd [#allocation4], 4294963200 }
 0x268   :  { %1026 = vsyncpa [#allocation3], 1 }
 0x269   :  { %1027 = vsyncpa [#allocation6], 1 }
 0x26a   :  { %1028 = vsyncpa [#allocation4], 1 }

// kernel: tpu_custom_call.1
= control target key start
LH: loop header
LB: loop body
LE: loop exit
PB: predicated region body
PF: predicated region fallthrough
CT: control target
= control target key end

     0   :  { %10 = vsyncpa [#allocation3], 0  ;;  %s1797_s0 = inlined_call_operand.hbm [shape: f32[256,128], index: 0, kind: input, shape index: {}]   ;;  %s1798_s1 = inlined_call_operand.hbm [shape: f32[128,256], index: 1, kind: input, shape index: {}]   ;;  %s1799_s2 = inlined_call_operand.vmem [shape: f32[1,256], index: 2, kind: input, shape index: {}]   ;;  %s1800_s3 = inlined_call_operand.hbm [shape: f32[256,128], index: 3, kind: input, shape index: {}]   ;;  %s1801_s4 = inlined_call_operand.vmem [shape: f32[1,128], index: 4, kind: input, shape index: {}]   ;;  %s1802_s5 = inlined_call_operand.hbm [shape: f32[256,128], index: 5, kind: output, shape index: {}]  }
   0x1   :  { %11 = vsyncpa [#allocation6], 0 }
   0x2   :  { %12 = vsyncpa [#allocation4], 0  ;;  %s1317_s18 = smov [#allocation5]  }
   0x3   :  { %s30_s19 = sshll.u32 %s1317_s18, 4  ;;  %s31_s19 = int_to_ptr.vmem [resolvable:$true] %s30_s19 }
   0x4   :  { %s1239_s20 = scalar_lea.vmem %s31_s19, 4096  ;;  %p1244_p1 = scmp.lt.s32.totalorder %s31_s19, %s31_s19 }
   0x5   :  { %p1240_p0 = scmp.ne.s32.totalorder %s31_s19, %s1239_s20  ;;  %p1245_p2 = scmp.lt.s32.totalorder %s1239_s20, %s1239_s20 }
   0x7   :  { %p1246_p3 = por %p1245_p2, %p1244_p1 }
   0x9   :  { %p1247_p4 = pnand %p1246_p3, %p1240_p0 }
   0xb   :  { %1250 = shalt.err (!%p1247_p4)
}
   0xc   :  { %s1318_s21 = smov 256   ;;  %s1319_s22 = smov 16  }
   0xd   :  { %36 = dma.hbm_to_vmem [thread:$0]  %s1798_s1, 4096, %s31_s19, [#allocation6], %s1318_s21, %s1318_s21, %s1319_s22  }
   0xe   :  { %s1320_s25 = smov [#allocation2]  }
   0xf   :  { %s18_s26 = sshll.u32 %s1320_s25, 4  ;;  %s19_s26 = int_to_ptr.vmem [resolvable:$true] %s18_s26 }
  0x10   :  { %s1259_s27 = scalar_lea.vmem %s19_s26, 4096  ;;  %p1264_p6 = scmp.lt.s32.totalorder %s19_s26, %s19_s26 }
  0x11   :  { %p1260_p5 = scmp.ne.s32.totalorder %s19_s26, %s1259_s27  ;;  %p1265_p7 = scmp.lt.s32.totalorder %s1259_s27, %s1259_s27 }
  0x13   :  { %p1266_p8 = por %p1265_p7, %p1264_p6 }
  0x15   :  { %p1267_p9 = pnand %p1266_p8, %p1260_p5 }
  0x17   :  { %1270 = shalt.err (!%p1267_p9)
}
  0x18   :  { %s1321_s28 = smov 128   ;;  %s1322_s29 = smov 8  }
  0x19   :  { %24 = dma.hbm_to_vmem [thread:$0]  %s1797_s0, 4096, %s19_s26, [#allocation3], %s1321_s28, %s1321_s28, %s1322_s29  }
  0x1a   :  { %s1323_s1 = smov [#allocation7]  }
  0x1b   :  { %s44_s7 = sshll.u32 %s1323_s1, 4  ;;  %s45_s7 = int_to_ptr.vmem [resolvable:$true] %s44_s7 }
  0x1c   :  { %s1279_s8 = scalar_lea.vmem %s45_s7, 4096  ;;  %p1284_p11 = scmp.lt.s32.totalorder %s45_s7, %s45_s7 }
  0x1d   :  { %p1280_p10 = scmp.ne.s32.totalorder %s45_s7, %s1279_s8  ;;  %p1285_p12 = scmp.lt.s32.totalorder %s1279_s8, %s1279_s8 }
  0x1f   :  { %p1286_p13 = por %p1285_p12, %p1284_p11 }
  0x21   :  { %p1287_p0 = pnand %p1286_p13, %p1280_p10 }
  0x23   :  { %1290 = shalt.err (!%p1287_p0)
}
  0x24   :  { %50 = dma.hbm_to_vmem [thread:$0]  %s1800_s3, 4096, %s45_s7, [#allocation6], %s1321_s28, %s1321_s28, %s1322_s29  }
  0x25   :  { %1311 = dma.done.wait [#allocation3], 4096  }
  0x26   :  { %1312 = vsyncadd [#allocation3], 4294963200 }
  0x27   :  { %1313 = dma.done.wait [#allocation6], 8192  }
  0x28   :  { %1314 = vsyncadd [#allocation6], 4294959104  ;;  %v1324_v0 = vmov 0.0   ;;  %v125_v1 = vld [vmem:[#allocation5 + $0xf8] sm:$0xff]  ;;  %v124_v2 = vld [vmem:[#allocation5 + $0xf0] sm:$0xff] }
  0x29   :  { %202 = vmatprep.mubr.f32.mxu0 %v1324_v0  ;;  %1030 = vmatprep.subr.mxu1 %v1324_v0  ;;  %v123_v3 = vld [vmem:[#allocation5 + $0xe8] sm:$0xff]  ;;  %v122_v4 = vld [vmem:[#allocation5 + $0xe0] sm:$0xff]  ;;  %v121_v5 = vld [vmem:[#allocation5 + $0xd8] sm:$0xff] }
  0x2a   :  { %138 = vmatprep.subr.mxu0 %v125_v1  ;;  %v120_v6 = vld [vmem:[#allocation5 + $0xd0] sm:$0xff]  ;;  %v119_v7 = vld [vmem:[#allocation5 + $0xc8] sm:$0xff]  ;;  %v118_v8 = vld [vmem:[#allocation5 + $0xc0] sm:$0xff] }
  0x2b   :  { %139 = vmatpush1.msra.mxu0 %v124_v2  ;;  %v117_v9 = vld [vmem:[#allocation5 + $0xb8] sm:$0xff]  ;;  %v116_v10 = vld [vmem:[#allocation5 + $0xb0] sm:$0xff]  ;;  %v115_v11 = vld [vmem:[#allocation5 + $0xa8] sm:$0xff] }
  0x2c   :  { %140 = vmatprep.subr.mxu0 %v123_v3  ;;  %v114_v12 = vld [vmem:[#allocation5 + $0xa0] sm:$0xff]  ;;  %v113_v13 = vld [vmem:[#allocation5 + $0x98] sm:$0xff]  ;;  %v112_v14 = vld [vmem:[#allocation5 + $0x90] sm:$0xff] }
  0x2d   :  { %141 = vmatpush1.msra.mxu0 %v122_v4  ;;  %v111_v15 = vld [vmem:[#allocation5 + $0x88] sm:$0xff]  ;;  %v110_v16 = vld [vmem:[#allocation5 + $0x80] sm:$0xff]  ;;  %v109_v17 = vld [vmem:[#allocation5 + $0x78] sm:$0xff] }
  0x2e   :  { %142 = vmatprep.subr.mxu0 %v121_v5  ;;  %v108_v18 = vld [vmem:[#allocation5 + $0x70] sm:$0xff]  ;;  %v107_v19 = vld [vmem:[#allocation5 + $0x68] sm:$0xff]  ;;  %v106_v20 = vld [vmem:[#allocation5 + $0x60] sm:$0xff] }
  0x2f   :  { %143 = vmatpush1.msra.mxu0 %v120_v6  ;;  %v105_v21 = vld [vmem:[#allocation5 + $0x58] sm:$0xff]  ;;  %v104_v22 = vld [vmem:[#allocation5 + $0x50] sm:$0xff]  ;;  %v103_v23 = vld [vmem:[#allocation5 + $0x48] sm:$0xff] }
  0x30   :  { %144 = vmatprep.subr.mxu0 %v119_v7  ;;  %v102_v24 = vld [vmem:[#allocation5 + $0x40] sm:$0xff]  ;;  %v101_v25 = vld [vmem:[#allocation5 + $0x38] sm:$0xff]  ;;  %v100_v26 = vld [vmem:[#allocation5 + $0x30] sm:$0xff] }
  0x31   :  { %145 = vmatpush1.msra.mxu0 %v118_v8  ;;  %v99_v27 = vld [vmem:[#allocation5 + $0x28] sm:$0xff]  ;;  %v98_v28 = vld [vmem:[#allocation5 + $0x20] sm:$0xff]  ;;  %v97_v29 = vld [vmem:[#allocation5 + $0x18] sm:$0xff] }
  0x32   :  { %146 = vmatprep.subr.mxu0 %v117_v9  ;;  %v96_v30 = vld [vmem:[#allocation5 + $0x10] sm:$0xff]  ;;  %v95_v31 = vld [vmem:[#allocation5 + $0x8] sm:$0xff]  ;;  %v94_v32 = vld [vmem:[#allocation5] sm:$0xff] }
  0x33   :  { %147 = vmatpush1.msra.mxu0 %v116_v10  ;;  %v730_v33 = vld [vmem:[#allocation7 + $0x78] sm:$0xff]  ;;  %v62_v34 = vld [vmem:[#allocation2] sm:$0xff]  ;;  %v729_v35 = vld [vmem:[#allocation7 + $0x70] sm:$0xff] }
  0x34   :  { %148 = vmatprep.subr.mxu0 %v115_v11  ;;  %1062 = vmatpush1.msra.mxu1 %v730_v33  ;;  %v63_v36 = vld [vmem:[#allocation2 + $0x8] sm:$0xff]  ;;  %v727_v38 = vld [vmem:[#allocation7 + $0x60] sm:$0xff]  ;;  %v64_v39 = vld [vmem:[#allocation2 + $0x10] sm:$0xff] }
  0x35   :  { %149 = vmatpush1.msra.mxu0 %v114_v12  ;;  %1031 = vmatprep.subr.mxu1 %v1324_v0  ;;  %v728_v37 = vld [vmem:[#allocation7 + $0x68] sm:$0xff]  ;;  %v726_v40 = vld [vmem:[#allocation7 + $0x58] sm:$0xff]  ;;  %v725_v41 = vld [vmem:[#allocation7 + $0x50] sm:$0xff] }
  0x36   :  { %150 = vmatprep.subr.mxu0 %v113_v13  ;;  %1063 = vmatpush1.msra.mxu1 %v729_v35  ;;  %v65_v42 = vld [vmem:[#allocation2 + $0x18] sm:$0xff]  ;;  %v724_v43 = vld [vmem:[#allocation7 + $0x48] sm:$0xff]  ;;  %v723_v44 = vld [vmem:[#allocation7 + $0x40] sm:$0xff] }
  0x37   :  { %151 = vmatpush1.msra.mxu0 %v112_v14  ;;  %1032 = vmatprep.subr.mxu1 %v1324_v0  ;;  %v66_v45 = vld [vmem:[#allocation2 + $0x20] sm:$0xff]  ;;  %v722_v46 = vld [vmem:[#allocation7 + $0x38] sm:$0xff]  ;;  %v721_v47 = vld [vmem:[#allocation7 + $0x30] sm:$0xff] }
  0x38   :  { %152 = vmatprep.subr.mxu0 %v111_v15  ;;  %1064 = vmatpush1.msra.mxu1 %v728_v37  ;;  %v67_v48 = vld [vmem:[#allocation2 + $0x28] sm:$0xff]  ;;  %v719_v50 = vld [vmem:[#allocation7 + $0x20] sm:$0xff]  ;;  %v68_v51 = vld [vmem:[#allocation2 + $0x30] sm:$0xff] }
  0x39   :  { %153 = vmatpush1.msra.mxu0 %v110_v16  ;;  %1033 = vmatprep.subr.mxu1 %v1324_v0  ;;  %v720_v49 = vld [vmem:[#allocation7 + $0x28] sm:$0xff]  ;;  %v718_v52 = vld [vmem:[#allocation7 + $0x18] sm:$0xff]  ;;  %v717_v53 = vld [vmem:[#allocation7 + $0x10] sm:$0xff] }
  0x3a   :  { %154 = vmatprep.subr.mxu0 %v109_v17  ;;  %1065 = vmatpush1.msra.mxu1 %v727_v38  ;;  %v69_v54 = vld [vmem:[#allocation2 + $0x38] sm:$0xff]  ;;  %v716_v55 = vld [vmem:[#allocation7 + $0x8] sm:$0xff]  ;;  %v715_v56 = vld [vmem:[#allocation7] sm:$0xff] }
  0x3b   :  { %155 = vmatpush1.msra.mxu0 %v108_v18  ;;  %1034 = vmatprep.subr.mxu1 %v1324_v0  ;;  %v70_v57 = vld [vmem:[#allocation2 + $0x40] sm:$0xff]  ;;  %v746_v58 = vld [vmem:[#allocation7 + $0xf8] sm:$0xff]  ;;  %v745_v59 = vld [vmem:[#allocation7 + $0xf0] sm:$0xff] }
  0x3c   :  { %156 = vmatprep.subr.mxu0 %v107_v19  ;;  %1066 = vmatpush1.msra.mxu1 %v726_v40  ;;  %v71_v60 = vld [vmem:[#allocation2 + $0x48] sm:$0xff]  ;;  %v72_v62 = vld [vmem:[#allocation2 + $0x50] sm:$0xff]  ;;  %v73_v63 = vld [vmem:[#allocation2 + $0x58] sm:$0xff] }
  0x3d   :  { %157 = vmatpush1.msra.mxu0 %v106_v20  ;;  %1035 = vmatprep.subr.mxu1 %v1324_v0  ;;  %v744_v61 = vld [vmem:[#allocation7 + $0xe8] sm:$0xff]  ;;  %v74_v1 = vld [vmem:[#allocation2 + $0x60] sm:$0xff]  ;;  %v76_v3 = vld [vmem:[#allocation2 + $0x70] sm:$0xff] }
  0x3e   :  { %158 = vmatprep.subr.mxu0 %v105_v21  ;;  %1067 = vmatpush1.msra.mxu1 %v725_v41  ;;  %v75_v2 = vld [vmem:[#allocation2 + $0x68] sm:$0xff]  ;;  %v77_v4 = vld [vmem:[#allocation2 + $0x78] sm:$0xff]  ;;  %v78_v5 = vld [vmem:[#allocation2 + $0x80] sm:$0xff] }
  0x3f   :  { %159 = vmatpush1.msra.mxu0 %v104_v22  ;;  %1036 = vmatprep.subr.mxu1 %v1324_v0  ;;  %v743_v6 = vld [vmem:[#allocation7 + $0xe0] sm:$0xff]  ;;  %v79_v7 = vld [vmem:[#allocation2 + $0x88] sm:$0xff]  ;;  %v742_v8 = vld [vmem:[#allocation7 + $0xd8] sm:$0xff] }
  0x40   :  { %160 = vmatprep.subr.mxu0 %v103_v23  ;;  %1068 = vmatpush1.msra.mxu1 %v724_v43  ;;  %v741_v9 = vld [vmem:[#allocation7 + $0xd0] sm:$0xff]  ;;  %v740_v11 = vld [vmem:[#allocation7 + $0xc8] sm:$0xff]  ;;  %v739_v12 = vld [vmem:[#allocation7 + $0xc0] sm:$0xff] }
  0x41   :  { %161 = vmatpush1.msra.mxu0 %v102_v24  ;;  %1037 = vmatprep.subr.mxu1 %v1324_v0  ;;  %v80_v10 = vld [vmem:[#allocation2 + $0x90] sm:$0xff]  ;;  %v81_v13 = vld [vmem:[#allocation2 + $0x98] sm:$0xff]  ;;  %v82_v16 = vld [vmem:[#allocation2 + $0xa0] sm:$0xff] }
  0x42   :  { %162 = vmatprep.subr.mxu0 %v101_v25  ;;  %1069 = vmatpush1.msra.mxu1 %v723_v44  ;;  %v738_v14 = vld [vmem:[#allocation7 + $0xb8] sm:$0xff]  ;;  %v737_v15 = vld [vmem:[#allocation7 + $0xb0] sm:$0xff]  ;;  %v736_v17 = vld [vmem:[#allocation7 + $0xa8] sm:$0xff] }
  0x43   :  { %163 = vmatpush1.msra.mxu0 %v100_v26  ;;  %1038 = vmatprep.subr.mxu1 %v1324_v0  ;;  %v735_v18 = vld [vmem:[#allocation7 + $0xa0] sm:$0xff]  ;;  %v83_v19 = vld [vmem:[#allocation2 + $0xa8] sm:$0xff]  ;;  %v734_v20 = vld [vmem:[#allocation7 + $0x98] sm:$0xff] }
  0x44   :  { %164 = vmatprep.subr.mxu0 %v99_v27  ;;  %1070 = vmatpush1.msra.mxu1 %v722_v46  ;;  %v84_v21 = vld [vmem:[#allocation2 + $0xb0] sm:$0xff]  ;;  %v732_v23 = vld [vmem:[#allocation7 + $0x88] sm:$0xff]  ;;  %v85_v24 = vld [vmem:[#allocation2 + $0xb8] sm:$0xff] }
  0x45   :  { %165 = vmatpush1.msra.mxu0 %v98_v28  ;;  %1039 = vmatprep.subr.mxu1 %v1324_v0  ;;  %v733_v22 = vld [vmem:[#allocation7 + $0x90] sm:$0xff]  ;;  %v731_v25 = vld [vmem:[#allocation7 + $0x80] sm:$0xff]  ;;  %v87_v27 = vld [vmem:[#allocation2 + $0xc8] sm:$0xff] }
  0x46   :  { %166 = vmatprep.subr.mxu0 %v97_v29  ;;  %1071 = vmatpush1.msra.mxu1 %v721_v47  ;;  %v86_v26 = vld [vmem:[#allocation2 + $0xc0] sm:$0xff]  ;;  %v88_v28 = vld [vmem:[#allocation2 + $0xd0] sm:$0xff]  ;;  %v89_v29 = vld [vmem:[#allocation2 + $0xd8] sm:$0xff] }
  0x47   :  { %167 = vmatpush1.msra.mxu0 %v96_v30  ;;  %1040 = vmatprep.subr.mxu1 %v1324_v0  ;;  %v90_v30 = vld [vmem:[#allocation2 + $0xe0] sm:$0xff] }
  0x48   :  { %168 = vmatprep.subr.mxu0 %v95_v31  ;;  %1072 = vmatpush1.msra.mxu1 %v720_v49  ;;  %v91_v31 = vld [vmem:[#allocation2 + $0xe8] sm:$0xff] }
  0x49   :  { %169 = vmatpush1.msra.mxu0 %v94_v32  ;;  %1041 = vmatprep.subr.mxu1 %v1324_v0  ;;  %v92_v32 = vld [vmem:[#allocation2 + $0xf0] sm:$0xff] }
  0x4a   :  { %203 = vmatmul.mubr.f32.vlgmr.msra.gmra.mxu0 %v62_v34  ;;  %754 = vmatprep.subr.mxu0 %v1324_v0  ;;  %v128_v34 = vlaneseq }
  0x4b   :  { %208 = vmatprep.mubr.f32.mxu0 %v1324_v0  ;;  %755 = vmatpush1.msra.mxu0 %v730_v33  ;;  %v93_v33 = vld [vmem:[#allocation2 + $0xf8] sm:$0xff] }
  0x4c   :  { %756 = vmatprep.subr.mxu0 %v1324_v0  ;;  %1073 = vmatpush1.msra.mxu1 %v719_v50 }
  0x4d   :  { %757 = vmatpush1.msra.mxu0 %v729_v35  ;;  %1042 = vmatprep.subr.mxu1 %v1324_v0  ;;  %v129_v35 = vshrl.u32 %v128_v34, 7 }
  0x4e   :  { %209 = vmatmul.mubr.f32.gmra.mxu0 %v63_v36  ;;  %758 = vmatprep.subr.mxu0 %v1324_v0 }
  0x4f   :  { %214 = vmatprep.mubr.f32.mxu0 %v1324_v0  ;;  %759 = vmatpush1.msra.mxu0 %v728_v37  ;;  %v130_v36 = vsub.s32 0, %v129_v35  ;;  %v126_v37 = vld [vmem:[%s1799_s2] sm:$0x3] }
  0x50   :  { %760 = vmatprep.subr.mxu0 %v1324_v0  ;;  %1074 = vmatpush1.msra.mxu1 %v718_v52 }
  0x51   :  { %761 = vmatpush1.msra.mxu0 %v727_v38  ;;  %1043 = vmatprep.subr.mxu1 %v1324_v0  ;;  %v134_v38 = vsub.s32 1, %v129_v35 }
  0x52   :  { %215 = vmatmul.mubr.f32.gmra.mxu0 %v64_v39  ;;  %762 = vmatprep.subr.mxu0 %v1324_v0  ;;  %v1470_v39 = vrot.slane %v126_v37, %v130_v36 }
  0x53   :  { %220 = vmatprep.mubr.f32.mxu0 %v1324_v0  ;;  %763 = vmatpush1.msra.mxu0 %v726_v40  ;;  %v1472_v40 = vrot.slane %v126_v37, %v134_v38 }
  0x54   :  { %764 = vmatprep.subr.mxu0 %v1324_v0  ;;  %1075 = vmatpush1.msra.mxu1 %v717_v53 }
  0x55   :  { %765 = vmatpush1.msra.mxu0 %v725_v41  ;;  %1044 = vmatprep.subr.mxu1 %v1324_v0 }
  0x56   :  { %221 = vmatmul.mubr.f32.gmra.mxu0 %v65_v42  ;;  %766 = vmatprep.subr.mxu0 %v1324_v0 }
  0x57   :  { %226 = vmatprep.mubr.f32.mxu0 %v1324_v0  ;;  %767 = vmatpush1.msra.mxu0 %v724_v43 }
  0x58   :  { %768 = vmatprep.subr.mxu0 %v1324_v0  ;;  %1076 = vmatpush1.msra.mxu1 %v716_v55 }
  0x59   :  { %769 = vmatpush1.msra.mxu0 %v723_v44  ;;  %1045 = vmatprep.subr.mxu1 %v1324_v0 }
  0x5a   :  { %227 = vmatmul.mubr.f32.gmra.mxu0 %v66_v45  ;;  %770 = vmatprep.subr.mxu0 %v1324_v0 }
  0x5b   :  { %232 = vmatprep.mubr.f32.mxu0 %v1324_v0  ;;  %771 = vmatpush1.msra.mxu0 %v722_v46 }
  0x5c   :  { %772 = vmatprep.subr.mxu0 %v1324_v0  ;;  %1077 = vmatpush1.msra.mxu1 %v715_v56 }
  0x5d   :  { %773 = vmatpush1.msra.mxu0 %v721_v47  ;;  %1046 = vmatprep.subr.mxu1 %v1324_v0 }
  0x5e   :  { %233 = vmatmul.mubr.f32.gmra.mxu0 %v67_v48  ;;  %774 = vmatprep.subr.mxu0 %v1324_v0 }
  0x5f   :  { %238 = vmatprep.mubr.f32.mxu0 %v1324_v0  ;;  %775 = vmatpush1.msra.mxu0 %v720_v49 }
  0x60   :  { %776 = vmatprep.subr.mxu0 %v1324_v0  ;;  %1078 = vmatpush2.msra.mxu1 %v746_v58 }
  0x61   :  { %777 = vmatpush1.msra.mxu0 %v719_v50  ;;  %1047 = vmatprep.subr.mxu1 %v1324_v0 }
  0x62   :  { %239 = vmatmul.mubr.f32.gmra.mxu0 %v68_v51  ;;  %778 = vmatprep.subr.mxu0 %v1324_v0 }
  0x63   :  { %244 = vmatprep.mubr.f32.mxu0 %v1324_v0  ;;  %779 = vmatpush1.msra.mxu0 %v718_v52 }
  0x64   :  { %780 = vmatprep.subr.mxu0 %v1324_v0  ;;  %1079 = vmatpush2.msra.mxu1 %v745_v59 }
  0x65   :  { %781 = vmatpush1.msra.mxu0 %v717_v53  ;;  %1048 = vmatprep.subr.mxu1 %v1324_v0 }
  0x66   :  { %245 = vmatmul.mubr.f32.gmra.mxu0 %v69_v54  ;;  %782 = vmatprep.subr.mxu0 %v1324_v0 }
  0x67   :  { %250 = vmatprep.mubr.f32.mxu0 %v1324_v0  ;;  %783 = vmatpush1.msra.mxu0 %v716_v55 }
  0x68   :  { %784 = vmatprep.subr.mxu0 %v1324_v0  ;;  %1080 = vmatpush2.msra.mxu1 %v744_v61 }
  0x69   :  { %785 = vmatpush1.msra.mxu0 %v715_v56  ;;  %1049 = vmatprep.subr.mxu1 %v1324_v0 }
  0x6a   :  { %251 = vmatmul.mubr.f32.gmra.mxu0 %v70_v57  ;;  %786 = vmatprep.subr.mxu0 %v1324_v0 }
  0x6b   :  { %256 = vmatprep.mubr.f32.mxu0 %v1324_v0  ;;  %787 = vmatpush2.msra.mxu0 %v746_v58 }
  0x6c   :  { %788 = vmatprep.subr.mxu0 %v1324_v0  ;;  %1081 = vmatpush2.msra.mxu1 %v743_v6 }
  0x6d   :  { %789 = vmatpush2.msra.mxu0 %v745_v59  ;;  %1050 = vmatprep.subr.mxu1 %v1324_v0 }
  0x6e   :  { %257 = vmatmul.mubr.f32.gmra.mxu0 %v71_v60  ;;  %790 = vmatprep.subr.mxu0 %v1324_v0 }
  0x6f   :  { %262 = vmatprep.mubr.f32.mxu0 %v1324_v0  ;;  %791 = vmatpush2.msra.mxu0 %v744_v61 }
  0x70   :  { %792 = vmatprep.subr.mxu0 %v1324_v0  ;;  %1082 = vmatpush2.msra.mxu1 %v742_v8 }
  0x71   :  { %793 = vmatpush2.msra.mxu0 %v743_v6  ;;  %1051 = vmatprep.subr.mxu1 %v1324_v0 }
  0x72   :  { %263 = vmatmul.mubr.f32.gmra.mxu0 %v72_v62  ;;  %794 = vmatprep.subr.mxu0 %v1324_v0 }
  0x73   :  { %268 = vmatprep.mubr.f32.mxu0 %v1324_v0  ;;  %795 = vmatpush2.msra.mxu0 %v742_v8 }
  0x74   :  { %796 = vmatprep.subr.mxu0 %v1324_v0  ;;  %1083 = vmatpush2.msra.mxu1 %v741_v9 }
  0x75   :  { %797 = vmatpush2.msra.mxu0 %v741_v9  ;;  %1052 = vmatprep.subr.mxu1 %v1324_v0 }
  0x76   :  { %269 = vmatmul.mubr.f32.gmra.mxu0 %v73_v63  ;;  %798 = vmatprep.subr.mxu0 %v1324_v0 }
  0x77   :  { %274 = vmatprep.mubr.f32.mxu0 %v1324_v0  ;;  %799 = vmatpush2.msra.mxu0 %v740_v11 }
  0x78   :  { %800 = vmatprep.subr.mxu0 %v1324_v0  ;;  %1084 = vmatpush2.msra.mxu1 %v740_v11 }
  0x79   :  { %801 = vmatpush2.msra.mxu0 %v739_v12  ;;  %1053 = vmatprep.subr.mxu1 %v1324_v0 }
  0x7a   :  { %275 = vmatmul.mubr.f32.gmra.mxu0 %v74_v1  ;;  %802 = vmatprep.subr.mxu0 %v1324_v0 }
  0x7b   :  { %280 = vmatprep.mubr.f32.mxu0 %v1324_v0  ;;  %803 = vmatpush2.msra.mxu0 %v738_v14 }
  0x7c   :  { %804 = vmatprep.subr.mxu0 %v1324_v0  ;;  %1085 = vmatpush2.msra.mxu1 %v739_v12 }
  0x7d   :  { %805 = vmatpush2.msra.mxu0 %v737_v15  ;;  %1054 = vmatprep.subr.mxu1 %v1324_v0 }
  0x7e   :  { %281 = vmatmul.mubr.f32.gmra.mxu0 %v75_v2  ;;  %806 = vmatprep.subr.mxu0 %v1324_v0 }
  0x7f   :  { %286 = vmatprep.mubr.f32.mxu0 %v1324_v0  ;;  %807 = vmatpush2.msra.mxu0 %v736_v17 }
  0x80   :  { %808 = vmatprep.subr.mxu0 %v1324_v0  ;;  %1086 = vmatpush2.msra.mxu1 %v738_v14 }
  0x81   :  { %809 = vmatpush2.msra.mxu0 %v735_v18  ;;  %1055 = vmatprep.subr.mxu1 %v1324_v0 }
  0x82   :  { %287 = vmatmul.mubr.f32.gmra.mxu0 %v76_v3  ;;  %810 = vmatprep.subr.mxu0 %v1324_v0 }
  0x83   :  { %292 = vmatprep.mubr.f32.mxu0 %v1324_v0  ;;  %811 = vmatpush2.msra.mxu0 %v734_v20 }
  0x84   :  { %812 = vmatprep.subr.mxu0 %v1324_v0  ;;  %1087 = vmatpush2.msra.mxu1 %v737_v15 }
  0x85   :  { %813 = vmatpush2.msra.mxu0 %v733_v22  ;;  %1056 = vmatprep.subr.mxu1 %v1324_v0 }
  0x86   :  { %293 = vmatmul.mubr.f32.gmra.mxu0 %v77_v4  ;;  %814 = vmatprep.subr.mxu0 %v1324_v0 }
  0x87   :  { %298 = vmatprep.mubr.f32.mxu0 %v1324_v0  ;;  %815 = vmatpush2.msra.mxu0 %v732_v23 }
  0x88   :  { %816 = vmatprep.subr.mxu0 %v1324_v0  ;;  %1088 = vmatpush2.msra.mxu1 %v736_v17 }
  0x89   :  { %817 = vmatpush2.msra.mxu0 %v731_v25  ;;  %1057 = vmatprep.subr.mxu1 %v1324_v0 }
  0x8a   :  { %299 = vmatmul.mubr.f32.gmra.mxu0 %v78_v5  ;;  %1089 = vmatpush2.msra.mxu1 %v735_v18 }
  0x8b   :  { %304 = vmatprep.mubr.f32.mxu0 %v1324_v0  ;;  %1058 = vmatprep.subr.mxu1 %v1324_v0 }
  0x8c   :  { %1090 = vmatpush2.msra.mxu1 %v734_v20 }
  0x8d   :  { %1059 = vmatprep.subr.mxu1 %v1324_v0 }
  0x8e   :  { %305 = vmatmul.mubr.f32.gmra.mxu0 %v79_v7  ;;  %1091 = vmatpush2.msra.mxu1 %v733_v22 }
  0x8f   :  { %310 = vmatprep.mubr.f32.mxu0 %v1324_v0  ;;  %1060 = vmatprep.subr.mxu1 %v1324_v0 }
  0x90   :  { %1092 = vmatpush2.msra.mxu1 %v732_v23 }
  0x91   :  { %1061 = vmatprep.subr.mxu1 %v1324_v0 }
  0x92   :  { %311 = vmatmul.mubr.f32.gmra.mxu0 %v80_v10  ;;  %1093 = vmatpush2.msra.mxu1 %v731_v25 }
  0x93   :  { %316 = vmatprep.mubr.f32.mxu0 %v1324_v0 }
  0x96   :  { %317 = vmatmul.mubr.f32.gmra.mxu0 %v81_v13 }
  0x97   :  { %322 = vmatprep.mubr.f32.mxu0 %v1324_v0 }
  0x9a   :  { %323 = vmatmul.mubr.f32.gmra.mxu0 %v82_v16 }
  0x9b   :  { %328 = vmatprep.mubr.f32.mxu0 %v1324_v0 }
  0x9e   :  { %329 = vmatmul.mubr.f32.gmra.mxu0 %v83_v19 }
  0x9f   :  { %334 = vmatprep.mubr.f32.mxu0 %v1324_v0 }
  0xa2   :  { %335 = vmatmul.mubr.f32.gmra.mxu0 %v84_v21 }
  0xa3   :  { %340 = vmatprep.mubr.f32.mxu0 %v1324_v0 }
  0xa6   :  { %341 = vmatmul.mubr.f32.gmra.mxu0 %v85_v24 }
  0xa7   :  { %346 = vmatprep.mubr.f32.mxu0 %v1324_v0 }
  0xaa   :  { %347 = vmatmul.mubr.f32.gmra.mxu0 %v86_v26 }
  0xab   :  { %352 = vmatprep.mubr.f32.mxu0 %v1324_v0 }
  0xae   :  { %353 = vmatmul.mubr.f32.gmra.mxu0 %v87_v27 }
  0xaf   :  { %358 = vmatprep.mubr.f32.mxu0 %v1324_v0 }
  0xb2   :  { %359 = vmatmul.mubr.f32.gmra.mxu0 %v88_v28 }
  0xb3   :  { %364 = vmatprep.mubr.f32.mxu0 %v1324_v0 }
  0xb6   :  { %365 = vmatmul.mubr.f32.gmra.mxu0 %v89_v29 }
  0xb7   :  { %370 = vmatprep.mubr.f32.mxu0 %v1324_v0 }
  0xba   :  { %371 = vmatmul.mubr.f32.gmra.mxu0 %v90_v30 }
  0xbb   :  { %376 = vmatprep.mubr.f32.mxu0 %v1324_v0 }
  0xbe   :  { %377 = vmatmul.mubr.f32.gmra.mxu0 %v91_v31 }
  0xbf   :  { %382 = vmatprep.mubr.f32.mxu0 %v1324_v0 }
  0xc2   :  { %383 = vmatmul.mubr.f32.gmra.mxu0 %v92_v32 }
  0xc3   :  { %388 = vmatprep.mubr.f32.mxu0 %v1324_v0 }
  0xc6   :  { %389 = vmatmul.mubr.f32.gmra.mxu0 %v93_v33 }
 0x10a   :  { %v204_v41 = vpop.f32.mrf.mxu0 }
 0x10b   :  { %v205_v42 = vadd.f32 %v204_v41, %v1470_v39 }
 0x10c   :  { %v206_v43 = vpop.f32.mrf.mxu0 }
 0x10d   :  { %v459_v44 = vmul.f32 0.70710677, %v205_v42  ;;  %v207_v0 = vadd.f32 %v206_v43, %v1472_v40  ;;  %v395_v14 = vmul.f32 0.5, %v205_v42 }
 0x10e   :  { %v210_v45 = vpop.f32.mrf.mxu0 }
 0x10f   :  { %1103 = verf.f32 %v459_v44  ;;  %v460_v46 = vmul.f32 0.70710677, %v207_v0  ;;  %v211_v47 = vadd.f32 %v210_v45, %v1470_v39  ;;  %v396_v10 = vmul.f32 0.5, %v207_v0 }
 0x110   :  { %v212_v48 = vpop.f32.mrf.mxu0 }
 0x111   :  { %1105 = verf.f32 %v460_v46  ;;  %v461_v49 = vmul.f32 0.70710677, %v211_v47  ;;  %v213_v50 = vadd.f32 %v212_v48, %v1472_v40  ;;  %v397_v30 = vmul.f32 0.5, %v211_v47 }
 0x112   :  { %v216_v51 = vpop.f32.mrf.mxu0 }
 0x113   :  { %1107 = verf.f32 %v461_v49  ;;  %v462_v52 = vmul.f32 0.70710677, %v213_v50  ;;  %v217_v53 = vadd.f32 %v216_v51, %v1470_v39  ;;  %v398_v27 = vmul.f32 0.5, %v213_v50 }
 0x114   :  { %v218_v54 = vpop.f32.mrf.mxu0 }
 0x115   :  { %1109 = verf.f32 %v462_v52  ;;  %v463_v55 = vmul.f32 0.70710677, %v217_v53  ;;  %v219_v56 = vadd.f32 %v218_v54, %v1472_v40  ;;  %v399_v43 = vmul.f32 0.5, %v217_v53 }
 0x116   :  { %v222_v57 = vpop.f32.mrf.mxu0 }
 0x117   :  { %1111 = verf.f32 %v463_v55  ;;  %v464_v58 = vmul.f32 0.70710677, %v219_v56  ;;  %v1481_v59 = vadd.f32 %v222_v57, %v1470_v39  ;;  %v400_v44 = vmul.f32 0.5, %v219_v56 }
 0x118   :  { %v224_v60 = vpop.f32.mrf.mxu0 }
 0x119   :  { %1113 = verf.f32 %v464_v58  ;;  %v465_v61 = vmul.f32 0.70710677, %v1481_v59  ;;  %v1485_v62 = vadd.f32 %v224_v60, %v1472_v40  ;;  %v401_v60 = vmul.f32 0.5, %v1481_v59 }
 0x11a   :  { %v228_v63 = vpop.f32.mrf.mxu0 }
 0x11b   :  { %1115 = verf.f32 %v465_v61  ;;  %v466_v1 = vmul.f32 0.70710677, %v1485_v62  ;;  %v1489_v2 = vadd.f32 %v228_v63, %v1470_v39  ;;  %v402_v56 = vmul.f32 0.5, %v1485_v62 }
 0x11c   :  { %v1104_v3 = vpop.eup %1103  ;;  %v230_v4 = vpop.f32.mrf.mxu0 }
 0x11d   :  { %1117 = verf.f32 %v466_v1  ;;  %v467_v5 = vmul.f32 0.70710677, %v1489_v2  ;;  %v587_v7 = vadd.f32 1.0, %v1104_v3  ;;  %v1493_v8 = vadd.f32 %v230_v4, %v1472_v40 }
 0x11e   :  { %v1106_v6 = vpop.eup %1105  ;;  %v234_v9 = vpop.f32.mrf.mxu0  ;;  %v403_v59 = vmul.f32 0.5, %v1489_v2 }
 0x11f   :  { %1119 = verf.f32 %v467_v5  ;;  %v1496_v11 = vadd.f32 %v234_v9, %v1470_v39  ;;  %v588_v12 = vadd.f32 1.0, %v1106_v6  ;;  %v468_v15 = vmul.f32 0.70710677, %v1493_v8 }
 0x120   :  { %v1108_v13 = vpop.eup %1107  ;;  %v236_v16 = vpop.f32.mrf.mxu0  ;;  %v651_v21 = vmul.f32 %v587_v7, %v395_v14 }
 0x121   :  { %v469_v17 = vmul.f32 0.70710677, %v1496_v11  ;;  %v1501_v18 = vadd.f32 %v236_v16, %v1472_v40  ;;  %v652_v19 = vmul.f32 %v588_v12, %v396_v10  ;;  %1121 = verf.f32 %v468_v15 }
 0x122   :  { %v1110_v20 = vpop.eup %1109  ;;  %v240_v22 = vpop.f32.mrf.mxu0  ;;  %v589_v25 = vadd.f32 1.0, %v1108_v13  ;;  %v404_v12 = vmul.f32 0.5, %v1493_v8 }
 0x123   :  { %1123 = verf.f32 %v469_v17  ;;  %v470_v23 = vmul.f32 0.70710677, %v1501_v18  ;;  %v1505_v24 = vadd.f32 %v240_v22, %v1470_v39  ;;  %818 = vmatprep.mubr.f32.mxu0 %v652_v19  ;;  %v590_v29 = vadd.f32 1.0, %v1110_v20 }
 0x124   :  { %v1112_v26 = vpop.eup %1111  ;;  %v242_v28 = vpop.f32.mrf.mxu0  ;;  %819 = vmatmul.mubr.f32.vlgmr.msra.gmra.mxu0 %v651_v21  ;;  %v653_v41 = vmul.f32 %v589_v25, %v397_v30 }
 0x125   :  { %1125 = verf.f32 %v470_v23  ;;  %v471_v31 = vmul.f32 0.70710677, %v1505_v24  ;;  %v1509_v32 = vadd.f32 %v242_v28, %v1472_v40  ;;  %v654_v35 = vmul.f32 %v590_v29, %v398_v27 }
 0x126   :  { %v1114_v33 = vpop.eup %1113  ;;  %v246_v34 = vpop.f32.mrf.mxu0  ;;  %v591_v36 = vadd.f32 1.0, %v1112_v26  ;;  %v406_v23 = vmul.f32 0.5, %v1501_v18  ;;  %v405_v27 = vmul.f32 0.5, %v1496_v11  ;;  %v407_v11 = vmul.f32 0.5, %v1505_v24 }
 0x127   :  { %1127 = verf.f32 %v471_v31  ;;  %v472_v37 = vmul.f32 0.70710677, %v1509_v32  ;;  %v1513_v38 = vadd.f32 %v246_v34, %v1470_v39  ;;  %823 = vmatprep.mubr.f32.mxu0 %v654_v35  ;;  %v592_v45 = vadd.f32 1.0, %v1114_v33 }
 0x128   :  { %v1116_v42 = vpop.eup %1115  ;;  %v248_v0 = vpop.f32.mrf.mxu0  ;;  %824 = vmatmul.mubr.f32.gmra.mxu0 %v653_v41  ;;  %v655_v51 = vmul.f32 %v591_v36, %v399_v43  ;;  %v408_v41 = vmul.f32 0.5, %v1509_v32 }
 0x129   :  { %1129 = verf.f32 %v472_v37  ;;  %v473_v46 = vmul.f32 0.70710677, %v1513_v38  ;;  %v1517_v47 = vadd.f32 %v248_v0, %v1472_v40  ;;  %v656_v50 = vmul.f32 %v592_v45, %v400_v44 }
 0x12a   :  { %v1118_v48 = vpop.eup %1117  ;;  %v252_v49 = vpop.f32.mrf.mxu0  ;;  %v593_v54 = vadd.f32 1.0, %v1116_v42 }
 0x12b   :  { %1131 = verf.f32 %v473_v46  ;;  %v474_v52 = vmul.f32 0.70710677, %v1517_v47  ;;  %v1521_v53 = vadd.f32 %v252_v49, %v1470_v39  ;;  %828 = vmatprep.mubr.f32.mxu0 %v656_v50  ;;  %v594_v58 = vadd.f32 1.0, %v1118_v48 }
 0x12c   :  { %v1120_v55 = vpop.eup %1119  ;;  %v254_v57 = vpop.f32.mrf.mxu0  ;;  %829 = vmatmul.mubr.f32.gmra.mxu0 %v655_v51  ;;  %v657_v7 = vmul.f32 %v593_v54, %v401_v60 }
 0x12d   :  { %1133 = verf.f32 %v474_v52  ;;  %v475_v61 = vmul.f32 0.70710677, %v1521_v53  ;;  %v1527_v63 = vadd.f32 %v254_v57, %v1472_v40  ;;  %v658_v3 = vmul.f32 %v594_v58, %v402_v56 }
 0x12e   :  { %v258_v1 = vpop.f32.mrf.mxu0  ;;  %v595_v4 = vadd.f32 1.0, %v1120_v55  ;;  %v1122_v5 = vpop.eup %1121  ;;  %v410_v52 = vmul.f32 0.5, %v1517_v47  ;;  %v409_v56 = vmul.f32 0.5, %v1513_v38  ;;  %v411_v38 = vmul.f32 0.5, %v1521_v53 }
 0x12f   :  { %1135 = verf.f32 %v475_v61  ;;  %v476_v6 = vmul.f32 0.70710677, %v1527_v63  ;;  %v1531_v62 = vadd.f32 %v258_v1, %v1470_v39  ;;  %833 = vmatprep.mubr.f32.mxu0 %v658_v3  ;;  %v596_v13 = vadd.f32 1.0, %v1122_v5 }
 0x130   :  { %v1124_v9 = vpop.eup %1123  ;;  %v260_v10 = vpop.f32.mrf.mxu0  ;;  %834 = vmatmul.mubr.f32.gmra.mxu0 %v657_v7  ;;  %v659_v20 = vmul.f32 %v595_v4, %v403_v59  ;;  %v412_v7 = vmul.f32 0.5, %v1527_v63 }
 0x131   :  { %1137 = verf.f32 %v476_v6  ;;  %v477_v14 = vmul.f32 0.70710677, %v1531_v62  ;;  %v1537_v15 = vadd.f32 %v260_v10, %v1472_v40  ;;  %v660_v19 = vmul.f32 %v596_v13, %v404_v12 }
 0x132   :  { %v1126_v16 = vpop.eup %1125  ;;  %v264_v17 = vpop.f32.mrf.mxu0  ;;  %v597_v22 = vadd.f32 1.0, %v1124_v9 }
 0x133   :  { %1139 = verf.f32 %v477_v14  ;;  %v478_v21 = vmul.f32 0.70710677, %v1537_v15  ;;  %v1541_v2 = vadd.f32 %v264_v17, %v1470_v39  ;;  %838 = vmatprep.mubr.f32.mxu1 %v660_v19  ;;  %v598_v26 = vadd.f32 1.0, %v1126_v16 }
 0x134   :  { %v1128_v8 = vpop.eup %1127  ;;  %v266_v25 = vpop.f32.mrf.mxu0  ;;  %839 = vmatmul.mubr.f32.vlgmr.msra.gmra.mxu1 %v659_v20  ;;  %v661_v36 = vmul.f32 %v597_v22, %v405_v27 }
 0x135   :  { %1141 = verf.f32 %v478_v21  ;;  %v479_v28 = vmul.f32 0.70710677, %v1541_v2  ;;  %v1547_v29 = vadd.f32 %v266_v25, %v1472_v40  ;;  %v662_v33 = vmul.f32 %v598_v26, %v406_v23 }
 0x136   :  { %v1130_v30 = vpop.eup %1129  ;;  %v270_v31 = vpop.f32.mrf.mxu0  ;;  %v599_v34 = vadd.f32 1.0, %v1128_v8  ;;  %v414_v21 = vmul.f32 0.5, %v1537_v15  ;;  %v413_v23 = vmul.f32 0.5, %v1531_v62  ;;  %v415_v62 = vmul.f32 0.5, %v1541_v2 }
 0x137   :  { %1143 = verf.f32 %v479_v28  ;;  %v480_v35 = vmul.f32 0.70710677, %v1547_v29  ;;  %v1551_v18 = vadd.f32 %v270_v31, %v1470_v39  ;;  %843 = vmatprep.mubr.f32.mxu1 %v662_v33  ;;  %v600_v43 = vadd.f32 1.0, %v1130_v30 }
 0x138   :  { %v1132_v37 = vpop.eup %1131  ;;  %v272_v42 = vpop.f32.mrf.mxu0  ;;  %844 = vmatmul.mubr.f32.gmra.mxu1 %v661_v36  ;;  %v663_v49 = vmul.f32 %v599_v34, %v407_v11  ;;  %v416_v36 = vmul.f32 0.5, %v1547_v29 }
 0x139   :  { %1145 = verf.f32 %v480_v35  ;;  %v481_v44 = vmul.f32 0.70710677, %v1551_v18  ;;  %v1557_v0 = vadd.f32 %v272_v42, %v1472_v40  ;;  %v664_v48 = vmul.f32 %v600_v43, %v408_v41 }
 0x13a   :  { %v1134_v45 = vpop.eup %1133  ;;  %v276_v46 = vpop.f32.mrf.mxu0  ;;  %v601_v32 = vadd.f32 1.0, %v1132_v37 }
 0x13b   :  { %1147 = verf.f32 %v481_v44  ;;  %v482_v50 = vmul.f32 0.70710677, %v1557_v0  ;;  %v1561_v24 = vadd.f32 %v276_v46, %v1470_v39  ;;  %848 = vmatprep.mubr.f32.mxu1 %v664_v48  ;;  %v602_v55 = vadd.f32 1.0, %v1134_v45 }
 0x13c   :  { %v1136_v51 = vpop.eup %1135  ;;  %v278_v54 = vpop.f32.mrf.mxu0  ;;  %849 = vmatmul.mubr.f32.gmra.mxu1 %v663_v49  ;;  %v665_v5 = vmul.f32 %v601_v32, %v409_v56 }
 0x13d   :  { %1149 = verf.f32 %v482_v50  ;;  %v483_v57 = vmul.f32 0.70710677, %v1561_v24  ;;  %v1567_v58 = vadd.f32 %v278_v54, %v1472_v40  ;;  %v666_v1 = vmul.f32 %v602_v55, %v410_v52 }
 0x13e   :  { %v1138_v60 = vpop.eup %1137  ;;  %v282_v61 = vpop.f32.mrf.mxu0  ;;  %v603_v3 = vadd.f32 1.0, %v1136_v51  ;;  %v418_v50 = vmul.f32 0.5, %v1557_v0  ;;  %v417_v52 = vmul.f32 0.5, %v1551_v18  ;;  %v419_v18 = vmul.f32 0.5, %v1561_v24 }
 0x13f   :  { %1151 = verf.f32 %v483_v57  ;;  %v484_v4 = vmul.f32 0.70710677, %v1567_v58  ;;  %v1571_v47 = vadd.f32 %v282_v61, %v1470_v39  ;;  %853 = vmatprep.mubr.f32.mxu1 %v666_v1  ;;  %v604_v59 = vadd.f32 1.0, %v1138_v60 }
 0x140   :  { %v1140_v6 = vpop.eup %1139  ;;  %v284_v9 = vpop.f32.mrf.mxu0  ;;  %854 = vmatmul.mubr.f32.gmra.mxu1 %v665_v5  ;;  %v667_v17 = vmul.f32 %v603_v3, %v411_v38  ;;  %v420_v5 = vmul.f32 0.5, %v1567_v58 }
 0x141   :  { %1153 = verf.f32 %v484_v4  ;;  %v485_v10 = vmul.f32 0.70710677, %v1571_v47  ;;  %v1577_v12 = vadd.f32 %v284_v9, %v1472_v40  ;;  %v668_v16 = vmul.f32 %v604_v59, %v412_v7 }
 0x142   :  { %v1142_v13 = vpop.eup %1141  ;;  %v288_v14 = vpop.f32.mrf.mxu0  ;;  %v605_v63 = vadd.f32 1.0, %v1140_v6 }
 0x143   :  { %1155 = verf.f32 %v485_v10  ;;  %v486_v19 = vmul.f32 0.70710677, %v1577_v12  ;;  %v1581_v53 = vadd.f32 %v288_v14, %v1470_v39  ;;  %858 = vmatprep.mubr.f32.mxu1 %v668_v16  ;;  %v606_v8 = vadd.f32 1.0, %v1142_v13 }
 0x144   :  { %v1144_v20 = vpop.eup %1143  ;;  %v290_v22 = vpop.f32.mrf.mxu0  ;;  %859 = vmatmul.mubr.f32.gmra.mxu1 %v667_v17  ;;  %v669_v34 = vmul.f32 %v605_v63, %v413_v23 }
 0x145   :  { %1157 = verf.f32 %v486_v19  ;;  %v487_v25 = vmul.f32 0.70710677, %v1581_v53  ;;  %v1587_v26 = vadd.f32 %v290_v22, %v1472_v40  ;;  %v670_v30 = vmul.f32 %v606_v8, %v414_v21 }
 0x146   :  { %v1146_v27 = vpop.eup %1145  ;;  %v294_v28 = vpop.f32.mrf.mxu0  ;;  %v607_v31 = vadd.f32 1.0, %v1144_v20  ;;  %v422_v19 = vmul.f32 0.5, %v1577_v12  ;;  %v421_v21 = vmul.f32 0.5, %v1571_v47  ;;  %v423_v47 = vmul.f32 0.5, %v1581_v53 }
 0x147   :  { %1159 = verf.f32 %v487_v25  ;;  %v488_v33 = vmul.f32 0.70710677, %v1587_v26  ;;  %v1591_v15 = vadd.f32 %v294_v28, %v1470_v39  ;;  %863 = vmatprep.mubr.f32.mxu1 %v670_v30  ;;  %v608_v11 = vadd.f32 1.0, %v1146_v27 }
 0x148   :  { %v1148_v35 = vpop.eup %1147  ;;  %v296_v37 = vpop.f32.mrf.mxu0  ;;  %864 = vmatmul.mubr.f32.gmra.mxu1 %v669_v34  ;;  %v671_v46 = vmul.f32 %v607_v31, %v415_v62  ;;  %v424_v34 = vmul.f32 0.5, %v1587_v26 }
 0x149   :  { %1161 = verf.f32 %v488_v33  ;;  %v489_v41 = vmul.f32 0.70710677, %v1591_v15  ;;  %v1597_v42 = vadd.f32 %v296_v37, %v1472_v40  ;;  %v672_v45 = vmul.f32 %v608_v11, %v416_v36 }
 0x14a   :  { %v1150_v43 = vpop.eup %1149  ;;  %v300_v44 = vpop.f32.mrf.mxu0  ;;  %v609_v29 = vadd.f32 1.0, %v1148_v35 }
 0x14b   :  { %1163 = verf.f32 %v489_v41  ;;  %v490_v48 = vmul.f32 0.70710677, %v1597_v42  ;;  %v1601_v2 = vadd.f32 %v300_v44, %v1470_v39  ;;  %868 = vmatprep.mubr.f32.mxu1 %v672_v45  ;;  %v610_v51 = vadd.f32 1.0, %v1150_v43 }
 0x14c   :  { %v1152_v49 = vpop.eup %1151  ;;  %v302_v32 = vpop.f32.mrf.mxu0  ;;  %869 = vmatmul.mubr.f32.gmra.mxu1 %v671_v46  ;;  %v673_v3 = vmul.f32 %v609_v29, %v417_v52 }
 0x14d   :  { %1165 = verf.f32 %v490_v48  ;;  %v491_v54 = vmul.f32 0.70710677, %v1601_v2  ;;  %v1607_v55 = vadd.f32 %v302_v32, %v1472_v40  ;;  %v674_v60 = vmul.f32 %v610_v51, %v418_v50 }
 0x14e   :  { %v1154_v56 = vpop.eup %1153  ;;  %v306_v57 = vpop.f32.mrf.mxu0  ;;  %v611_v61 = vadd.f32 1.0, %v1152_v49  ;;  %v426_v48 = vmul.f32 0.5, %v1597_v42  ;;  %v425_v50 = vmul.f32 0.5, %v1591_v15  ;;  %v427_v15 = vmul.f32 0.5, %v1601_v2 }
 0x14f   :  { %1167 = verf.f32 %v491_v54  ;;  %v492_v1 = vmul.f32 0.70710677, %v1607_v55  ;;  %v1611_v0 = vadd.f32 %v306_v57, %v1470_v39  ;;  %873 = vmatprep.mubr.f32.mxu1 %v674_v60  ;;  %v612_v38 = vadd.f32 1.0, %v1154_v56 }
 0x150   :  { %v1156_v4 = vpop.eup %1155  ;;  %v308_v6 = vpop.f32.mrf.mxu0  ;;  %874 = vmatmul.mubr.f32.gmra.mxu1 %v673_v3  ;;  %v675_v14 = vmul.f32 %v611_v61, %v419_v18  ;;  %v428_v3 = vmul.f32 0.5, %v1607_v55 }
 0x151   :  { %1169 = verf.f32 %v492_v1  ;;  %v493_v7 = vmul.f32 0.70710677, %v1611_v0  ;;  %v1617_v9 = vadd.f32 %v308_v6, %v1472_v40  ;;  %v676_v13 = vmul.f32 %v612_v38, %v420_v5 }
 0x152   :  { %v1158_v59 = vpop.eup %1157  ;;  %v312_v10 = vpop.f32.mrf.mxu0  ;;  %v613_v58 = vadd.f32 1.0, %v1156_v4 }
 0x153   :  { %1171 = verf.f32 %v493_v7  ;;  %v494_v16 = vmul.f32 0.70710677, %v1617_v9  ;;  %v1621_v24 = vadd.f32 %v312_v10, %v1470_v39  ;;  %878 = vmatprep.mubr.f32.mxu1 %v676_v13  ;;  %v614_v20 = vadd.f32 1.0, %v1158_v59 }
 0x154   :  { %v1160_v17 = vpop.eup %1159  ;;  %v314_v63 = vpop.f32.mrf.mxu0  ;;  %879 = vmatmul.mubr.f32.gmra.mxu1 %v675_v14  ;;  %v677_v31 = vmul.f32 %v613_v58, %v421_v21 }
 0x155   :  { %1173 = verf.f32 %v494_v16  ;;  %v495_v22 = vmul.f32 0.70710677, %v1621_v24  ;;  %v1627_v8 = vadd.f32 %v314_v63, %v1472_v40  ;;  %v678_v27 = vmul.f32 %v614_v20, %v422_v19 }
 0x156   :  { %v1162_v23 = vpop.eup %1161  ;;  %v318_v25 = vpop.f32.mrf.mxu0  ;;  %v615_v28 = vadd.f32 1.0, %v1160_v17  ;;  %v430_v16 = vmul.f32 0.5, %v1617_v9  ;;  %v429_v19 = vmul.f32 0.5, %v1611_v0  ;;  %v431_v0 = vmul.f32 0.5, %v1621_v24 }
 0x157   :  { %1175 = verf.f32 %v495_v22  ;;  %v496_v30 = vmul.f32 0.70710677, %v1627_v8  ;;  %v1631_v12 = vadd.f32 %v318_v25, %v1470_v39  ;;  %883 = vmatprep.mubr.f32.mxu1 %v678_v27  ;;  %v616_v62 = vadd.f32 1.0, %v1162_v23 }
 0x158   :  { %v1164_v33 = vpop.eup %1163  ;;  %v320_v35 = vpop.f32.mrf.mxu0  ;;  %884 = vmatmul.mubr.f32.gmra.mxu1 %v677_v31  ;;  %v679_v44 = vmul.f32 %v615_v28, %v423_v47  ;;  %v432_v31 = vmul.f32 0.5, %v1627_v8 }
 0x159   :  { %1177 = verf.f32 %v496_v30  ;;  %v497_v36 = vmul.f32 0.70710677, %v1631_v12  ;;  %v1637_v37 = vadd.f32 %v320_v35, %v1472_v40  ;;  %v680_v43 = vmul.f32 %v616_v62, %v424_v34 }
 0x15a   :  { %v1166_v11 = vpop.eup %1165  ;;  %v324_v41 = vpop.f32.mrf.mxu0  ;;  %v617_v26 = vadd.f32 1.0, %v1164_v33 }
 0x15b   :  { %1179 = verf.f32 %v497_v36  ;;  %v498_v45 = vmul.f32 0.70710677, %v1637_v37  ;;  %v1641_v53 = vadd.f32 %v324_v41, %v1470_v39  ;;  %888 = vmatprep.mubr.f32.mxu1 %v680_v43  ;;  %v618_v49 = vadd.f32 1.0, %v1166_v11 }
 0x15c   :  { %v1168_v46 = vpop.eup %1167  ;;  %v326_v29 = vpop.f32.mrf.mxu0  ;;  %889 = vmatmul.mubr.f32.gmra.mxu1 %v679_v44  ;;  %v681_v61 = vmul.f32 %v617_v26, %v425_v50 }
 0x15d   :  { %1181 = verf.f32 %v498_v45  ;;  %v499_v32 = vmul.f32 0.70710677, %v1641_v53  ;;  %v1647_v51 = vadd.f32 %v326_v29, %v1472_v40  ;;  %v682_v56 = vmul.f32 %v618_v49, %v426_v48 }
 0x15e   :  { %v1170_v52 = vpop.eup %1169  ;;  %v330_v54 = vpop.f32.mrf.mxu0  ;;  %v619_v57 = vadd.f32 1.0, %v1168_v46  ;;  %v434_v45 = vmul.f32 0.5, %v1637_v37  ;;  %v433_v48 = vmul.f32 0.5, %v1631_v12  ;;  %v435_v12 = vmul.f32 0.5, %v1641_v53 }
 0x15f   :  { %1183 = verf.f32 %v499_v32  ;;  %v500_v60 = vmul.f32 0.70710677, %v1647_v51  ;;  %v1651_v42 = vadd.f32 %v330_v54, %v1470_v39  ;;  %893 = vmatprep.mubr.f32.mxu1 %v682_v56  ;;  %v620_v18 = vadd.f32 1.0, %v1170_v52 }
 0x160   :  { %v1172_v1 = vpop.eup %1171  ;;  %v332_v4 = vpop.f32.mrf.mxu0  ;;  %894 = vmatmul.mubr.f32.gmra.mxu1 %v681_v61  ;;  %v683_v10 = vmul.f32 %v619_v57, %v427_v15  ;;  %v436_v61 = vmul.f32 0.5, %v1647_v51 }
 0x161   :  { %1185 = verf.f32 %v500_v60  ;;  %v501_v5 = vmul.f32 0.70710677, %v1651_v42  ;;  %v1657_v6 = vadd.f32 %v332_v4, %v1472_v40  ;;  %v684_v59 = vmul.f32 %v620_v18, %v428_v3 }
 0x162   :  { %v1174_v38 = vpop.eup %1173  ;;  %v336_v7 = vpop.f32.mrf.mxu0  ;;  %v621_v55 = vadd.f32 1.0, %v1172_v1 }
 0x163   :  { %1187 = verf.f32 %v501_v5  ;;  %v502_v13 = vmul.f32 0.70710677, %v1657_v6  ;;  %v1661_v2 = vadd.f32 %v336_v7, %v1470_v39  ;;  %898 = vmatprep.mubr.f32.mxu1 %v684_v59  ;;  %v622_v17 = vadd.f32 1.0, %v1174_v38 }
 0x164   :  { %v1176_v14 = vpop.eup %1175  ;;  %v338_v58 = vpop.f32.mrf.mxu0  ;;  %899 = vmatmul.mubr.f32.gmra.mxu1 %v683_v10  ;;  %v685_v28 = vmul.f32 %v621_v55, %v429_v19 }
 0x165   :  { %1189 = verf.f32 %v502_v13  ;;  %v503_v63 = vmul.f32 0.70710677, %v1661_v2  ;;  %v1667_v20 = vadd.f32 %v338_v58, %v1472_v40  ;;  %v686_v23 = vmul.f32 %v622_v17, %v430_v16 }
 0x166   :  { %v1178_v21 = vpop.eup %1177  ;;  %v342_v22 = vpop.f32.mrf.mxu0  ;;  %v623_v25 = vadd.f32 1.0, %v1176_v14  ;;  %v438_v13 = vmul.f32 0.5, %v1657_v6  ;;  %v437_v16 = vmul.f32 0.5, %v1651_v42  ;;  %v439_v42 = vmul.f32 0.5, %v1661_v2 }
 0x167   :  { %1191 = verf.f32 %v503_v63  ;;  %v504_v27 = vmul.f32 0.70710677, %v1667_v20  ;;  %v1671_v9 = vadd.f32 %v342_v22, %v1470_v39  ;;  %903 = vmatprep.mubr.f32.mxu1 %v686_v23  ;;  %v624_v47 = vadd.f32 1.0, %v1178_v21 }
 0x168   :  { %v1180_v30 = vpop.eup %1179  ;;  %v344_v33 = vpop.f32.mrf.mxu0  ;;  %904 = vmatmul.mubr.f32.gmra.mxu1 %v685_v28  ;;  %v687_v41 = vmul.f32 %v623_v25, %v431_v0  ;;  %v440_v28 = vmul.f32 0.5, %v1667_v20 }
 0x169   :  { %1193 = verf.f32 %v504_v27  ;;  %v505_v34 = vmul.f32 0.70710677, %v1671_v9  ;;  %v1677_v35 = vadd.f32 %v344_v33, %v1472_v40  ;;  %v688_v11 = vmul.f32 %v624_v47, %v432_v31 }
 0x16a   :  { %v1182_v62 = vpop.eup %1181  ;;  %v348_v36 = vpop.f32.mrf.mxu0  ;;  %v625_v8 = vadd.f32 1.0, %v1180_v30 }
 0x16b   :  { %1195 = verf.f32 %v505_v34  ;;  %v506_v43 = vmul.f32 0.70710677, %v1677_v35  ;;  %v1681_v24 = vadd.f32 %v348_v36, %v1470_v39  ;;  %908 = vmatprep.mubr.f32.mxu1 %v688_v11  ;;  %v626_v46 = vadd.f32 1.0, %v1182_v62 }
 0x16c   :  { %v1184_v44 = vpop.eup %1183  ;;  %v350_v26 = vpop.f32.mrf.mxu0  ;;  %909 = vmatmul.mubr.f32.gmra.mxu1 %v687_v41  ;;  %v689_v57 = vmul.f32 %v625_v8, %v433_v48 }
 0x16d   :  { %1197 = verf.f32 %v506_v43  ;;  %v507_v29 = vmul.f32 0.70710677, %v1681_v24  ;;  %v1687_v49 = vadd.f32 %v350_v26, %v1472_v40  ;;  %v690_v52 = vmul.f32 %v626_v46, %v434_v45 }
 0x16e   :  { %v1186_v50 = vpop.eup %1185  ;;  %v354_v32 = vpop.f32.mrf.mxu0  ;;  %v627_v54 = vadd.f32 1.0, %v1184_v44  ;;  %v442_v43 = vmul.f32 0.5, %v1677_v35  ;;  %v441_v45 = vmul.f32 0.5, %v1671_v9  ;;  %v443_v9 = vmul.f32 0.5, %v1681_v24 }
 0x16f   :  { %1199 = verf.f32 %v507_v29  ;;  %v508_v56 = vmul.f32 0.70710677, %v1687_v49  ;;  %v1691_v37 = vadd.f32 %v354_v32, %v1470_v39  ;;  %913 = vmatprep.mubr.f32.mxu1 %v690_v52  ;;  %v628_v15 = vadd.f32 1.0, %v1186_v50 }
 0x170   :  { %v1188_v60 = vpop.eup %1187  ;;  %v356_v1 = vpop.f32.mrf.mxu0  ;;  %914 = vmatmul.mubr.f32.gmra.mxu1 %v689_v57  ;;  %v691_v7 = vmul.f32 %v627_v54, %v435_v12  ;;  %v444_v57 = vmul.f32 0.5, %v1687_v49 }
 0x171   :  { %1201 = verf.f32 %v508_v56  ;;  %v509_v3 = vmul.f32 0.70710677, %v1691_v37  ;;  %v1697_v4 = vadd.f32 %v356_v1, %v1472_v40  ;;  %v692_v38 = vmul.f32 %v628_v15, %v436_v61 }
 0x172   :  { %v1190_v18 = vpop.eup %1189  ;;  %v360_v5 = vpop.f32.mrf.mxu0  ;;  %v629_v51 = vadd.f32 1.0, %v1188_v60 }
 0x173   :  { %1203 = verf.f32 %v509_v3  ;;  %v510_v59 = vmul.f32 0.70710677, %v1697_v4  ;;  %v1701_v53 = vadd.f32 %v360_v5, %v1470_v39  ;;  %918 = vmatprep.mubr.f32.mxu1 %v692_v38  ;;  %v630_v14 = vadd.f32 1.0, %v1190_v18 }
 0x174   :  { %v1192_v10 = vpop.eup %1191  ;;  %v362_v55 = vpop.f32.mrf.mxu0  ;;  %919 = vmatmul.mubr.f32.gmra.mxu1 %v691_v7  ;;  %v693_v25 = vmul.f32 %v629_v51, %v437_v16 }
 0x175   :  { %1205 = verf.f32 %v510_v59  ;;  %v511_v58 = vmul.f32 0.70710677, %v1701_v53  ;;  %v1707_v17 = vadd.f32 %v362_v55, %v1472_v40  ;;  %v694_v21 = vmul.f32 %v630_v14, %v438_v13 }
 0x176   :  { %v1194_v19 = vpop.eup %1193  ;;  %v366_v63 = vpop.f32.mrf.mxu0  ;;  %v631_v22 = vadd.f32 1.0, %v1192_v10  ;;  %v446_v59 = vmul.f32 0.5, %v1697_v4  ;;  %v445_v13 = vmul.f32 0.5, %v1691_v37 }
 0x177   :  { %1207 = verf.f32 %v511_v58  ;;  %v512_v23 = vmul.f32 0.70710677, %v1707_v17  ;;  %v1711_v6 = vadd.f32 %v366_v63, %v1470_v39  ;;  %923 = vmatprep.mubr.f32.mxu1 %v694_v21  ;;  %v632_v0 = vadd.f32 1.0, %v1194_v19 }
 0x178   :  { %v1196_v27 = vpop.eup %1195  ;;  %v368_v30 = vpop.f32.mrf.mxu0  ;;  %924 = vmatmul.mubr.f32.gmra.mxu1 %v693_v25  ;;  %v695_v36 = vmul.f32 %v631_v22, %v439_v42  ;;  %v447_v25 = vmul.f32 0.5, %v1701_v53  ;;  %v448_v37 = vmul.f32 0.5, %v1707_v17 }
 0x179   :  { %1209 = verf.f32 %v512_v23  ;;  %v513_v31 = vmul.f32 0.70710677, %v1711_v6  ;;  %v1717_v33 = vadd.f32 %v368_v30, %v1472_v40  ;;  %v696_v62 = vmul.f32 %v632_v0, %v440_v28 }
 0x17a   :  { %v1198_v47 = vpop.eup %1197  ;;  %v372_v34 = vpop.f32.mrf.mxu0  ;;  %v633_v20 = vadd.f32 1.0, %v1196_v27  ;;  %v449_v17 = vmul.f32 0.5, %v1711_v6 }
 0x17b   :  { %1211 = verf.f32 %v513_v31  ;;  %v514_v11 = vmul.f32 0.70710677, %v1717_v33  ;;  %v1721_v2 = vadd.f32 %v372_v34, %v1470_v39  ;;  %928 = vmatprep.mubr.f32.mxu1 %v696_v62  ;;  %v634_v44 = vadd.f32 1.0, %v1198_v47 }
 0x17c   :  { %v1200_v41 = vpop.eup %1199  ;;  %v374_v8 = vpop.f32.mrf.mxu0  ;;  %929 = vmatmul.mubr.f32.gmra.mxu1 %v695_v36  ;;  %v697_v54 = vmul.f32 %v633_v20, %v441_v45  ;;  %v450_v31 = vmul.f32 0.5, %v1717_v33 }
 0x17d   :  { %1213 = verf.f32 %v514_v11  ;;  %v515_v26 = vmul.f32 0.70710677, %v1721_v2  ;;  %v1727_v46 = vadd.f32 %v374_v8, %v1472_v40  ;;  %v698_v50 = vmul.f32 %v634_v44, %v442_v43 }
 0x17e   :  { %v1202_v48 = vpop.eup %1201  ;;  %v378_v29 = vpop.f32.mrf.mxu0  ;;  %v635_v32 = vadd.f32 1.0, %v1200_v41  ;;  %v451_v44 = vmul.f32 0.5, %v1721_v2 }
 0x17f   :  { %1215 = verf.f32 %v515_v26  ;;  %v516_v52 = vmul.f32 0.70710677, %v1727_v46  ;;  %v1731_v35 = vadd.f32 %v378_v29, %v1470_v39  ;;  %933 = vmatprep.mubr.f32.mxu1 %v698_v50  ;;  %v636_v12 = vadd.f32 1.0, %v1202_v48 }
 0x180   :  { %v1204_v56 = vpop.eup %1203  ;;  %v380_v60 = vpop.f32.mrf.mxu0  ;;  %934 = vmatmul.mubr.f32.gmra.mxu1 %v697_v54  ;;  %v699_v5 = vmul.f32 %v635_v32, %v443_v9 }
 0x181   :  { %1217 = verf.f32 %v516_v52  ;;  %v517_v61 = vmul.f32 0.70710677, %v1731_v35  ;;  %v381_v1 = vadd.f32 %v380_v60, %v1472_v40  ;;  %v700_v18 = vmul.f32 %v636_v12, %v444_v57 }
 0x182   :  { %v1206_v15 = vpop.eup %1205  ;;  %v384_v3 = vpop.f32.mrf.mxu0  ;;  %v637_v24 = vadd.f32 1.0, %v1204_v56  ;;  %v453_v52 = vmul.f32 0.5, %v1731_v35 }
 0x183   :  { %1219 = verf.f32 %v517_v61  ;;  %v518_v38 = vmul.f32 0.70710677, %v381_v1  ;;  %v1738_v7 = vadd.f32 %v384_v3, %v1470_v39  ;;  %938 = vmatprep.mubr.f32.mxu1 %v700_v18  ;;  %v638_v10 = vadd.f32 1.0, %v1206_v15 }
 0x184   :  { %v1208_v49 = vpop.eup %1207  ;;  %v386_v51 = vpop.f32.mrf.mxu0  ;;  %939 = vmatmul.mubr.f32.gmra.mxu1 %v699_v5  ;;  %v701_v4 = vmul.f32 %v637_v24, %v445_v13  ;;  %v454_v48 = vmul.f32 0.5, %v381_v1 }
 0x185   :  { %1221 = verf.f32 %v518_v38  ;;  %v519_v55 = vmul.f32 0.70710677, %v1738_v7  ;;  %v387_v14 = vadd.f32 %v386_v51, %v1472_v40  ;;  %v702_v19 = vmul.f32 %v638_v10, %v446_v59 }
 0x186   :  { %v1210_v16 = vpop.eup %1209  ;;  %v390_v58 = vpop.f32.mrf.mxu0  ;;  %v639_v63 = vadd.f32 1.0, %v1208_v49  ;;  %v455_v12 = vmul.f32 0.5, %v1738_v7  ;;  %v1757_v49 = vld [vmem:[%s1801_s4] ss:$0 sm:$0xff]  ;;  %s1325_s4 = smov [#allocation8]  }
 0x187   :  { %1223 = verf.f32 %v519_v55  ;;  %v520_v21 = vmul.f32 0.70710677, %v387_v14  ;;  %v391_v22 = vadd.f32 %v390_v58, %v1470_v39  ;;  %943 = vmatprep.mubr.f32.mxu1 %v702_v19  ;;  %v640_v42 = vadd.f32 1.0, %v1210_v16  ;;  %s1016_s12 = sshll.u32 %s1325_s4, 4  ;;  %s1017_s12 = int_to_ptr.vmem [resolvable:$true] %s1016_s12 }
 0x188   :  { %v1212_v23 = vpop.eup %1211  ;;  %v392_v27 = vpop.f32.mrf.mxu0  ;;  %944 = vmatmul.mubr.f32.gmra.mxu1 %v701_v4  ;;  %v703_v34 = vmul.f32 %v639_v63, %v447_v25  ;;  %v456_v56 = vmul.f32 0.5, %v387_v14  ;;  %s1291_s13 = scalar_lea.vmem %s1017_s12, 4096  ;;  %p1296_p2 = scmp.lt.s32.totalorder %s1017_s12, %s1017_s12 }
 0x189   :  { %1225 = verf.f32 %v520_v21  ;;  %v521_v28 = vmul.f32 0.70710677, %v391_v22  ;;  %v393_v30 = vadd.f32 %v392_v27, %v1472_v40  ;;  %v704_v47 = vmul.f32 %v640_v42, %v448_v37  ;;  %p1292_p1 = scmp.ne.s32.totalorder %s1017_s12, %s1291_s13  ;;  %p1297_p3 = scmp.lt.s32.totalorder %s1291_s13, %s1291_s13 }
 0x18a   :  { %v1214_v0 = vpop.eup %1213  ;;  %v641_v36 = vadd.f32 1.0, %v1212_v23  ;;  %v452_v40 = vmul.f32 0.5, %v1727_v46  ;;  %v457_v35 = vmul.f32 0.5, %v391_v22 }
 0x18b   :  { %1227 = verf.f32 %v521_v28  ;;  %v522_v39 = vmul.f32 0.70710677, %v393_v30  ;;  %v642_v62 = vadd.f32 1.0, %v1214_v0  ;;  %948 = vmatprep.mubr.f32.mxu1 %v704_v47  ;;  %v458_v15 = vmul.f32 0.5, %v393_v30  ;;  %p1298_p4 = por %p1297_p3, %p1296_p2 }
 0x18c   :  { %v1216_v53 = vpop.eup %1215  ;;  %949 = vmatmul.mubr.f32.gmra.mxu1 %v703_v34  ;;  %v705_v41 = vmul.f32 %v641_v36, %v449_v17 }
 0x18d   :  { %1229 = verf.f32 %v522_v39  ;;  %v706_v11 = vmul.f32 %v642_v62, %v450_v31  ;;  %v643_v33 = vadd.f32 1.0, %v1216_v53  ;;  %p1299_p5 = pnand %p1298_p4, %p1292_p1 }
 0x18e   :  { %v1218_v20 = vpop.eup %1217 }
 0x18f   :  { %953 = vmatprep.mubr.f32.mxu1 %v706_v11  ;;  %v644_v43 = vadd.f32 1.0, %v1218_v20  ;;  %v707_v29 = vmul.f32 %v643_v33, %v451_v44 }
 0x190   :  { %v1220_v8 = vpop.eup %1219  ;;  %954 = vmatmul.mubr.f32.gmra.mxu1 %v705_v41 }
 0x191   :  { %v708_v45 = vmul.f32 %v644_v43, %v452_v40  ;;  %v645_v50 = vadd.f32 1.0, %v1220_v8 }
 0x192   :  { %v1222_v26 = vpop.eup %1221 }
 0x193   :  { %958 = vmatprep.mubr.f32.mxu1 %v708_v45  ;;  %v646_v6 = vadd.f32 1.0, %v1222_v26  ;;  %v709_v9 = vmul.f32 %v645_v50, %v453_v52 }
 0x194   :  { %v1224_v32 = vpop.eup %1223  ;;  %959 = vmatmul.mubr.f32.gmra.mxu1 %v707_v29 }
 0x195   :  { %v710_v46 = vmul.f32 %v646_v6, %v454_v48  ;;  %v647_v60 = vadd.f32 1.0, %v1224_v32 }
 0x196   :  { %v1226_v54 = vpop.eup %1225 }
 0x197   :  { %963 = vmatprep.mubr.f32.mxu1 %v710_v46  ;;  %v648_v57 = vadd.f32 1.0, %v1226_v54  ;;  %v711_v3 = vmul.f32 %v647_v60, %v455_v12 }
 0x198   :  { %v1228_v2 = vpop.eup %1227  ;;  %964 = vmatmul.mubr.f32.gmra.mxu1 %v709_v9 }
 0x199   :  { %v712_v61 = vmul.f32 %v648_v57, %v456_v56  ;;  %v649_v5 = vadd.f32 1.0, %v1228_v2 }
 0x19a   :  { %v1230_v1 = vpop.eup %1229 }
 0x19b   :  { %968 = vmatprep.mubr.f32.mxu1 %v712_v61  ;;  %v650_v18 = vadd.f32 1.0, %v1230_v1  ;;  %v713_v24 = vmul.f32 %v649_v5, %v457_v35 }
 0x19c   :  { %969 = vmatmul.mubr.f32.gmra.mxu1 %v711_v3 }
 0x19d   :  { %v714_v38 = vmul.f32 %v650_v18, %v458_v15 }
 0x19f   :  { %973 = vmatprep.mubr.f32.mxu1 %v714_v38 }
 0x1a0   :  { %974 = vmatmul.mubr.f32.gmra.mxu1 %v713_v24 }
 0x1e4   :  { %v820_v7 = vpop.f32.mrf.mxu0 }
 0x1e5   :  { %v821_v59 = vadd.f32 %v1757_v49, %v820_v7 }
 0x1e6   :  { %v822_v51 = vpop.f32.mrf.mxu0 }
 0x1e7   :  { %979 = vst [vmem:[#allocation8] sm:$0xff] %v821_v59 }
 0x1e8   :  { %v825_v10 = vpop.f32.mrf.mxu0 }
 0x1e9   :  { %v826_v13 = vadd.f32 %v1757_v49, %v825_v10 }
 0x1ea   :  { %v827_v55 = vpop.f32.mrf.mxu0 }
 0x1eb   :  { %980 = vst [vmem:[#allocation8 + $0x8] sm:$0xff] %v826_v13 }
 0x1ec   :  { %v830_v14 = vpop.f32.mrf.mxu0 }
 0x1ed   :  { %v831_v16 = vadd.f32 %v1757_v49, %v830_v14 }
 0x1ee   :  { %v832_v58 = vpop.f32.mrf.mxu0 }
 0x1ef   :  { %981 = vst [vmem:[#allocation8 + $0x10] sm:$0xff] %v831_v16 }
 0x1f0   :  { %v835_v19 = vpop.f32.mrf.mxu0 }
 0x1f1   :  { %v836_v63 = vadd.f32 %v1757_v49, %v835_v19 }
 0x1f2   :  { %v837_v21 = vpop.f32.mrf.mxu0 }
 0x1f3   :  { %982 = vst [vmem:[#allocation8 + $0x18] sm:$0xff] %v836_v63 }
 0x1f4   :  { %v840_v22 = vpop.f32.mrf.mxu1 }
 0x1f5   :  { %v841_v4 = vadd.f32 %v1757_v49, %v840_v22 }
 0x1f6   :  { %v842_v23 = vpop.f32.mrf.mxu1 }
 0x1f7   :  { %983 = vst [vmem:[#allocation8 + $0x20] sm:$0xff] %v841_v4 }
 0x1f8   :  { %v845_v25 = vpop.f32.mrf.mxu1 }
 0x1f9   :  { %v846_v37 = vadd.f32 %v1757_v49, %v845_v25 }
 0x1fa   :  { %v847_v27 = vpop.f32.mrf.mxu1 }
 0x1fb   :  { %984 = vst [vmem:[#allocation8 + $0x28] sm:$0xff] %v846_v37 }
 0x1fc   :  { %v850_v42 = vpop.f32.mrf.mxu1 }
 0x1fd   :  { %v851_v28 = vadd.f32 %v1757_v49, %v850_v42 }
 0x1fe   :  { %v852_v30 = vpop.f32.mrf.mxu1 }
 0x1ff   :  { %985 = vst [vmem:[#allocation8 + $0x30] sm:$0xff] %v851_v28 }
 0x200   :  { %v855_v0 = vpop.f32.mrf.mxu1 }
 0x201   :  { %v856_v31 = vadd.f32 %v1757_v49, %v855_v0 }
 0x202   :  { %v857_v47 = vpop.f32.mrf.mxu1 }
 0x203   :  { %986 = vst [vmem:[#allocation8 + $0x38] sm:$0xff] %v856_v31 }
 0x204   :  { %v860_v34 = vpop.f32.mrf.mxu1 }
 0x205   :  { %v861_v39 = vadd.f32 %v1757_v49, %v860_v34 }
 0x206   :  { %v862_v62 = vpop.f32.mrf.mxu1 }
 0x207   :  { %987 = vst [vmem:[#allocation8 + $0x40] sm:$0xff] %v861_v39 }
 0x208   :  { %v865_v36 = vpop.f32.mrf.mxu1 }
 0x209   :  { %v866_v53 = vadd.f32 %v1757_v49, %v865_v36 }
 0x20a   :  { %v867_v17 = vpop.f32.mrf.mxu1 }
 0x20b   :  { %988 = vst [vmem:[#allocation8 + $0x48] sm:$0xff] %v866_v53 }
 0x20c   :  { %v870_v11 = vpop.f32.mrf.mxu1 }
 0x20d   :  { %v871_v20 = vadd.f32 %v1757_v49, %v870_v11 }
 0x20e   :  { %v872_v40 = vpop.f32.mrf.mxu1 }
 0x20f   :  { %989 = vst [vmem:[#allocation8 + $0x50] sm:$0xff] %v871_v20 }
 0x210   :  { %v875_v41 = vpop.f32.mrf.mxu1 }
 0x211   :  { %v876_v43 = vadd.f32 %v1757_v49, %v875_v41 }
 0x212   :  { %v877_v33 = vpop.f32.mrf.mxu1 }
 0x213   :  { %990 = vst [vmem:[#allocation8 + $0x58] sm:$0xff] %v876_v43 }
 0x214   :  { %v880_v8 = vpop.f32.mrf.mxu1 }
 0x215   :  { %v881_v44 = vadd.f32 %v1757_v49, %v880_v8 }
 0x216   :  { %v882_v45 = vpop.f32.mrf.mxu1 }
 0x217   :  { %991 = vst [vmem:[#allocation8 + $0x60] sm:$0xff] %v881_v44 }
 0x218   :  { %v885_v26 = vpop.f32.mrf.mxu1 }
 0x219   :  { %v886_v48 = vadd.f32 %v1757_v49, %v885_v26 }
 0x21a   :  { %v887_v29 = vpop.f32.mrf.mxu1 }
 0x21b   :  { %992 = vst [vmem:[#allocation8 + $0x68] sm:$0xff] %v886_v48 }
 0x21c   :  { %v890_v6 = vpop.f32.mrf.mxu1 }
 0x21d   :  { %v891_v50 = vadd.f32 %v1757_v49, %v890_v6 }
 0x21e   :  { %v892_v32 = vpop.f32.mrf.mxu1 }
 0x21f   :  { %993 = vst [vmem:[#allocation8 + $0x70] sm:$0xff] %v891_v50 }
 0x220   :  { %v895_v52 = vpop.f32.mrf.mxu1 }
 0x221   :  { %v896_v46 = vadd.f32 %v1757_v49, %v895_v52 }
 0x222   :  { %v897_v54 = vpop.f32.mrf.mxu1 }
 0x223   :  { %994 = vst [vmem:[#allocation8 + $0x78] sm:$0xff] %v896_v46 }
 0x224   :  { %v900_v56 = vpop.f32.mrf.mxu1 }
 0x225   :  { %v901_v9 = vadd.f32 %v1757_v49, %v900_v56 }
 0x226   :  { %v902_v57 = vpop.f32.mrf.mxu1 }
 0x227   :  { %995 = vst [vmem:[#allocation8 + $0x80] sm:$0xff] %v901_v9 }
 0x228   :  { %v905_v60 = vpop.f32.mrf.mxu1 }
 0x229   :  { %v906_v2 = vadd.f32 %v1757_v49, %v905_v60 }
 0x22a   :  { %v907_v12 = vpop.f32.mrf.mxu1 }
 0x22b   :  { %996 = vst [vmem:[#allocation8 + $0x88] sm:$0xff] %v906_v2 }
 0x22c   :  { %v910_v61 = vpop.f32.mrf.mxu1 }
 0x22d   :  { %v911_v1 = vadd.f32 %v1757_v49, %v910_v61 }
 0x22e   :  { %v912_v15 = vpop.f32.mrf.mxu1 }
 0x22f   :  { %997 = vst [vmem:[#allocation8 + $0x90] sm:$0xff] %v911_v1 }
 0x230   :  { %v915_v3 = vpop.f32.mrf.mxu1 }
 0x231   :  { %v916_v18 = vadd.f32 %v1757_v49, %v915_v3 }
 0x232   :  { %v917_v5 = vpop.f32.mrf.mxu1 }
 0x233   :  { %998 = vst [vmem:[#allocation8 + $0x98] sm:$0xff] %v916_v18 }
 0x234   :  { %v920_v35 = vpop.f32.mrf.mxu1 }
 0x235   :  { %v921_v38 = vadd.f32 %v1757_v49, %v920_v35 }
 0x236   :  { %v922_v24 = vpop.f32.mrf.mxu1 }
 0x237   :  { %999 = vst [vmem:[#allocation8 + $0xa0] sm:$0xff] %v921_v38 }
 0x238   :  { %v925_v7 = vpop.f32.mrf.mxu1 }
 0x239   :  { %v926_v59 = vadd.f32 %v1757_v49, %v925_v7 }
 0x23a   :  { %v927_v51 = vpop.f32.mrf.mxu1 }
 0x23b   :  { %1000 = vst [vmem:[#allocation8 + $0xa8] sm:$0xff] %v926_v59 }
 0x23c   :  { %v930_v10 = vpop.f32.mrf.mxu1 }
 0x23d   :  { %v931_v13 = vadd.f32 %v1757_v49, %v930_v10 }
 0x23e   :  { %v932_v55 = vpop.f32.mrf.mxu1 }
 0x23f   :  { %1001 = vst [vmem:[#allocation8 + $0xb0] sm:$0xff] %v931_v13 }
 0x240   :  { %v935_v14 = vpop.f32.mrf.mxu1 }
 0x241   :  { %v936_v16 = vadd.f32 %v1757_v49, %v935_v14 }
 0x242   :  { %v937_v58 = vpop.f32.mrf.mxu1 }
 0x243   :  { %1002 = vst [vmem:[#allocation8 + $0xb8] sm:$0xff] %v936_v16 }
 0x244   :  { %v940_v19 = vpop.f32.mrf.mxu1 }
 0x245   :  { %v941_v63 = vadd.f32 %v1757_v49, %v940_v19 }
 0x246   :  { %v942_v21 = vpop.f32.mrf.mxu1 }
 0x247   :  { %1003 = vst [vmem:[#allocation8 + $0xc0] sm:$0xff] %v941_v63 }
 0x248   :  { %v945_v22 = vpop.f32.mrf.mxu1 }
 0x249   :  { %v946_v4 = vadd.f32 %v1757_v49, %v945_v22 }
 0x24a   :  { %v947_v23 = vpop.f32.mrf.mxu1 }
 0x24b   :  { %1004 = vst [vmem:[#allocation8 + $0xc8] sm:$0xff] %v946_v4 }
 0x24c   :  { %v950_v25 = vpop.f32.mrf.mxu1 }
 0x24d   :  { %v951_v37 = vadd.f32 %v1757_v49, %v950_v25 }
 0x24e   :  { %v952_v27 = vpop.f32.mrf.mxu1 }
 0x24f   :  { %1005 = vst [vmem:[#allocation8 + $0xd0] sm:$0xff] %v951_v37 }
 0x250   :  { %v955_v42 = vpop.f32.mrf.mxu1 }
 0x251   :  { %v956_v28 = vadd.f32 %v1757_v49, %v955_v42 }
 0x252   :  { %v957_v30 = vpop.f32.mrf.mxu1 }
 0x253   :  { %1006 = vst [vmem:[#allocation8 + $0xd8] sm:$0xff] %v956_v28 }
 0x254   :  { %v960_v0 = vpop.f32.mrf.mxu1 }
 0x255   :  { %v961_v31 = vadd.f32 %v1757_v49, %v960_v0 }
 0x256   :  { %v962_v47 = vpop.f32.mrf.mxu1 }
 0x257   :  { %1007 = vst [vmem:[#allocation8 + $0xe0] sm:$0xff] %v961_v31 }
 0x258   :  { %v965_v34 = vpop.f32.mrf.mxu1 }
 0x259   :  { %v966_v39 = vadd.f32 %v1757_v49, %v965_v34 }
 0x25a   :  { %v967_v62 = vpop.f32.mrf.mxu1 }
 0x25b   :  { %1008 = vst [vmem:[#allocation8 + $0xe8] sm:$0xff] %v966_v39 }
 0x25c   :  { %v970_v36 = vpop.f32.mrf.mxu1 }
 0x25d   :  { %v971_v53 = vadd.f32 %v1757_v49, %v970_v36 }
 0x25e   :  { %v972_v17 = vpop.f32.mrf.mxu1 }
 0x25f   :  { %1009 = vst [vmem:[#allocation8 + $0xf0] sm:$0xff] %v971_v53 }
 0x260   :  { %v975_v11 = vpop.f32.mrf.mxu1 }
 0x261   :  { %v976_v20 = vadd.f32 %v1757_v49, %v975_v11 }
 0x262   :  { %v977_v40 = vpop.f32.mrf.mxu1 }
 0x263   :  { %1010 = vst [vmem:[#allocation8 + $0xf8] sm:$0xff] %v976_v20 }
 0x264   :  { %1302 = shalt.err (!%p1299_p5)
}
 0x265   :  { %1022 = dma.vmem_to_hbm [thread:$0]  %s1017_s12, 4096, %s1802_s5, [#allocation4], %s1321_s28, %s1321_s28, %s1322_s29  }
 0x266   :  { %1315 = dma.done.wait [#allocation4], 4096  }
 0x267   :  { %1316 = vsyncadd [#allocation4], 4294963200 }
 0x268   :  { %1026 = vsyncpa [#allocation3], 1 }
 0x269   :  { %1027 = vsyncpa [#allocation6], 1 }
 0x26a   :  { %1028 = vsyncpa [#allocation4], 1 }

</bundles_post_ra>
